<compile_context>
chip_gen: v7x
topology: tpu7x:2x2x1
jax: 0.10.0
libtpu: 0.0.40
codegen_flags: <defaults>
</compile_context>

<pallas_src>
import functools

import jax
import jax.numpy as jnp
from jax.experimental import pallas as pl
from jax.experimental.pallas import tpu as pltpu

EPS = 1e-6           # norm_layer = partial(nn.LayerNorm, eps=1e-6)
NEG_INF = -1e30      # additive mask for padded key positions


# ----------------------------- in-kernel helpers -----------------------------

def _layernorm(x, w, b):
    # PyTorch LayerNorm: biased variance over the last dim. Kept in f32.
    mu = jnp.mean(x, axis=-1, keepdims=True)
    xc = x - mu
    var = jnp.mean(xc * xc, axis=-1, keepdims=True)
    return xc * jax.lax.rsqrt(var + EPS) * w + b


def _gelu(x):
    # TODO(synk): torch.nn.GELU() is the exact erf-GELU; tanh approximation used
    # here to guarantee Mosaic lowering (max abs diff ~1e-3).
    c = 0.7978845608028654  # sqrt(2/pi)
    return 0.5 * x * (1.0 + jnp.tanh(c * (x + 0.044715 * x * x * x)))


# --------------------------- patch-embed matmul kernel ------------------------

def _linear_kernel(x_ref, w_ref, b_ref, o_ref):
    o_ref[...] = (
        jnp.dot(x_ref[...], w_ref[...], preferred_element_type=jnp.float32)
        + b_ref[...]
    )


def pallas_linear(x, w, b, *, tile_m=256):
    """x:(M,K)bf16 @ w:(K,N)bf16 + b:(1,N)f32 -> (M,N)f32, tiled over M.

    M is tiled with up to `tile_m`-row blocks ('parallel' -> v7x dual-TC split);
    K and N are kept whole (K is small for patch embedding).
    """
    M, K = x.shape
    _, N = w.shape
    tm = min(tile_m, M)
    return pl.pallas_call(
        _linear_kernel,
        out_shape=jax.ShapeDtypeStruct((M, N), jnp.float32),
        grid=(pl.cdiv(M, tm),),
        in_specs=[
            pl.BlockSpec((tm, K), lambda i: (i, 0)),
            pl.BlockSpec((K, N), lambda i: (0, 0)),
            pl.BlockSpec((1, N), lambda i: (0, 0)),
        ],
        out_specs=pl.BlockSpec((tm, N), lambda i: (i, 0)),
        compiler_params=pltpu.CompilerParams(
            dimension_semantics=("parallel",)),
    )(x, w, b)


# --------------------------- fused transformer stack --------------------------

def _stack_kernel(x_ref, ln1w_ref, ln1b_ref, qkvw_ref, qkvb_ref,
                  projw_ref, projb_ref, ln2w_ref, ln2b_ref,
                  fc1w_ref, fc1b_ref, fc2w_ref, fc2b_ref,
                  normw_ref, normb_ref, headw_ref, headb_ref,
                  o_ref, x_scr,
                  *, num_heads, n_valid):
    """Grid = (depth,). One grid step = one transformer block over the WHOLE batch.

    The (B, N, D) residual stream lives in the VMEM scratch `x_scr` across all
    depth iterations; block d+1 weights are prefetched by the BlockSpec pipeline
    while block d computes.  The final norm + classifier run in the last step.
    """
    d = pl.program_id(0)
    n_blocks = pl.num_programs(0)

    # Load the whole batch's tokens into the resident scratch once (bf16 -> f32).
    @pl.when(d == 0)
    def _():
        x_scr[...] = x_ref[...].astype(jnp.float32)

    B, N, D = x_scr.shape
    H = num_heads
    hd = D // H
    BN = B * N

    x = x_scr[...].reshape(BN, D)                    # (B*N, D) f32 residual stream

    # Hoist parameter reads (one load each).
    w_ln1, b_ln1 = ln1w_ref[0], ln1b_ref[0]          # (1, D)  f32
    w_qkv, b_qkv = qkvw_ref[0], qkvb_ref[0]          # (D, 3D) bf16, (1, 3D) f32
    w_proj, b_proj = projw_ref[0], projb_ref[0]      # (D, D)  bf16, (1, D) f32
    w_ln2, b_ln2 = ln2w_ref[0], ln2b_ref[0]          # (1, D)  f32
    w_fc1, b_fc1 = fc1w_ref[0], fc1b_ref[0]          # (D, 4D) bf16, (1, 4D) f32
    w_fc2, b_fc2 = fc2w_ref[0], fc2b_ref[0]          # (4D, D) bf16, (1, D) f32

    # ------------------------- attention branch -------------------------
    xn = _layernorm(x, w_ln1, b_ln1)                                      # f32
    # 1/sqrt(hd) is pre-folded into the q columns of w_qkv / b_qkv.
    qkv = jnp.dot(xn.astype(jnp.bfloat16), w_qkv,
                  preferred_element_type=jnp.float32) + b_qkv             # (BN,3D)
    qkv = qkv.astype(jnp.bfloat16)                   # MXU operands (f32 accum below)

    q = qkv[:, 0 * D:1 * D]                          # lane-aligned (128) slices
    k = qkv[:, 1 * D:2 * D]
    v = qkv[:, 2 * D:3 * D]

    key_mask = None
    if n_valid < N:                                  # mask padded key positions
        key_id = jax.lax.broadcasted_iota(jnp.int32, (1, 1, N), 2)
        key_mask = key_id < n_valid

    outs = []
    for h in range(H):                               # static unroll (small H)
        sl = slice(h * hd, (h + 1) * hd)
        qh = q[:, sl].reshape(B, N, hd)
        kh = k[:, sl].reshape(B, N, hd)
        vh = v[:, sl].reshape(B, N, hd)
        s = jnp.einsum('bqd,bkd->bqk', qh, kh,
                       preferred_element_type=jnp.float32)                # (B,N,N)
        if key_mask is not None:
            s = jnp.where(key_mask, s, NEG_INF)
        s = s - jnp.max(s, axis=-1, keepdims=True)
        p = jnp.exp(s)
        p = p * pl.reciprocal(jnp.sum(p, axis=-1, keepdims=True), approx=True)
        oh = jnp.einsum('bqk,bkd->bqd', p.astype(jnp.bfloat16), vh,
                        preferred_element_type=jnp.float32)               # (B,N,hd)
        outs.append(oh.reshape(BN, hd))

    attn = jnp.concatenate(outs, axis=-1)            # (BN, D) == concat(heads)
    x = x + jnp.dot(attn.astype(jnp.bfloat16), w_proj,
                    preferred_element_type=jnp.float32) + b_proj

    # ---------------------------- MLP branch -----------------------------
    xn2 = _layernorm(x, w_ln2, b_ln2)
    h1 = jnp.dot(xn2.astype(jnp.bfloat16), w_fc1,
                 preferred_element_type=jnp.float32) + b_fc1
    # bf16 GELU: v6e/v7x have bf16 VPU/EUP, and the result feeds a bf16 matmul.
    # TODO(synk): on v5e (no bf16 VPU/EUP) keep this in f32 if the EUP binds.
    h1 = _gelu(h1.astype(jnp.bfloat16))
    h2 = jnp.dot(h1, w_fc2, preferred_element_type=jnp.float32) + b_fc2
    x_scr[...] = (x + h2).reshape(B, N, D)

    # Last block: fused final norm + classifier head on the cls tokens only.
    @pl.when(d == n_blocks - 1)
    def _():
        cls = x_scr[:, 0, :]                                   # (B, D) cls tokens
        cls = _layernorm(cls, normw_ref[...], normb_ref[...])  # final self.norm
        o_ref[...] = (
            jnp.dot(cls.astype(jnp.bfloat16), headw_ref[...],
                    preferred_element_type=jnp.float32) + headb_ref[...]
        )


_STACK_PARAM_NAMES = ('ln1_w', 'ln1_b', 'qkv_w', 'qkv_b', 'proj_w', 'proj_b',
                      'ln2_w', 'ln2_b', 'fc1_w', 'fc1_b', 'fc2_w', 'fc2_b')


def pallas_stack(x, stack_params, norm_w, norm_b, head_w, head_b,
                 *, num_heads, n_valid):
    """All transformer blocks + final norm + head in ONE pallas_call.

    Activations stay in a VMEM scratch across blocks; block weights stream once
    per block total (batch folded into the step); only (B, num_classes_padded)
    logits are written back to HBM.
    """
    B, N, D = x.shape
    depth = stack_params['qkv_w'].shape[0]
    NC = head_w.shape[1]
    kernel = functools.partial(_stack_kernel, num_heads=num_heads, n_valid=n_valid)

    in_specs = [pl.BlockSpec((B, N, D), lambda d: (0, 0, 0))]   # tokens (bf16)
    args = [x]
    for name in _STACK_PARAM_NAMES:
        a = stack_params[name]
        in_specs.append(pl.BlockSpec((1,) + a.shape[1:], lambda d: (d, 0, 0)))
        args.append(a)
    # final norm + classifier weights (constant across the depth axis)
    in_specs += [
        pl.BlockSpec((1, D), lambda d: (0, 0)),
        pl.BlockSpec((1, D), lambda d: (0, 0)),
        pl.BlockSpec((D, NC), lambda d: (0, 0)),
        pl.BlockSpec((1, NC), lambda d: (0, 0)),
    ]
    args += [norm_w, norm_b, head_w, head_b]

    return pl.pallas_call(
        kernel,
        out_shape=jax.ShapeDtypeStruct((B, NC), jnp.float32),
        grid=(depth,),
        in_specs=in_specs,
        out_specs=pl.BlockSpec((B, NC), lambda d: (0, 0)),
        scratch_shapes=[pltpu.VMEM((B, N, D), jnp.float32)],
        compiler_params=pltpu.CompilerParams(
            dimension_semantics=("arbitrary",)),
    )(*args)


# ------------------------------- model wrapper --------------------------------

def patch_embed(x, w, b, patch_size):
    """Conv2d(kernel=stride=patch) == im2col + Pallas matmul."""
    B, C, H, W = x.shape
    ph = pw = patch_size
    gh, gw = H // ph, W // pw
    xp = x.reshape(B, C, gh, ph, gw, pw)
    xp = xp.transpose(0, 2, 4, 1, 3, 5)               # (B, gh, gw, C, ph, pw)
    xp = xp.reshape(B * gh * gw, C * ph * pw)         # im2col
    y = pallas_linear(xp.astype(jnp.bfloat16), w, b)  # (B*P, D) f32
    return y.reshape(B, gh * gw, -1)


def vit_forward(x, params, *, num_heads, patch_size, num_classes, n_valid, n_pad):
    B = x.shape[0]
    D = params['cls_token'].shape[-1]
    tok = patch_embed(x, params['patch_w'], params['patch_b'], patch_size)  # (B,P,D)
    # prepend cls token, add positional embedding (pos_drop is identity, p=0)
    cls = jnp.broadcast_to(params['cls_token'], (B, 1, D))
    tok = jnp.concatenate([cls, tok], axis=1) + params['pos_embed']         # (B,17,D)
    # pad token axis to a multiple of 16 (bf16 sublane packing); padded keys masked
    tok = jnp.pad(tok, ((0, 0), (0, n_pad - n_valid), (0, 0)))
    tok = tok.astype(jnp.bfloat16)       # halve activation DMA into the stack kernel
    # fused transformer stack + final norm + classifier (one pallas_call)
    logits = pallas_stack(tok, params['stack'],
                          params['norm_w'], params['norm_b'],
                          params['head_w'], params['head_b'],
                          num_heads=num_heads, n_valid=n_valid)             # (B,128)
    return logits[:, :num_classes]


# ------------------------------- param creation --------------------------------

def make_params(key, *, in_chans, patch_size, embed_dim, depth, num_heads,
                mlp_ratio, num_classes, num_patches, num_classes_padded):
    hidden = int(embed_dim * mlp_ratio)
    K = in_chans * patch_size * patch_size
    n_tokens = num_patches + 1
    scale = float((embed_dim // num_heads) ** (-0.5))

    def nrm(k, shape, std=0.02):
        return (std * jax.random.normal(k, shape)).astype(jnp.float32)

    keys = jax.random.split(key, 8)

    head_w = jnp.zeros((embed_dim, num_classes_padded), jnp.float32)
    head_w = head_w.at[:, :num_classes].set(nrm(keys[3], (embed_dim, num_classes)))

    # Fold the 1/sqrt(head_dim) attention scale into the q output columns of the
    # QKV projection (weight AND bias) -> no in-kernel q scaling.
    qkv_w = nrm(keys[4], (depth, embed_dim, 3 * embed_dim))
    qkv_w = qkv_w.at[:, :, :embed_dim].multiply(scale)
    qkv_b = jnp.zeros((depth, 1, 3 * embed_dim), jnp.float32)   # qkv_bias=True
    qkv_b = qkv_b.at[:, :, :embed_dim].multiply(scale)

    return {
        # conv weight (D, C, ph, pw) reshaped to (C*ph*pw, D) for the matmul
        # TODO(synk): when porting torch weights use conv_w.reshape(D, C*ph*pw).T
        'patch_w': nrm(keys[0], (K, embed_dim)).astype(jnp.bfloat16),
        'patch_b': jnp.zeros((1, embed_dim), jnp.float32),
        'cls_token': nrm(keys[1], (1, 1, embed_dim)),
        'pos_embed': nrm(keys[2], (1, n_tokens, embed_dim)),
        'norm_w': jnp.ones((1, embed_dim), jnp.float32),
        'norm_b': jnp.zeros((1, embed_dim), jnp.float32),
        'head_w': head_w.astype(jnp.bfloat16),            # padded to lane-dense NC
        'head_b': jnp.zeros((1, num_classes_padded), jnp.float32),
        # per-block weights stacked along a leading depth axis (bf16 matmul weights)
        'stack': {
            'ln1_w': jnp.ones((depth, 1, embed_dim), jnp.float32),
            'ln1_b': jnp.zeros((depth, 1, embed_dim), jnp.float32),
            'qkv_w': qkv_w.astype(jnp.bfloat16),
            'qkv_b': qkv_b,
            'proj_w': nrm(keys[5], (depth, embed_dim, embed_dim)).astype(jnp.bfloat16),
            'proj_b': jnp.zeros((depth, 1, embed_dim), jnp.float32),
            'ln2_w': jnp.ones((depth, 1, embed_dim), jnp.float32),
            'ln2_b': jnp.zeros((depth, 1, embed_dim), jnp.float32),
            'fc1_w': nrm(keys[6], (depth, embed_dim, hidden)).astype(jnp.bfloat16),
            'fc1_b': jnp.zeros((depth, 1, hidden), jnp.float32),
            'fc2_w': nrm(keys[7], (depth, hidden, embed_dim)).astype(jnp.bfloat16),
            'fc2_b': jnp.zeros((depth, 1, embed_dim), jnp.float32),
        },
    }


# ------------------------------------ main -------------------------------------

if __name__ == "__main__":
    # small ViT config consistent with the module's constructor
    IMG, PATCH, CIN = 16, 4, 3
    EMBED, DEPTH, HEADS = 128, 2, 4          # embed dim = 128 -> lane-dense tiles
    MLP_RATIO, NUM_CLASSES = 4.0, 10
    NUM_CLASSES_PAD = 128                    # lane-dense classifier output, sliced after
    NUM_PATCHES = (IMG // PATCH) ** 2        # 16 patches -> 17 tokens with cls
    N_VALID = NUM_PATCHES + 1                # 17 real tokens
    N_PAD = 32                               # padded to a multiple of 16 (bf16 packing)
    B = 2

    root = jax.random.PRNGKey(0)
    k_x, k_p = jax.random.split(root)
    x = jax.random.normal(k_x, (B, CIN, IMG, IMG), dtype=jnp.float32)  # NCHW

    params = make_params(k_p, in_chans=CIN, patch_size=PATCH, embed_dim=EMBED,
                         depth=DEPTH, num_heads=HEADS, mlp_ratio=MLP_RATIO,
                         num_classes=NUM_CLASSES, num_patches=NUM_PATCHES,
                         num_classes_padded=NUM_CLASSES_PAD)

    fwd = jax.jit(functools.partial(vit_forward, num_heads=HEADS, patch_size=PATCH,
                                    num_classes=NUM_CLASSES, n_valid=N_VALID,
                                    n_pad=N_PAD))
    logits = fwd(x, params)
    logits = jax.block_until_ready(logits)
    assert logits.shape == (B, NUM_CLASSES)
    print("KERNEL_OK")
</pallas_src>

<mosaic_0001>
module attributes {stable_mosaic.version = 11 : i64} {
  func.func @_linear_kernel(%arg0: i32, %arg1: memref<32x48xbf16, #tpu.memory_space<vmem>>, %arg2: memref<48x128xbf16, #tpu.memory_space<vmem>>, %arg3: memref<1x128xf32, #tpu.memory_space<vmem>>, %arg4: memref<32x128xf32, #tpu.memory_space<vmem>>) attributes {dimension_semantics = [#tpu.dimension_semantics<parallel>], iteration_bounds = array<i64: 1>, scalar_prefetch = 0 : i64, scratch_operands = 0 : i64, tpu.core_type = #tpu.core_type<tc>, window_params = [{transform_indices = @transform_0, window_bounds = array<i64: 32, 48>}, {pipeline_mode = #tpu.pipeline_mode<synchronous>, transform_indices = @transform_1, window_bounds = array<i64: 48, 128>}, {pipeline_mode = #tpu.pipeline_mode<synchronous>, transform_indices = @transform_2, window_bounds = array<i64: 1, 128>}, {transform_indices = @transform_3, window_bounds = array<i64: 32, 128>}]} {
    %c0 = arith.constant 0 : index
    %c0_0 = arith.constant 0 : index
    %0 = vector.load %arg1[%c0, %c0_0] : memref<32x48xbf16, #tpu.memory_space<vmem>>, vector<32x48xbf16>
    %c0_1 = arith.constant 0 : index
    %c0_2 = arith.constant 0 : index
    %1 = vector.load %arg2[%c0_1, %c0_2] : memref<48x128xbf16, #tpu.memory_space<vmem>>, vector<48x128xbf16>
    %cst = arith.constant dense<0.000000e+00> : vector<32x128xf32>
    %2 = tpu.matmul %0, %1, %cst {dimension_numbers = #tpu.dot_dimension_numbers<[1], [0], [0], [1], [0, 0, 1, 1], [], []>} : vector<32x48xbf16>, vector<48x128xbf16>, vector<32x128xf32> -> vector<32x128xf32>
    %c0_3 = arith.constant 0 : index
    %c0_4 = arith.constant 0 : index
    %3 = vector.load %arg3[%c0_3, %c0_4] : memref<1x128xf32, #tpu.memory_space<vmem>>, vector<1x128xf32>
    %4 = vector.broadcast %3 : vector<1x128xf32> to vector<32x128xf32>
    %5 = arith.addf %2, %4 : vector<32x128xf32>
    %c0_5 = arith.constant 0 : index
    %c0_6 = arith.constant 0 : index
    %6 = vector.load %arg4[%c0_5, %c0_6] : memref<32x128xf32, #tpu.memory_space<vmem>>, vector<32x128xf32>
    tpu.vector_store %arg4[%c0_5, %c0_6], %5 {strides = array<i32>} : memref<32x128xf32, #tpu.memory_space<vmem>>, vector<32x128xf32>,
    return
  }
  func.func @transform_0(%arg0: i32) -> (i32, i32) {
    %c0_i32 = arith.constant 0 : i32
    %c0_i32_0 = arith.constant 0 : i32
    return %arg0, %c0_i32 : i32, i32
  }
  func.func @transform_1(%arg0: i32) -> (i32, i32) {
    %c0_i32 = arith.constant 0 : i32
    %c0_i32_0 = arith.constant 0 : i32
    %c0_i32_1 = arith.constant 0 : i32
    return %c0_i32, %c0_i32_0 : i32, i32
  }
  func.func @transform_2(%arg0: i32) -> (i32, i32) {
    %c0_i32 = arith.constant 0 : i32
    %c0_i32_0 = arith.constant 0 : i32
    %c0_i32_1 = arith.constant 0 : i32
    return %c0_i32, %c0_i32_0 : i32, i32
  }
  func.func @transform_3(%arg0: i32) -> (i32, i32) {
    %c0_i32 = arith.constant 0 : i32
    %c0_i32_0 = arith.constant 0 : i32
    return %arg0, %c0_i32 : i32, i32
  }
}

module attributes {stable_mosaic.version = 11 : i64} {
  func.func @_stack_kernel(%arg0: i32, %arg1: memref<2x32x128xbf16, #tpu.memory_space<vmem>>, %arg2: memref<1x1x128xf32, #tpu.memory_space<vmem>>, %arg3: memref<1x1x128xf32, #tpu.memory_space<vmem>>, %arg4: memref<1x128x384xbf16, #tpu.memory_space<vmem>>, %arg5: memref<1x1x384xf32, #tpu.memory_space<vmem>>, %arg6: memref<1x128x128xbf16, #tpu.memory_space<vmem>>, %arg7: memref<1x1x128xf32, #tpu.memory_space<vmem>>, %arg8: memref<1x1x128xf32, #tpu.memory_space<vmem>>, %arg9: memref<1x1x128xf32, #tpu.memory_space<vmem>>, %arg10: memref<1x128x512xbf16, #tpu.memory_space<vmem>>, %arg11: memref<1x1x512xf32, #tpu.memory_space<vmem>>, %arg12: memref<1x512x128xbf16, #tpu.memory_space<vmem>>, %arg13: memref<1x1x128xf32, #tpu.memory_space<vmem>>, %arg14: memref<1x128xf32, #tpu.memory_space<vmem>>, %arg15: memref<1x128xf32, #tpu.memory_space<vmem>>, %arg16: memref<128x128xbf16, #tpu.memory_space<vmem>>, %arg17: memref<1x128xf32, #tpu.memory_space<vmem>>, %arg18: memref<2x128xf32, #tpu.memory_space<vmem>>, %arg19: memref<2x32x128xf32, #tpu.memory_space<vmem>>) attributes {dimension_semantics = [#tpu.dimension_semantics<arbitrary>], iteration_bounds = array<i64: 2>, scalar_prefetch = 0 : i64, scratch_operands = 1 : i64, tpu.core_type = #tpu.core_type<tc>, window_params = [{pipeline_mode = #tpu.pipeline_mode<synchronous>, transform_indices = @transform_0, window_bounds = array<i64: 2, 32, 128>}, {transform_indices = @transform_1, window_bounds = array<i64: 1, 1, 128>}, {transform_indices = @transform_2, window_bounds = array<i64: 1, 1, 128>}, {transform_indices = @transform_3, window_bounds = array<i64: 1, 128, 384>}, {transform_indices = @transform_4, window_bounds = array<i64: 1, 1, 384>}, {transform_indices = @transform_5, window_bounds = array<i64: 1, 128, 128>}, {transform_indices = @transform_6, window_bounds = array<i64: 1, 1, 128>}, {transform_indices = @transform_7, window_bounds = array<i64: 1, 1, 128>}, {transform_indices = @transform_8, window_bounds = array<i64: 1, 1, 128>}, {transform_indices = @transform_9, window_bounds = array<i64: 1, 128, 512>}, {transform_indices = @transform_10, window_bounds = array<i64: 1, 1, 512>}, {transform_indices = @transform_11, window_bounds = array<i64: 1, 512, 128>}, {transform_indices = @transform_12, window_bounds = array<i64: 1, 1, 128>}, {pipeline_mode = #tpu.pipeline_mode<synchronous>, transform_indices = @transform_13, window_bounds = array<i64: 1, 128>}, {pipeline_mode = #tpu.pipeline_mode<synchronous>, transform_indices = @transform_14, window_bounds = array<i64: 1, 128>}, {pipeline_mode = #tpu.pipeline_mode<synchronous>, transform_indices = @transform_15, window_bounds = array<i64: 128, 128>}, {pipeline_mode = #tpu.pipeline_mode<synchronous>, transform_indices = @transform_16, window_bounds = array<i64: 1, 128>}, {pipeline_mode = #tpu.pipeline_mode<synchronous>, transform_indices = @transform_17, window_bounds = array<i64: 2, 128>}]} {
    %c0_i32 = arith.constant 0 : i32
    %0 = arith.cmpi eq, %arg0, %c0_i32 : i32
    %1 = arith.extui %0 : i1 to i32
    %c0_i32_0 = arith.constant 0 : i32
    %2 = arith.cmpi ne, %1, %c0_i32_0 : i32
    scf.if %2 {
      %c0_80 = arith.constant 0 : index
      %c0_81 = arith.constant 0 : index
      %c0_82 = arith.constant 0 : index
      %209 = vector.load %arg1[%c0_80, %c0_81, %c0_82] : memref<2x32x128xbf16, #tpu.memory_space<vmem>>, vector<2x32x128xbf16>
      %210 = arith.extf %209 : vector<2x32x128xbf16> to vector<2x32x128xf32>
      %c0_83 = arith.constant 0 : index
      %c0_84 = arith.constant 0 : index
      %c0_85 = arith.constant 0 : index
      %211 = vector.load %arg19[%c0_83, %c0_84, %c0_85] : memref<2x32x128xf32, #tpu.memory_space<vmem>>, vector<2x32x128xf32>
      tpu.vector_store %arg19[%c0_83, %c0_84, %c0_85], %210 {strides = array<i32>} : memref<2x32x128xf32, #tpu.memory_space<vmem>>, vector<2x32x128xf32>,
    } else {
    }
    %c0 = arith.constant 0 : index
    %c0_1 = arith.constant 0 : index
    %c0_2 = arith.constant 0 : index
    %3 = vector.load %arg19[%c0, %c0_1, %c0_2] : memref<2x32x128xf32, #tpu.memory_space<vmem>>, vector<2x32x128xf32>
    %4 = vector.shape_cast %3 : vector<2x32x128xf32> to vector<64x128xf32>
    %c0_3 = arith.constant 0 : index
    %c0_4 = arith.constant 0 : index
    %c0_5 = arith.constant 0 : index
    %5 = vector.load %arg2[%c0_3, %c0_4, %c0_5] : memref<1x1x128xf32, #tpu.memory_space<vmem>>, vector<1x1x128xf32>
    %6 = vector.shape_cast %5 : vector<1x1x128xf32> to vector<1x128xf32>
    %c0_6 = arith.constant 0 : index
    %c0_7 = arith.constant 0 : index
    %c0_8 = arith.constant 0 : index
    %7 = vector.load %arg3[%c0_6, %c0_7, %c0_8] : memref<1x1x128xf32, #tpu.memory_space<vmem>>, vector<1x1x128xf32>
    %8 = vector.shape_cast %7 : vector<1x1x128xf32> to vector<1x128xf32>
    %c0_9 = arith.constant 0 : index
    %c0_10 = arith.constant 0 : index
    %c0_11 = arith.constant 0 : index
    %9 = vector.load %arg4[%c0_9, %c0_10, %c0_11] : memref<1x128x384xbf16, #tpu.memory_space<vmem>>, vector<1x128x384xbf16>
    %10 = vector.shape_cast %9 : vector<1x128x384xbf16> to vector<128x384xbf16>
    %c0_12 = arith.constant 0 : index
    %c0_13 = arith.constant 0 : index
    %c0_14 = arith.constant 0 : index
    %11 = vector.load %arg5[%c0_12, %c0_13, %c0_14] : memref<1x1x384xf32, #tpu.memory_space<vmem>>, vector<1x1x384xf32>
    %12 = vector.shape_cast %11 : vector<1x1x384xf32> to vector<1x384xf32>
    %c0_15 = arith.constant 0 : index
    %c0_16 = arith.constant 0 : index
    %c0_17 = arith.constant 0 : index
    %13 = vector.load %arg6[%c0_15, %c0_16, %c0_17] : memref<1x128x128xbf16, #tpu.memory_space<vmem>>, vector<1x128x128xbf16>
    %14 = vector.shape_cast %13 : vector<1x128x128xbf16> to vector<128x128xbf16>
    %c0_18 = arith.constant 0 : index
    %c0_19 = arith.constant 0 : index
    %c0_20 = arith.constant 0 : index
    %15 = vector.load %arg7[%c0_18, %c0_19, %c0_20] : memref<1x1x128xf32, #tpu.memory_space<vmem>>, vector<1x1x128xf32>
    %16 = vector.shape_cast %15 : vector<1x1x128xf32> to vector<1x128xf32>
    %c0_21 = arith.constant 0 : index
    %c0_22 = arith.constant 0 : index
    %c0_23 = arith.constant 0 : index
    %17 = vector.load %arg8[%c0_21, %c0_22, %c0_23] : memref<1x1x128xf32, #tpu.memory_space<vmem>>, vector<1x1x128xf32>
    %18 = vector.shape_cast %17 : vector<1x1x128xf32> to vector<1x128xf32>
    %c0_24 = arith.constant 0 : index
    %c0_25 = arith.constant 0 : index
    %c0_26 = arith.constant 0 : index
    %19 = vector.load %arg9[%c0_24, %c0_25, %c0_26] : memref<1x1x128xf32, #tpu.memory_space<vmem>>, vector<1x1x128xf32>
    %20 = vector.shape_cast %19 : vector<1x1x128xf32> to vector<1x128xf32>
    %c0_27 = arith.constant 0 : index
    %c0_28 = arith.constant 0 : index
    %c0_29 = arith.constant 0 : index
    %21 = vector.load %arg10[%c0_27, %c0_28, %c0_29] : memref<1x128x512xbf16, #tpu.memory_space<vmem>>, vector<1x128x512xbf16>
    %22 = vector.shape_cast %21 : vector<1x128x512xbf16> to vector<128x512xbf16>
    %c0_30 = arith.constant 0 : index
    %c0_31 = arith.constant 0 : index
    %c0_32 = arith.constant 0 : index
    %23 = vector.load %arg11[%c0_30, %c0_31, %c0_32] : memref<1x1x512xf32, #tpu.memory_space<vmem>>, vector<1x1x512xf32>
    %24 = vector.shape_cast %23 : vector<1x1x512xf32> to vector<1x512xf32>
    %c0_33 = arith.constant 0 : index
    %c0_34 = arith.constant 0 : index
    %c0_35 = arith.constant 0 : index
    %25 = vector.load %arg12[%c0_33, %c0_34, %c0_35] : memref<1x512x128xbf16, #tpu.memory_space<vmem>>, vector<1x512x128xbf16>
    %26 = vector.shape_cast %25 : vector<1x512x128xbf16> to vector<512x128xbf16>
    %c0_36 = arith.constant 0 : index
    %c0_37 = arith.constant 0 : index
    %c0_38 = arith.constant 0 : index
    %27 = vector.load %arg13[%c0_36, %c0_37, %c0_38] : memref<1x1x128xf32, #tpu.memory_space<vmem>>, vector<1x1x128xf32>
    %28 = vector.shape_cast %27 : vector<1x1x128xf32> to vector<1x128xf32>
    %cst = arith.constant dense<0.000000e+00> : vector<64xf32>
    %29 = vector.multi_reduction <add>, %4, %cst [1] : vector<64x128xf32> to vector<64xf32>
    %30 = vector.shape_cast %29 : vector<64xf32> to vector<64x1xf32>
    %cst_39 = arith.constant 1.280000e+02 : f32
    %31 = vector.broadcast %cst_39 : f32 to vector<64x1xf32>
    %32 = arith.divf %30, %31 : vector<64x1xf32>
    %33 = vector.broadcast %32 : vector<64x1xf32> to vector<64x128xf32>
    %34 = arith.subf %4, %33 : vector<64x128xf32>
    %35 = arith.mulf %34, %34 : vector<64x128xf32>
    %cst_40 = arith.constant dense<0.000000e+00> : vector<64xf32>
    %36 = vector.multi_reduction <add>, %35, %cst_40 [1] : vector<64x128xf32> to vector<64xf32>
    %37 = vector.shape_cast %36 : vector<64xf32> to vector<64x1xf32>
    %cst_41 = arith.constant 1.280000e+02 : f32
    %38 = vector.broadcast %cst_41 : f32 to vector<64x1xf32>
    %39 = arith.divf %37, %38 : vector<64x1xf32>
    %cst_42 = arith.constant 9.99999997E-7 : f32
    %40 = vector.broadcast %cst_42 : f32 to vector<64x1xf32>
    %41 = arith.addf %39, %40 : vector<64x1xf32>
    %42 = math.rsqrt %41 : vector<64x1xf32>
    %43 = vector.broadcast %42 : vector<64x1xf32> to vector<64x128xf32>
    %44 = arith.mulf %34, %43 : vector<64x128xf32>
    %45 = vector.broadcast %6 : vector<1x128xf32> to vector<64x128xf32>
    %46 = arith.mulf %44, %45 : vector<64x128xf32>
    %47 = vector.broadcast %8 : vector<1x128xf32> to vector<64x128xf32>
    %48 = arith.addf %46, %47 : vector<64x128xf32>
    %49 = arith.truncf %48 : vector<64x128xf32> to vector<64x128xbf16>
    %cst_43 = arith.constant dense<0.000000e+00> : vector<64x384xf32>
    %50 = tpu.matmul %49, %10, %cst_43 {dimension_numbers = #tpu.dot_dimension_numbers<[1], [0], [0], [1], [0, 0, 1, 1], [], []>} : vector<64x128xbf16>, vector<128x384xbf16>, vector<64x384xf32> -> vector<64x384xf32>
    %51 = vector.broadcast %12 : vector<1x384xf32> to vector<64x384xf32>
    %52 = arith.addf %50, %51 : vector<64x384xf32>
    %53 = arith.truncf %52 : vector<64x384xf32> to vector<64x384xbf16>
    %54 = vector.extract_strided_slice %53 {offsets = [0, 0], sizes = [64, 128], strides = [1, 1]} : vector<64x384xbf16> to vector<64x128xbf16>
    %55 = vector.extract_strided_slice %53 {offsets = [0, 128], sizes = [64, 128], strides = [1, 1]} : vector<64x384xbf16> to vector<64x128xbf16>
    %56 = vector.extract_strided_slice %53 {offsets = [0, 256], sizes = [64, 128], strides = [1, 1]} : vector<64x384xbf16> to vector<64x128xbf16>
    %57 = tpu.iota {dimensions = array<i32: 2>} : vector<1x1x32xi32>
    %c17_i32 = arith.constant 17 : i32
    %58 = vector.broadcast %c17_i32 : i32 to vector<1x1x32xi32>
    %59 = arith.cmpi slt, %57, %58 : vector<1x1x32xi32>
    %60 = vector.extract_strided_slice %54 {offsets = [0, 0], sizes = [64, 32], strides = [1, 1]} : vector<64x128xbf16> to vector<64x32xbf16>
    %61 = vector.shape_cast %60 : vector<64x32xbf16> to vector<2x32x32xbf16>
    %62 = vector.extract_strided_slice %55 {offsets = [0, 0], sizes = [64, 32], strides = [1, 1]} : vector<64x128xbf16> to vector<64x32xbf16>
    %63 = vector.shape_cast %62 : vector<64x32xbf16> to vector<2x32x32xbf16>
    %64 = vector.extract_strided_slice %56 {offsets = [0, 0], sizes = [64, 32], strides = [1, 1]} : vector<64x128xbf16> to vector<64x32xbf16>
    %65 = vector.shape_cast %64 : vector<64x32xbf16> to vector<2x32x32xbf16>
    "tpu.trace_start"() <{level = 10 : i32, message = "bqd,bkd->bqk"}> : () -> ()
    %cst_44 = arith.constant dense<0.000000e+00> : vector<2x32x32xf32>
    %66 = tpu.matmul %61, %63, %cst_44 {dimension_numbers = #tpu.dot_dimension_numbers<[2], [2], [1], [1], [0, 0, 0, 1, 1, 1], [0], [0]>} : vector<2x32x32xbf16>, vector<2x32x32xbf16>, vector<2x32x32xf32> -> vector<2x32x32xf32>
    %cst_45 = arith.constant -1.000000e+30 : f32
    "tpu.trace_stop"() : () -> ()
    %67 = vector.shape_cast %59 : vector<1x1x32xi1> to vector<1x1x32xi1>
    %68 = vector.broadcast %67 : vector<1x1x32xi1> to vector<2x32x32xi1>
    %69 = vector.broadcast %cst_45 : f32 to vector<2x32x32xf32>
    %70 = arith.select %68, %66, %69 : vector<2x32x32xi1>, vector<2x32x32xf32>
    %cst_46 = arith.constant dense<0xFF800000> : vector<2x32xf32>
    %71 = vector.multi_reduction <maximumf>, %70, %cst_46 [2] : vector<2x32x32xf32> to vector<2x32xf32>
    %72 = vector.shape_cast %71 : vector<2x32xf32> to vector<2x32x1xf32>
    %73 = vector.broadcast %72 : vector<2x32x1xf32> to vector<2x32x32xf32>
    %74 = arith.subf %70, %73 : vector<2x32x32xf32>
    %75 = math.exp %74 : vector<2x32x32xf32>
    %cst_47 = arith.constant dense<0.000000e+00> : vector<2x32xf32>
    %76 = vector.multi_reduction <add>, %75, %cst_47 [2] : vector<2x32x32xf32> to vector<2x32xf32>
    %77 = vector.shape_cast %76 : vector<2x32xf32> to vector<2x32x1xf32>
    %78 = tpu.reciprocal %77 {approx = true} : vector<2x32x1xf32> -> vector<2x32x1xf32>
    %79 = vector.broadcast %78 : vector<2x32x1xf32> to vector<2x32x32xf32>
    %80 = arith.mulf %75, %79 : vector<2x32x32xf32>
    %81 = arith.truncf %80 : vector<2x32x32xf32> to vector<2x32x32xbf16>
    "tpu.trace_start"() <{level = 10 : i32, message = "bqk,bkd->bqd"}> : () -> ()
    %cst_48 = arith.constant dense<0.000000e+00> : vector<2x32x32xf32>
    %82 = tpu.matmul %81, %65, %cst_48 {dimension_numbers = #tpu.dot_dimension_numbers<[2], [1], [1], [2], [0, 0, 0, 1, 1, 2], [0], [0]>} : vector<2x32x32xbf16>, vector<2x32x32xbf16>, vector<2x32x32xf32> -> vector<2x32x32xf32>
    "tpu.trace_stop"() : () -> ()
    %83 = vector.shape_cast %82 : vector<2x32x32xf32> to vector<64x32xf32>
    %84 = vector.extract_strided_slice %54 {offsets = [0, 32], sizes = [64, 32], strides = [1, 1]} : vector<64x128xbf16> to vector<64x32xbf16>
    %85 = vector.shape_cast %84 : vector<64x32xbf16> to vector<2x32x32xbf16>
    %86 = vector.extract_strided_slice %55 {offsets = [0, 32], sizes = [64, 32], strides = [1, 1]} : vector<64x128xbf16> to vector<64x32xbf16>
    %87 = vector.shape_cast %86 : vector<64x32xbf16> to vector<2x32x32xbf16>
    %88 = vector.extract_strided_slice %56 {offsets = [0, 32], sizes = [64, 32], strides = [1, 1]} : vector<64x128xbf16> to vector<64x32xbf16>
    %89 = vector.shape_cast %88 : vector<64x32xbf16> to vector<2x32x32xbf16>
    "tpu.trace_start"() <{level = 10 : i32, message = "bqd,bkd->bqk"}> : () -> ()
    %cst_49 = arith.constant dense<0.000000e+00> : vector<2x32x32xf32>
    %90 = tpu.matmul %85, %87, %cst_49 {dimension_numbers = #tpu.dot_dimension_numbers<[2], [2], [1], [1], [0, 0, 0, 1, 1, 1], [0], [0]>} : vector<2x32x32xbf16>, vector<2x32x32xbf16>, vector<2x32x32xf32> -> vector<2x32x32xf32>
    %cst_50 = arith.constant -1.000000e+30 : f32
    "tpu.trace_stop"() : () -> ()
    %91 = vector.shape_cast %59 : vector<1x1x32xi1> to vector<1x1x32xi1>
    %92 = vector.broadcast %91 : vector<1x1x32xi1> to vector<2x32x32xi1>
    %93 = vector.broadcast %cst_50 : f32 to vector<2x32x32xf32>
    %94 = arith.select %92, %90, %93 : vector<2x32x32xi1>, vector<2x32x32xf32>
    %cst_51 = arith.constant dense<0xFF800000> : vector<2x32xf32>
    %95 = vector.multi_reduction <maximumf>, %94, %cst_51 [2] : vector<2x32x32xf32> to vector<2x32xf32>
    %96 = vector.shape_cast %95 : vector<2x32xf32> to vector<2x32x1xf32>
    %97 = vector.broadcast %96 : vector<2x32x1xf32> to vector<2x32x32xf32>
    %98 = arith.subf %94, %97 : vector<2x32x32xf32>
    %99 = math.exp %98 : vector<2x32x32xf32>
    %cst_52 = arith.constant dense<0.000000e+00> : vector<2x32xf32>
    %100 = vector.multi_reduction <add>, %99, %cst_52 [2] : vector<2x32x32xf32> to vector<2x32xf32>
    %101 = vector.shape_cast %100 : vector<2x32xf32> to vector<2x32x1xf32>
    %102 = tpu.reciprocal %101 {approx = true} : vector<2x32x1xf32> -> vector<2x32x1xf32>
    %103 = vector.broadcast %102 : vector<2x32x1xf32> to vector<2x32x32xf32>
    %104 = arith.mulf %99, %103 : vector<2x32x32xf32>
    %105 = arith.truncf %104 : vector<2x32x32xf32> to vector<2x32x32xbf16>
    "tpu.trace_start"() <{level = 10 : i32, message = "bqk,bkd->bqd"}> : () -> ()
    %cst_53 = arith.constant dense<0.000000e+00> : vector<2x32x32xf32>
    %106 = tpu.matmul %105, %89, %cst_53 {dimension_numbers = #tpu.dot_dimension_numbers<[2], [1], [1], [2], [0, 0, 0, 1, 1, 2], [0], [0]>} : vector<2x32x32xbf16>, vector<2x32x32xbf16>, vector<2x32x32xf32> -> vector<2x32x32xf32>
    "tpu.trace_stop"() : () -> ()
    %107 = vector.shape_cast %106 : vector<2x32x32xf32> to vector<64x32xf32>
    %108 = vector.extract_strided_slice %54 {offsets = [0, 64], sizes = [64, 32], strides = [1, 1]} : vector<64x128xbf16> to vector<64x32xbf16>
    %109 = vector.shape_cast %108 : vector<64x32xbf16> to vector<2x32x32xbf16>
    %110 = vector.extract_strided_slice %55 {offsets = [0, 64], sizes = [64, 32], strides = [1, 1]} : vector<64x128xbf16> to vector<64x32xbf16>
    %111 = vector.shape_cast %110 : vector<64x32xbf16> to vector<2x32x32xbf16>
    %112 = vector.extract_strided_slice %56 {offsets = [0, 64], sizes = [64, 32], strides = [1, 1]} : vector<64x128xbf16> to vector<64x32xbf16>
    %113 = vector.shape_cast %112 : vector<64x32xbf16> to vector<2x32x32xbf16>
    "tpu.trace_start"() <{level = 10 : i32, message = "bqd,bkd->bqk"}> : () -> ()
    %cst_54 = arith.constant dense<0.000000e+00> : vector<2x32x32xf32>
    %114 = tpu.matmul %109, %111, %cst_54 {dimension_numbers = #tpu.dot_dimension_numbers<[2], [2], [1], [1], [0, 0, 0, 1, 1, 1], [0], [0]>} : vector<2x32x32xbf16>, vector<2x32x32xbf16>, vector<2x32x32xf32> -> vector<2x32x32xf32>
    %cst_55 = arith.constant -1.000000e+30 : f32
    "tpu.trace_stop"() : () -> ()
    %115 = vector.shape_cast %59 : vector<1x1x32xi1> to vector<1x1x32xi1>
    %116 = vector.broadcast %115 : vector<1x1x32xi1> to vector<2x32x32xi1>
    %117 = vector.broadcast %cst_55 : f32 to vector<2x32x32xf32>
    %118 = arith.select %116, %114, %117 : vector<2x32x32xi1>, vector<2x32x32xf32>
    %cst_56 = arith.constant dense<0xFF800000> : vector<2x32xf32>
    %119 = vector.multi_reduction <maximumf>, %118, %cst_56 [2] : vector<2x32x32xf32> to vector<2x32xf32>
    %120 = vector.shape_cast %119 : vector<2x32xf32> to vector<2x32x1xf32>
    %121 = vector.broadcast %120 : vector<2x32x1xf32> to vector<2x32x32xf32>
    %122 = arith.subf %118, %121 : vector<2x32x32xf32>
    %123 = math.exp %122 : vector<2x32x32xf32>
    %cst_57 = arith.constant dense<0.000000e+00> : vector<2x32xf32>
    %124 = vector.multi_reduction <add>, %123, %cst_57 [2] : vector<2x32x32xf32> to vector<2x32xf32>
    %125 = vector.shape_cast %124 : vector<2x32xf32> to vector<2x32x1xf32>
    %126 = tpu.reciprocal %125 {approx = true} : vector<2x32x1xf32> -> vector<2x32x1xf32>
    %127 = vector.broadcast %126 : vector<2x32x1xf32> to vector<2x32x32xf32>
    %128 = arith.mulf %123, %127 : vector<2x32x32xf32>
    %129 = arith.truncf %128 : vector<2x32x32xf32> to vector<2x32x32xbf16>
    "tpu.trace_start"() <{level = 10 : i32, message = "bqk,bkd->bqd"}> : () -> ()
    %cst_58 = arith.constant dense<0.000000e+00> : vector<2x32x32xf32>
    %130 = tpu.matmul %129, %113, %cst_58 {dimension_numbers = #tpu.dot_dimension_numbers<[2], [1], [1], [2], [0, 0, 0, 1, 1, 2], [0], [0]>} : vector<2x32x32xbf16>, vector<2x32x32xbf16>, vector<2x32x32xf32> -> vector<2x32x32xf32>
    "tpu.trace_stop"() : () -> ()
    %131 = vector.shape_cast %130 : vector<2x32x32xf32> to vector<64x32xf32>
    %132 = vector.extract_strided_slice %54 {offsets = [0, 96], sizes = [64, 32], strides = [1, 1]} : vector<64x128xbf16> to vector<64x32xbf16>
    %133 = vector.shape_cast %132 : vector<64x32xbf16> to vector<2x32x32xbf16>
    %134 = vector.extract_strided_slice %55 {offsets = [0, 96], sizes = [64, 32], strides = [1, 1]} : vector<64x128xbf16> to vector<64x32xbf16>
    %135 = vector.shape_cast %134 : vector<64x32xbf16> to vector<2x32x32xbf16>
    %136 = vector.extract_strided_slice %56 {offsets = [0, 96], sizes = [64, 32], strides = [1, 1]} : vector<64x128xbf16> to vector<64x32xbf16>
    %137 = vector.shape_cast %136 : vector<64x32xbf16> to vector<2x32x32xbf16>
    "tpu.trace_start"() <{level = 10 : i32, message = "bqd,bkd->bqk"}> : () -> ()
    %cst_59 = arith.constant dense<0.000000e+00> : vector<2x32x32xf32>
    %138 = tpu.matmul %133, %135, %cst_59 {dimension_numbers = #tpu.dot_dimension_numbers<[2], [2], [1], [1], [0, 0, 0, 1, 1, 1], [0], [0]>} : vector<2x32x32xbf16>, vector<2x32x32xbf16>, vector<2x32x32xf32> -> vector<2x32x32xf32>
    %cst_60 = arith.constant -1.000000e+30 : f32
    "tpu.trace_stop"() : () -> ()
    %139 = vector.shape_cast %59 : vector<1x1x32xi1> to vector<1x1x32xi1>
    %140 = vector.broadcast %139 : vector<1x1x32xi1> to vector<2x32x32xi1>
    %141 = vector.broadcast %cst_60 : f32 to vector<2x32x32xf32>
    %142 = arith.select %140, %138, %141 : vector<2x32x32xi1>, vector<2x32x32xf32>
    %cst_61 = arith.constant dense<0xFF800000> : vector<2x32xf32>
    %143 = vector.multi_reduction <maximumf>, %142, %cst_61 [2] : vector<2x32x32xf32> to vector<2x32xf32>
    %144 = vector.shape_cast %143 : vector<2x32xf32> to vector<2x32x1xf32>
    %145 = vector.broadcast %144 : vector<2x32x1xf32> to vector<2x32x32xf32>
    %146 = arith.subf %142, %145 : vector<2x32x32xf32>
    %147 = math.exp %146 : vector<2x32x32xf32>
    %cst_62 = arith.constant dense<0.000000e+00> : vector<2x32xf32>
    %148 = vector.multi_reduction <add>, %147, %cst_62 [2] : vector<2x32x32xf32> to vector<2x32xf32>
    %149 = vector.shape_cast %148 : vector<2x32xf32> to vector<2x32x1xf32>
    %150 = tpu.reciprocal %149 {approx = true} : vector<2x32x1xf32> -> vector<2x32x1xf32>
    %151 = vector.broadcast %150 : vector<2x32x1xf32> to vector<2x32x32xf32>
    %152 = arith.mulf %147, %151 : vector<2x32x32xf32>
    %153 = arith.truncf %152 : vector<2x32x32xf32> to vector<2x32x32xbf16>
    "tpu.trace_start"() <{level = 10 : i32, message = "bqk,bkd->bqd"}> : () -> ()
    %cst_63 = arith.constant dense<0.000000e+00> : vector<2x32x32xf32>
    %154 = tpu.matmul %153, %137, %cst_63 {dimension_numbers = #tpu.dot_dimension_numbers<[2], [1], [1], [2], [0, 0, 0, 1, 1, 2], [0], [0]>} : vector<2x32x32xbf16>, vector<2x32x32xbf16>, vector<2x32x32xf32> -> vector<2x32x32xf32>
    "tpu.trace_stop"() : () -> ()
    %155 = vector.shape_cast %154 : vector<2x32x32xf32> to vector<64x32xf32>
    %156 = tpu.concatenate %83, %107, %131, %155 in 1 : vector<64x32xf32>, vector<64x32xf32>, vector<64x32xf32>, vector<64x32xf32> -> vector<64x128xf32>
    %157 = arith.truncf %156 : vector<64x128xf32> to vector<64x128xbf16>
    %cst_64 = arith.constant dense<0.000000e+00> : vector<64x128xf32>
    %158 = tpu.matmul %157, %14, %cst_64 {dimension_numbers = #tpu.dot_dimension_numbers<[1], [0], [0], [1], [0, 0, 1, 1], [], []>} : vector<64x128xbf16>, vector<128x128xbf16>, vector<64x128xf32> -> vector<64x128xf32>
    %159 = arith.addf %4, %158 : vector<64x128xf32>
    %160 = vector.broadcast %16 : vector<1x128xf32> to vector<64x128xf32>
    %161 = arith.addf %159, %160 : vector<64x128xf32>
    %cst_65 = arith.constant dense<0.000000e+00> : vector<64xf32>
    %162 = vector.multi_reduction <add>, %161, %cst_65 [1] : vector<64x128xf32> to vector<64xf32>
    %163 = vector.shape_cast %162 : vector<64xf32> to vector<64x1xf32>
    %cst_66 = arith.constant 1.280000e+02 : f32
    %164 = vector.broadcast %cst_66 : f32 to vector<64x1xf32>
    %165 = arith.divf %163, %164 : vector<64x1xf32>
    %166 = vector.broadcast %165 : vector<64x1xf32> to vector<64x128xf32>
    %167 = arith.subf %161, %166 : vector<64x128xf32>
    %168 = arith.mulf %167, %167 : vector<64x128xf32>
    %cst_67 = arith.constant dense<0.000000e+00> : vector<64xf32>
    %169 = vector.multi_reduction <add>, %168, %cst_67 [1] : vector<64x128xf32> to vector<64xf32>
    %170 = vector.shape_cast %169 : vector<64xf32> to vector<64x1xf32>
    %cst_68 = arith.constant 1.280000e+02 : f32
    %171 = vector.broadcast %cst_68 : f32 to vector<64x1xf32>
    %172 = arith.divf %170, %171 : vector<64x1xf32>
    %cst_69 = arith.constant 9.99999997E-7 : f32
    %173 = vector.broadcast %cst_69 : f32 to vector<64x1xf32>
    %174 = arith.addf %172, %173 : vector<64x1xf32>
    %175 = math.rsqrt %174 : vector<64x1xf32>
    %176 = vector.broadcast %175 : vector<64x1xf32> to vector<64x128xf32>
    %177 = arith.mulf %167, %176 : vector<64x128xf32>
    %178 = vector.broadcast %18 : vector<1x128xf32> to vector<64x128xf32>
    %179 = arith.mulf %177, %178 : vector<64x128xf32>
    %180 = vector.broadcast %20 : vector<1x128xf32> to vector<64x128xf32>
    %181 = arith.addf %179, %180 : vector<64x128xf32>
    %182 = arith.truncf %181 : vector<64x128xf32> to vector<64x128xbf16>
    %cst_70 = arith.constant dense<0.000000e+00> : vector<64x512xf32>
    %183 = tpu.matmul %182, %22, %cst_70 {dimension_numbers = #tpu.dot_dimension_numbers<[1], [0], [0], [1], [0, 0, 1, 1], [], []>} : vector<64x128xbf16>, vector<128x512xbf16>, vector<64x512xf32> -> vector<64x512xf32>
    %184 = vector.broadcast %24 : vector<1x512xf32> to vector<64x512xf32>
    %185 = arith.addf %183, %184 : vector<64x512xf32>
    %186 = arith.truncf %185 : vector<64x512xf32> to vector<64x512xbf16>
    %cst_71 = arith.constant 5.000000e-01 : bf16
    %187 = vector.broadcast %cst_71 : bf16 to vector<64x512xbf16>
    %188 = arith.mulf %187, %186 : vector<64x512xbf16>
    %cst_72 = arith.constant 4.467770e-02 : bf16
    %189 = vector.broadcast %cst_72 : bf16 to vector<64x512xbf16>
    %190 = arith.mulf %189, %186 : vector<64x512xbf16>
    %191 = arith.mulf %190, %186 : vector<64x512xbf16>
    %192 = arith.mulf %191, %186 : vector<64x512xbf16>
    %193 = arith.addf %186, %192 : vector<64x512xbf16>
    %cst_73 = arith.constant 7.968750e-01 : bf16
    %194 = vector.broadcast %cst_73 : bf16 to vector<64x512xbf16>
    %195 = arith.mulf %194, %193 : vector<64x512xbf16>
    %196 = math.tanh %195 : vector<64x512xbf16>
    %cst_74 = arith.constant 1.000000e+00 : bf16
    %197 = vector.broadcast %cst_74 : bf16 to vector<64x512xbf16>
    %198 = arith.addf %197, %196 : vector<64x512xbf16>
    %199 = arith.mulf %188, %198 : vector<64x512xbf16>
    %cst_75 = arith.constant dense<0.000000e+00> : vector<64x128xf32>
    %200 = tpu.matmul %199, %26, %cst_75 {dimension_numbers = #tpu.dot_dimension_numbers<[1], [0], [0], [1], [0, 0, 1, 1], [], []>} : vector<64x512xbf16>, vector<512x128xbf16>, vector<64x128xf32> -> vector<64x128xf32>
    %201 = vector.broadcast %28 : vector<1x128xf32> to vector<64x128xf32>
    %202 = arith.addf %200, %201 : vector<64x128xf32>
    %203 = arith.addf %161, %202 : vector<64x128xf32>
    %204 = vector.shape_cast %203 : vector<64x128xf32> to vector<2x32x128xf32>
    %c0_76 = arith.constant 0 : index
    %c0_77 = arith.constant 0 : index
    %c0_78 = arith.constant 0 : index
    %205 = vector.load %arg19[%c0_76, %c0_77, %c0_78] : memref<2x32x128xf32, #tpu.memory_space<vmem>>, vector<2x32x128xf32>
    tpu.vector_store %arg19[%c0_76, %c0_77, %c0_78], %204 {strides = array<i32>} : memref<2x32x128xf32, #tpu.memory_space<vmem>>, vector<2x32x128xf32>,
    %c1_i32 = arith.constant 1 : i32
    %206 = arith.cmpi eq, %arg0, %c1_i32 : i32
    %207 = arith.extui %206 : i1 to i32
    %c0_i32_79 = arith.constant 0 : i32
    %208 = arith.cmpi ne, %207, %c0_i32_79 : i32
    scf.if %208 {
      %c0_80 = arith.constant 0 : index
      %c0_81 = arith.constant 0 : index
      %c0_82 = arith.constant 0 : index
      %209 = vector.load %arg19[%c0_80, %c0_81, %c0_82] : memref<2x32x128xf32, #tpu.memory_space<vmem>>, vector<2x1x128xf32>
      %210 = vector.shape_cast %209 : vector<2x1x128xf32> to vector<2x128xf32>
      %c0_83 = arith.constant 0 : index
      %c0_84 = arith.constant 0 : index
      %211 = vector.load %arg14[%c0_83, %c0_84] : memref<1x128xf32, #tpu.memory_space<vmem>>, vector<1x128xf32>
      %c0_85 = arith.constant 0 : index
      %c0_86 = arith.constant 0 : index
      %212 = vector.load %arg15[%c0_85, %c0_86] : memref<1x128xf32, #tpu.memory_space<vmem>>, vector<1x128xf32>
      %cst_87 = arith.constant dense<0.000000e+00> : vector<2xf32>
      %213 = vector.multi_reduction <add>, %210, %cst_87 [1] : vector<2x128xf32> to vector<2xf32>
      %214 = vector.shape_cast %213 : vector<2xf32> to vector<2x1xf32>
      %cst_88 = arith.constant 1.280000e+02 : f32
      %215 = vector.broadcast %cst_88 : f32 to vector<2x1xf32>
      %216 = arith.divf %214, %215 : vector<2x1xf32>
      %217 = vector.broadcast %216 : vector<2x1xf32> to vector<2x128xf32>
      %218 = arith.subf %210, %217 : vector<2x128xf32>
      %219 = arith.mulf %218, %218 : vector<2x128xf32>
      %cst_89 = arith.constant dense<0.000000e+00> : vector<2xf32>
      %220 = vector.multi_reduction <add>, %219, %cst_89 [1] : vector<2x128xf32> to vector<2xf32>
      %221 = vector.shape_cast %220 : vector<2xf32> to vector<2x1xf32>
      %cst_90 = arith.constant 1.280000e+02 : f32
      %222 = vector.broadcast %cst_90 : f32 to vector<2x1xf32>
      %223 = arith.divf %221, %222 : vector<2x1xf32>
      %cst_91 = arith.constant 9.99999997E-7 : f32
      %224 = vector.broadcast %cst_91 : f32 to vector<2x1xf32>
      %225 = arith.addf %223, %224 : vector<2x1xf32>
      %226 = math.rsqrt %225 : vector<2x1xf32>
      %227 = vector.broadcast %226 : vector<2x1xf32> to vector<2x128xf32>
      %228 = arith.mulf %218, %227 : vector<2x128xf32>
      %229 = vector.broadcast %211 : vector<1x128xf32> to vector<2x128xf32>
      %230 = arith.mulf %228, %229 : vector<2x128xf32>
      %231 = vector.broadcast %212 : vector<1x128xf32> to vector<2x128xf32>
      %232 = arith.addf %230, %231 : vector<2x128xf32>
      %233 = arith.truncf %232 : vector<2x128xf32> to vector<2x128xbf16>
      %c0_92 = arith.constant 0 : index
      %c0_93 = arith.constant 0 : index
      %234 = vector.load %arg16[%c0_92, %c0_93] : memref<128x128xbf16, #tpu.memory_space<vmem>>, vector<128x128xbf16>
      %cst_94 = arith.constant dense<0.000000e+00> : vector<2x128xf32>
      %235 = tpu.matmul %233, %234, %cst_94 {dimension_numbers = #tpu.dot_dimension_numbers<[1], [0], [0], [1], [0, 0, 1, 1], [], []>} : vector<2x128xbf16>, vector<128x128xbf16>, vector<2x128xf32> -> vector<2x128xf32>
      %c0_95 = arith.constant 0 : index
      %c0_96 = arith.constant 0 : index
      %236 = vector.load %arg17[%c0_95, %c0_96] : memref<1x128xf32, #tpu.memory_space<vmem>>, vector<1x128xf32>
      %237 = vector.broadcast %236 : vector<1x128xf32> to vector<2x128xf32>
      %238 = arith.addf %235, %237 : vector<2x128xf32>
      %c0_97 = arith.constant 0 : index
      %c0_98 = arith.constant 0 : index
      %239 = vector.load %arg18[%c0_97, %c0_98] : memref<2x128xf32, #tpu.memory_space<vmem>>, vector<2x128xf32>
      tpu.vector_store %arg18[%c0_97, %c0_98], %238 {strides = array<i32>} : memref<2x128xf32, #tpu.memory_space<vmem>>, vector<2x128xf32>,
    } else {
    }
    return
  }
  func.func @transform_0(%arg0: i32) -> (i32, i32, i32) {
    %c0_i32 = arith.constant 0 : i32
    %c0_i32_0 = arith.constant 0 : i32
    %c0_i32_1 = arith.constant 0 : i32
    %c0_i32_2 = arith.constant 0 : i32
    return %c0_i32, %c0_i32_0, %c0_i32_1 : i32, i32, i32
  }
  func.func @transform_1(%arg0: i32) -> (i32, i32, i32) {
    %c0_i32 = arith.constant 0 : i32
    %c0_i32_0 = arith.constant 0 : i32
    %c0_i32_1 = arith.constant 0 : i32
    return %arg0, %c0_i32, %c0_i32_0 : i32, i32, i32
  }
  func.func @transform_2(%arg0: i32) -> (i32, i32, i32) {
    %c0_i32 = arith.constant 0 : i32
    %c0_i32_0 = arith.constant 0 : i32
    %c0_i32_1 = arith.constant 0 : i32
    return %arg0, %c0_i32, %c0_i32_0 : i32, i32, i32
  }
  func.func @transform_3(%arg0: i32) -> (i32, i32, i32) {
    %c0_i32 = arith.constant 0 : i32
    %c0_i32_0 = arith.constant 0 : i32
    %c0_i32_1 = arith.constant 0 : i32
    return %arg0, %c0_i32, %c0_i32_0 : i32, i32, i32
  }
  func.func @transform_4(%arg0: i32) -> (i32, i32, i32) {
    %c0_i32 = arith.constant 0 : i32
    %c0_i32_0 = arith.constant 0 : i32
    %c0_i32_1 = arith.constant 0 : i32
    return %arg0, %c0_i32, %c0_i32_0 : i32, i32, i32
  }
  func.func @transform_5(%arg0: i32) -> (i32, i32, i32) {
    %c0_i32 = arith.constant 0 : i32
    %c0_i32_0 = arith.constant 0 : i32
    %c0_i32_1 = arith.constant 0 : i32
    return %arg0, %c0_i32, %c0_i32_0 : i32, i32, i32
  }
  func.func @transform_6(%arg0: i32) -> (i32, i32, i32) {
    %c0_i32 = arith.constant 0 : i32
    %c0_i32_0 = arith.constant 0 : i32
    %c0_i32_1 = arith.constant 0 : i32
    return %arg0, %c0_i32, %c0_i32_0 : i32, i32, i32
  }
  func.func @transform_7(%arg0: i32) -> (i32, i32, i32) {
    %c0_i32 = arith.constant 0 : i32
    %c0_i32_0 = arith.constant 0 : i32
    %c0_i32_1 = arith.constant 0 : i32
    return %arg0, %c0_i32, %c0_i32_0 : i32, i32, i32
  }
  func.func @transform_8(%arg0: i32) -> (i32, i32, i32) {
    %c0_i32 = arith.constant 0 : i32
    %c0_i32_0 = arith.constant 0 : i32
    %c0_i32_1 = arith.constant 0 : i32
    return %arg0, %c0_i32, %c0_i32_0 : i32, i32, i32
  }
  func.func @transform_9(%arg0: i32) -> (i32, i32, i32) {
    %c0_i32 = arith.constant 0 : i32
    %c0_i32_0 = arith.constant 0 : i32
    %c0_i32_1 = arith.constant 0 : i32
    return %arg0, %c0_i32, %c0_i32_0 : i32, i32, i32
  }
  func.func @transform_10(%arg0: i32) -> (i32, i32, i32) {
    %c0_i32 = arith.constant 0 : i32
    %c0_i32_0 = arith.constant 0 : i32
    %c0_i32_1 = arith.constant 0 : i32
    return %arg0, %c0_i32, %c0_i32_0 : i32, i32, i32
  }
  func.func @transform_11(%arg0: i32) -> (i32, i32, i32) {
    %c0_i32 = arith.constant 0 : i32
    %c0_i32_0 = arith.constant 0 : i32
    %c0_i32_1 = arith.constant 0 : i32
    return %arg0, %c0_i32, %c0_i32_0 : i32, i32, i32
  }
  func.func @transform_12(%arg0: i32) -> (i32, i32, i32) {
    %c0_i32 = arith.constant 0 : i32
    %c0_i32_0 = arith.constant 0 : i32
    %c0_i32_1 = arith.constant 0 : i32
    return %arg0, %c0_i32, %c0_i32_0 : i32, i32, i32
  }
  func.func @transform_13(%arg0: i32) -> (i32, i32) {
    %c0_i32 = arith.constant 0 : i32
    %c0_i32_0 = arith.constant 0 : i32
    %c0_i32_1 = arith.constant 0 : i32
    return %c0_i32, %c0_i32_0 : i32, i32
  }
  func.func @transform_14(%arg0: i32) -> (i32, i32) {
    %c0_i32 = arith.constant 0 : i32
    %c0_i32_0 = arith.constant 0 : i32
    %c0_i32_1 = arith.constant 0 : i32
    return %c0_i32, %c0_i32_0 : i32, i32
  }
  func.func @transform_15(%arg0: i32) -> (i32, i32) {
    %c0_i32 = arith.constant 0 : i32
    %c0_i32_0 = arith.constant 0 : i32
    %c0_i32_1 = arith.constant 0 : i32
    return %c0_i32, %c0_i32_0 : i32, i32
  }
  func.func @transform_16(%arg0: i32) -> (i32, i32) {
    %c0_i32 = arith.constant 0 : i32
    %c0_i32_0 = arith.constant 0 : i32
    %c0_i32_1 = arith.constant 0 : i32
    return %c0_i32, %c0_i32_0 : i32, i32
  }
  func.func @transform_17(%arg0: i32) -> (i32, i32) {
    %c0_i32 = arith.constant 0 : i32
    %c0_i32_0 = arith.constant 0 : i32
    %c0_i32_1 = arith.constant 0 : i32
    return %c0_i32, %c0_i32_0 : i32, i32
  }
}

</mosaic_0001>

<bundles_post_ra>
// kernel: vit_forward.2
= control target key start
LH: loop header
LB: loop body
LE: loop exit
PB: predicated region body
PF: predicated region fallthrough
CT: control target
= control target key end

     0   :  { %vm60_vm0 = vcmask 392192   ;;  %s202_s1 = inlined_call_operand.vmem [shape: bf16[48,128], index: 1, kind: input, shape index: {}]   ;;  %s203_s0 = inlined_call_operand.vmem [shape: bf16[32,48], index: 0, kind: input, shape index: {}]   ;;  %s204_s2 = inlined_call_operand.vmem [shape: f32[1,128], index: 2, kind: input, shape index: {}]   ;;  %s205_s3 = inlined_call_operand.vmem [shape: f32[32,128], index: 3, kind: output, shape index: {}]  }
   0x1   :  { %v147_v0 = vld [vmem:[%s202_s1] sm:$0xff]   ;;  %v148_v1 = vld [vmem:[%s202_s1 + $0x8] sm:$0xff]   ;;  %v149_v3 = vld [vmem:[%s202_s1 + $0x10] sm:$0xff]  }
   0x2   :  { %137 = vmatprep.subr.bf16.mxu0 %v147_v0  ;;  %v150_v2 = vld [vmem:[%s203_s0] sm:$0xff]   ;;  %v151_v4 = vld [vmem:[%s203_s0 + $0x8] sm:$0xff]  }
   0x3   :  { %138 = vmatpush3.bf16.msra.mxu0 %v147_v0  ;;  %143 = vmatprep.mubr.msk.bf16.mxu0 %vm60_vm0, %v150_v2  ;;  %v124_v5 = vld [vmem:[%s204_s2] ss:$0 sm:$0xff] }
   0x4   :  { %139 = vmatprep.subr.bf16.mxu0 %v148_v1 }
   0x7   :  { %140 = vmatpush3.bf16.msra.mxu0 %v148_v1 }
   0x8   :  { %141 = vmatprep.subr.bf16.mxu0 %v149_v3 }
   0xb   :  { %142 = vmatpush3.bf16.msra.mxu0 %v149_v3 }
   0xe   :  { %144 = vmatmul.mubr.msk.bf16.vlgmr.msra.gmra.mrb[0].mxu0 %vm60_vm0, %v151_v4 }
  0xe1   :  { %v145_v6 = vpop.f32.mrb[0].mxu0 }
  0xe2   :  { %v110_v7 = vadd.f32 %v145_v6, %v124_v5  ;;  %v101_v8 = vpop.f32.mrb[1].mxu0 }
  0xe3   :  { %v102_v9 = vadd.f32 %v124_v5, %v101_v8  ;;  %v146_v10 = vpop.f32.mrb[2].mxu0 }
  0xe4   :  { %118 = vst [vmem:[%s205_s3 + $0x10] sm:$0xff] %v110_v7  ;;  %v113_v11 = vadd.f32 %v146_v10, %v124_v5  ;;  %v104_v12 = vpop.f32.mrb[3].mxu0 }
  0xe5   :  { %116 = vst [vmem:[%s205_s3] sm:$0xff] %v102_v9  ;;  %v105_v13 = vadd.f32 %v124_v5, %v104_v12 }
  0xe6   :  { %119 = vst [vmem:[%s205_s3 + $0x18] sm:$0xff] %v113_v11 }
  0xe7   :  { %117 = vst [vmem:[%s205_s3 + $0x8] sm:$0xff] %v105_v13 }

// kernel: vit_forward.3
= control target key start
LH: loop header
LB: loop body
LE: loop exit
PB: predicated region body
PF: predicated region fallthrough
CT: control target
= control target key end

     0   :  { %s7288_s0 = inlined_call_operand.vmem [shape: bf16[2,32,128], index: 0, kind: input, shape index: {}]   ;;  %s7289_s1 = inlined_call_operand.vmem [shape: f32[2,1,128], index: 1, kind: input, shape index: {}]   ;;  %s7290_s2 = inlined_call_operand.vmem [shape: f32[2,1,128], index: 2, kind: input, shape index: {}]   ;;  %s7291_s3 = inlined_call_operand.hbm [shape: bf16[2,128,384], index: 3, kind: input, shape index: {}]   ;;  %s7292_s4 = inlined_call_operand.hbm [shape: f32[2,1,384], index: 4, kind: input, shape index: {}]   ;;  %s7293_s5 = inlined_call_operand.vmem [shape: bf16[2,128,128], index: 5, kind: input, shape index: {}]   ;;  %s7294_s6 = inlined_call_operand.hbm [shape: f32[2,1,128], index: 6, kind: input, shape index: {}]   ;;  %s7295_s7 = inlined_call_operand.hbm [shape: f32[2,1,128], index: 7, kind: input, shape index: {}]   ;;  %s7296_s8 = inlined_call_operand.hbm [shape: f32[2,1,128], index: 8, kind: input, shape index: {}]   ;;  %s7297_s9 = inlined_call_operand.vmem [shape: bf16[2,128,512], index: 9, kind: input, shape index: {}]   ;;  %s7298_s10 = inlined_call_operand.vmem [shape: f32[2,1,512], index: 10, kind: input, shape index: {}]   ;;  %s7299_s11 = inlined_call_operand.vmem [shape: bf16[2,512,128], index: 11, kind: input, shape index: {}]   ;;  %s7300_s12 = inlined_call_operand.hbm [shape: f32[2,1,128], index: 12, kind: input, shape index: {}]   ;;  %s7301_s13 = inlined_call_operand.vmem [shape: f32[1,128], index: 13, kind: input, shape index: {}]   ;;  %s7302_s14 = inlined_call_operand.vmem [shape: f32[1,128], index: 14, kind: input, shape index: {}]   ;;  %s7303_s15 = inlined_call_operand.vmem [shape: bf16[128,128], index: 15, kind: input, shape index: {}]   ;;  %s7304_s16 = inlined_call_operand.vmem [shape: f32[1,128], index: 16, kind: input, shape index: {}]   ;;  %s7305_s17 = inlined_call_operand.hbm [shape: f32[2,128], index: 17, kind: output, shape index: {}]  }
   0x1   :  { %7317 = sst [smem:[#allocation23_spill]] %s7288_s0 }
   0x2   :  { %7318 = sst [smem:[#allocation24_spill]] %s7289_s1 }
   0x3   :  { %7319 = sst [smem:[#allocation25_spill]] %s7291_s3 }
   0x4   :  { %7320 = sst [smem:[#allocation26_spill]] %s7292_s4 }
   0x5   :  { %7321 = sst [smem:[#allocation27_spill]] %s7293_s5 }
   0x6   :  { %7322 = sst [smem:[#allocation28_spill]] %s7295_s7 }
   0x7   :  { %7323 = sst [smem:[#allocation29_spill]] %s7297_s9 }
   0x8   :  { %7324 = sst [smem:[#allocation30_spill]] %s7298_s10 }
   0x9   :  { %7325 = sst [smem:[#allocation31_spill]] %s7299_s11 }
   0xa   :  { %7326 = sst [smem:[#allocation32_spill]] %s7301_s13 }
   0xb   :  { %7327 = sst [smem:[#allocation33_spill]] %s7302_s14 }
   0xc   :  { %7328 = sst [smem:[#allocation34_spill]] %s7303_s15 }
   0xd   :  { %7329 = sst [smem:[#allocation35_spill]] %s7304_s16 }
   0xe   :  { %7330 = sst [smem:[#allocation36_spill]] %s7305_s17 }
   0xf   :  { %22 = vsyncpa [#allocation4], 0 }
  0x10   :  { %24 = vsyncpa [#allocation4 + $0x1], 0 }
  0x11   :  { %25 = vsyncpa [#allocation7], 0 }
  0x12   :  { %27 = vsyncpa [#allocation7 + $0x1], 0 }
  0x13   :  { %28 = vsyncpa [#allocation10], 0 }
  0x14   :  { %30 = vsyncpa [#allocation10 + $0x1], 0 }
  0x15   :  { %31 = vsyncpa [#allocation13], 0 }
  0x16   :  { %33 = vsyncpa [#allocation13 + $0x1], 0 }
  0x17   :  { %34 = vsyncpa [#allocation5], 0  ;;  %s5897_s24 = smov 0   ;;  %s5899_s25 = smov 0  }
  0x18   :  { %s5901_s26 = smov 0   ;;  %s5903_s27 = smov 0  }
  0x19 LB: > { %7331 = sst [smem:[#allocation20_spill]] %s5786_s26  ;;  %s5916_s28 = sadd.s32 4294967295, %s5790_s27   ;;  %s5790_s27 = sphi %s5903_s27, %s7366_s27   ;;  %s5786_s26 = sphi %s5901_s26, %s7368_s26   ;;  %s5782_s25 = sphi %s5899_s25, %s7370_s25   ;;  %s5778_s24 = sphi %s5897_s24, %s7369_s24  }
  0x1a   : > { %s5919_s29 = sadd.s32 1, %s5790_s27   ;;  %s120_s30 = sadd.s32 1, %s5786_s26 }
  0x1b   : > { %7332 = sst [smem:[#allocation21_spill]] %s5919_s29  ;;  %s117_s0 = ssub.s32 %s5790_s27, %s5919_s29 }
  0x1c   : > { %p118_p0 = scmp.eq.s32.totalorder %s117_s0, 0  ;;  %p127_p1 = scmp.ne.s32.totalorder %s5786_s26, %s5782_s25 }
  0x1d   : > { %p128_p2 = scmp.eq.s32.totalorder %s5790_s27, 0  ;;  %p133_p3 = scmp.ne.s32.totalorder %s5782_s25, %s5778_s24 }
  0x1e   : > { %s5929_s18 = scalar_select %p118_p0, %s5786_s26, %s120_s30  }
  0x1f   : > { %p129_p4 = por %p128_p2, %p127_p1  ;;  %p134_p5 = scmp.eq.s32.totalorder %s5916_s28, 0 }
  0x20   : > { %7333 = sst [smem:[#allocation22_spill]] %s5929_s18  ;;  %p5100_p6 = scmp.lt.s32.totalorder %s5790_s27, 2 }
  0x21   : > { %p5933_p7 = por %p134_p5, %p133_p3  ;;  %s5938_s1 = sand.u32 1, %s5786_s26  }
  0x22   : > { %p5940_p8 = pnand %p5100_p6, %p129_p4  ;;  %s7311_s21 = sand.u32 1, %s5790_s27  }
  0x23   : > { %s7334_s19 = scalar_select %p5933_p7, 1, 0 }
  0x24   : > { %s7335_s20 = scalar_select %p5940_p8, 1, 0 }
  0x25   : > { %s5061_s22 = smul.u32 3, %s5938_s1  ;;  %s7336_s4 = sld [smem:[#allocation26_spill]] }
  0x26   : > { %s5062_s23 = smul.u32 48, %s5790_s27  ;;  %s5958_s29 = scalar_lea.sflag [#allocation7], %s7311_s21 }
  0x27   : > { %s548_s18 = scalar_lea.vmem [#allocation6], %s5061_s22  ;;  %p5964_p12 = pneg %p5940_p8 }
  0x28   : > { %s556_s26 = sshll.u32 %s548_s18, 4  ;;  %s5953_s26 = int_to_ptr.vmem [resolvable:$true] %s556_s26 }
  0x2b   : > { %s5951_s30 = scalar_lea.hbm %s7336_s4, %s5062_s23  ;;  %s5539_s18 = scalar_lea.hbm %s7336_s4, 96 }
  0x2c   : > { %s5534_s17 = scalar_lea.hbm %s5951_s30, 48  ;;  %p5540_p1 = scmp.lt.u32.totalorder %s5951_s30, %s7336_s4 }
  0x2d   : > { %p5535_p11 = scmp.ne.s32.totalorder %s5951_s30, %s5534_s17  ;;  %p5541_p2 = scmp.lt.u32.totalorder %s5539_s18, %s5534_s17 }
  0x2e   : > { %p5543_p4 = scmp.lt.u32.totalorder %s5534_s17, %s5951_s30 }
  0x2f   : > { %p5537_p13 = pnand %p5964_p12, %p5535_p11  ;;  %p5542_p3 = por %p5541_p2, %p5540_p1 }
  0x31   : > { %p5538_p0 = pneg %p5537_p13  ;;  %p5544_p5 = por %p5543_p4, %p5542_p3 }
  0x33   : > { %p5545_p6 = pnand %p5544_p5, %p5538_p0 }
  0x35   : > { %5548 = shalt.err (!%p5545_p6)
}
  0x36   : > { %s5549_s21 = scalar_lea.vmem %s5953_s26, 48  ;;  %s5792_s23 = smov [#allocation6]  }
  0x37   : > { %p5550_p11 = scmp.ne.s32.totalorder %s5953_s26, %s5549_s21  ;;  %s5554_s22 = sshll.u32 %s5792_s23, 4  ;;  %s5555_s22 = int_to_ptr.vmem [resolvable:$false] %s5554_s22 }
  0x38   : > { %s5556_s24 = scalar_lea.vmem %s5555_s22, 96  ;;  %p5557_p10 = scmp.lt.s32.totalorder %s5953_s26, %s5555_s22 }
  0x39   : > { %p5552_p13 = pnand %p5550_p11, %p5964_p12  ;;  %p5558_p7 = scmp.lt.s32.totalorder %s5556_s24, %s5549_s21 }
  0x3b   : > { %p5553_p9 = pneg %p5552_p13  ;;  %p5559_p1 = por %p5558_p7, %p5557_p10 }
  0x3d   : > { %p5560_p2 = pnand %p5559_p1, %p5553_p9 }
  0x3f   : > { %5563 = shalt.err (!%p5560_p2)
}
  0x40   : > { %5087 = dma.hbm_to_vmem [thread:$0]  (!%p5940_p8), %s5951_s30, 48, %s5953_s26, %s5958_s29  }
  0x41   : > { %p7338_p0 = scmp.lt.s32.totalorder %s5790_s27, 3  ;;  %p7339_p3 = scmp.ge.s32.totalorder %s5790_s27, 1 }
  0x42   : > { %s5997_s21 = sshll.u32 %s5790_s27, 4  ;;  %s7341_s7 = sld [smem:[#allocation28_spill]] }
  0x43   : > { %p5992_p4 = pnand %p7339_p3, %p7338_p0  ;;  %s591_s22 = scalar_lea.vmem [#allocation9], %s5938_s1 }
  0x44   : > { %s598_s26 = sshll.u32 %s591_s22, 4  ;;  %s7342_s30 = sand.u32 1, %s5790_s27   ;;  %s599_s26 = int_to_ptr.vmem [resolvable:$true] %s598_s26 }
  0x45   : > { %s7340_s17 = scalar_select %p5992_p4, 1, 0 }
  0x46   : > { %s6008_s24 = scalar_lea.sflag [#allocation10], %s7342_s30 }
  0x48   : > { %s6003_s23 = scalar_lea.hbm %s7341_s7, %s5997_s21  ;;  %s5569_s18 = scalar_lea.hbm %s7341_s7, 32 }
  0x49   : > { %s5564_s4 = scalar_lea.hbm %s6003_s23, 16  ;;  %p5570_p5 = scmp.lt.u32.totalorder %s6003_s23, %s7341_s7 }
  0x4a   : > { %p5565_p7 = scmp.ne.s32.totalorder %s6003_s23, %s5564_s4  ;;  %p5571_p6 = scmp.lt.u32.totalorder %s5569_s18, %s5564_s4 }
  0x4b   : > { %p5573_p13 = scmp.lt.u32.totalorder %s5564_s4, %s6003_s23 }
  0x4c   : > { %p5567_p9 = pnand %p5565_p7, %p5964_p12  ;;  %p5572_p11 = por %p5571_p6, %p5570_p5 }
  0x4e   : > { %p5568_p10 = pneg %p5567_p9  ;;  %p5574_p1 = por %p5573_p13, %p5572_p11 }
  0x50   : > { %p5575_p2 = pnand %p5574_p1, %p5568_p10 }
  0x52   : > { %5578 = shalt.err (!%p5575_p2)
}
  0x53   : > { %s5579_s22 = scalar_lea.vmem %s599_s26, 16  ;;  %s5793_s30 = smov [#allocation9]  }
  0x54   : > { %p5580_p0 = scmp.ne.s32.totalorder %s599_s26, %s5579_s22  ;;  %s5584_s10 = sshll.u32 %s5793_s30, 4  ;;  %s5585_s10 = int_to_ptr.vmem [resolvable:$false] %s5584_s10 }
  0x55   : > { %s5586_s13 = scalar_lea.vmem %s5585_s10, 32  ;;  %p5587_p9 = scmp.lt.s32.totalorder %s599_s26, %s5585_s10 }
  0x56   : > { %p5582_p3 = pnand %p5580_p0, %p5964_p12  ;;  %p5588_p4 = scmp.lt.s32.totalorder %s5586_s13, %s5579_s22 }
  0x58   : > { %p5583_p7 = pneg %p5582_p3  ;;  %p5589_p8 = por %p5588_p4, %p5587_p9 }
  0x5a   : > { %p5590_p5 = pnand %p5589_p8, %p5583_p7 }
  0x5c   : > { %5593 = shalt.err (!%p5590_p5)
}
  0x5d   : > { %p7343_p6 = scmp.ne.s32.totalorder %s7335_s20, 0  ;;  %s5059_s4 = smul.u32 192, %s5938_s1 }
  0x5e   : > { %s5060_s14 = smul.u32 3072, %s5790_s27  ;;  %s7344_s3 = sld [smem:[#allocation25_spill]] }
  0x5f   : > { %5093 = dma.hbm_to_vmem [thread:$0]  (!%p7343_p6), %s6003_s23, 16, %s599_s26, %s6008_s24  }
  0x60   : > { %s527_s0 = scalar_lea.vmem [#allocation3], %s5059_s4  ;;  %s6041_s7 = scalar_lea.hbm %s7294_s6, %s5997_s21 }
  0x61   : > { %s534_s22 = sshll.u32 %s527_s0, 4  ;;  %s524_s23 = scalar_lea.sflag [#allocation4], %s5938_s1  ;;  %s6035_s22 = int_to_ptr.vmem [resolvable:$true] %s534_s22 }
  0x64   : > { %s6033_s10 = scalar_lea.hbm %s7344_s3, %s5060_s14  ;;  %s5599_s15 = scalar_lea.hbm %s7344_s3, 6144 }
  0x65   : > { %s5594_s27 = scalar_lea.hbm %s6033_s10, 3072  ;;  %p5600_p11 = scmp.lt.u32.totalorder %s6033_s10, %s7344_s3 }
  0x66   : > { %p5595_p8 = scmp.ne.s32.totalorder %s6033_s10, %s5594_s27  ;;  %p5601_p13 = scmp.lt.u32.totalorder %s5599_s15, %s5594_s27 }
  0x67   : > { %p5603_p2 = scmp.lt.u32.totalorder %s5594_s27, %s6033_s10 }
  0x68   : > { %p5597_p4 = pnand %p5595_p8, %p5964_p12  ;;  %p5602_p1 = por %p5601_p13, %p5600_p11 }
  0x6a   : > { %p5598_p10 = pneg %p5597_p4  ;;  %p5604_p0 = por %p5603_p2, %p5602_p1 }
  0x6c   : > { %p5605_p3 = pnand %p5604_p0, %p5598_p10 }
  0x6e   : > { %5608 = shalt.err (!%p5605_p3)
}
  0x6f   : > { %s5609_s0 = scalar_lea.vmem %s6035_s22, 3072  ;;  %s5794_s30 = smov [#allocation3]  }
  0x70   : > { %p5610_p7 = scmp.ne.s32.totalorder %s6035_s22, %s5609_s0  ;;  %s5614_s13 = sshll.u32 %s5794_s30, 4  ;;  %s5615_s13 = int_to_ptr.vmem [resolvable:$false] %s5614_s13 }
  0x71   : > { %s5616_s26 = scalar_lea.vmem %s5615_s13, 6144  ;;  %p5617_p8 = scmp.lt.s32.totalorder %s6035_s22, %s5615_s13 }
  0x72   : > { %p5612_p9 = pnand %p5610_p7, %p5964_p12  ;;  %p5618_p4 = scmp.lt.s32.totalorder %s5616_s26, %s5609_s0 }
  0x74   : > { %p5613_p5 = pneg %p5612_p9  ;;  %p5619_p11 = por %p5618_p4, %p5617_p8 }
  0x76   : > { %p5620_p13 = pnand %p5619_p11, %p5613_p5 }
  0x78   : > { %5623 = shalt.err (!%p5620_p13)
}
  0x79   : > { %s5795_s27 = smov 192   ;;  %s5796_s14 = smov 12  }
  0x7a   : > { %5084 = dma.hbm_to_vmem [thread:$0]  (!%p7343_p6), %s6033_s10, 3072, %s6035_s22, %s524_s23, %s5795_s27, %s5795_s27, %s5796_s14  }
  0x7b   : > { %s574_s15 = scalar_lea.vmem [#allocation8], %s5938_s1  ;;  %s6072_s30 = scalar_lea.hbm %s7296_s8, %s5997_s21 }
  0x7c   : > { %s581_s18 = sshll.u32 %s574_s15, 4  ;;  %s5624_s13 = scalar_lea.hbm %s6041_s7, 16  ;;  %s582_s18 = int_to_ptr.vmem [resolvable:$true] %s581_s18 }
  0x7d   : > { %p5625_p10 = scmp.ne.s32.totalorder %s6041_s7, %s5624_s13  ;;  %s5629_s11 = scalar_lea.hbm %s7294_s6, 32 }
  0x7e   : > { %p5630_p0 = scmp.lt.u32.totalorder %s6041_s7, %s7294_s6  ;;  %p5631_p3 = scmp.lt.u32.totalorder %s5629_s11, %s5624_s13 }
  0x7f   : > { %p5627_p1 = pnand %p5625_p10, %p5964_p12  ;;  %p5633_p9 = scmp.lt.u32.totalorder %s5624_s13, %s6041_s7 }
  0x80   : > { %p5632_p7 = por %p5631_p3, %p5630_p0 }
  0x81   : > { %p5628_p2 = pneg %p5627_p1 }
  0x82   : > { %p5634_p5 = por %p5633_p9, %p5632_p7 }
  0x84   : > { %p5635_p8 = pnand %p5634_p5, %p5628_p2 }
  0x86   : > { %5638 = shalt.err (!%p5635_p8)
}
  0x87   : > { %s5639_s10 = scalar_lea.vmem %s582_s18, 16  ;;  %s5797_s22 = smov [#allocation8]  }
  0x88   : > { %p5640_p4 = scmp.ne.s32.totalorder %s582_s18, %s5639_s10  ;;  %s5644_s23 = sshll.u32 %s5797_s22, 4  ;;  %s5645_s23 = int_to_ptr.vmem [resolvable:$false] %s5644_s23 }
  0x89   : > { %s5646_s3 = scalar_lea.vmem %s5645_s23, 32  ;;  %p5647_p10 = scmp.lt.s32.totalorder %s582_s18, %s5645_s23 }
  0x8a   : > { %p5642_p11 = pnand %p5640_p4, %p5964_p12  ;;  %p5648_p1 = scmp.lt.s32.totalorder %s5646_s3, %s5639_s10 }
  0x8c   : > { %p5643_p13 = pneg %p5642_p11  ;;  %p5649_p6 = por %p5648_p1, %p5647_p10 }
  0x8e   : > { %p5650_p0 = pnand %p5649_p6, %p5643_p13 }
  0x90   : > { %5653 = shalt.err (!%p5650_p0)
}
  0x91   : > { %p7345_p3 = scmp.ne.s32.totalorder %s7335_s20, 0  ;;  %s608_s5 = scalar_lea.vmem [#allocation11], %s5938_s1 }
  0x92   : > { %s615_s9 = sshll.u32 %s608_s5, 4  ;;  %s5654_s11 = scalar_lea.hbm %s6072_s30, 16  ;;  %s616_s9 = int_to_ptr.vmem [resolvable:$true] %s615_s9 }
  0x93   : > { %5090 = dma.hbm_to_vmem [thread:$0]  (!%p7345_p3), %s6041_s7, 16, %s582_s18, %s5958_s29  }
  0x94   : > { %p5655_p2 = scmp.ne.s32.totalorder %s6072_s30, %s5654_s11  ;;  %s5659_s15 = scalar_lea.hbm %s7296_s8, 32 }
  0x95   : > { %p5660_p9 = scmp.lt.u32.totalorder %s6072_s30, %s7296_s8  ;;  %p5661_p5 = scmp.lt.u32.totalorder %s5659_s15, %s5654_s11 }
  0x96   : > { %p5657_p7 = pnand %p5655_p2, %p5964_p12  ;;  %p5663_p4 = scmp.lt.u32.totalorder %s5654_s11, %s6072_s30 }
  0x97   : > { %p5662_p8 = por %p5661_p5, %p5660_p9 }
  0x98   : > { %p5658_p6 = pneg %p5657_p7 }
  0x99   : > { %p5664_p11 = por %p5663_p4, %p5662_p8 }
  0x9b   : > { %p5665_p13 = pnand %p5664_p11, %p5658_p6 }
  0x9d   : > { %5668 = shalt.err (!%p5665_p13)
}
  0x9e   : > { %s5669_s7 = scalar_lea.vmem %s616_s9, 16  ;;  %s5798_s29 = smov [#allocation11]  }
  0x9f   : > { %p5670_p10 = scmp.ne.s32.totalorder %s616_s9, %s5669_s7  ;;  %s5674_s18 = sshll.u32 %s5798_s29, 4  ;;  %s5675_s18 = int_to_ptr.vmem [resolvable:$false] %s5674_s18 }
  0xa0   : > { %s5676_s13 = scalar_lea.vmem %s5675_s18, 32  ;;  %p5677_p2 = scmp.lt.s32.totalorder %s616_s9, %s5675_s18 }
  0xa1   : > { %p5672_p1 = pnand %p5670_p10, %p5964_p12  ;;  %p5678_p7 = scmp.lt.s32.totalorder %s5676_s13, %s5669_s7 }
  0xa3   : > { %p5673_p0 = pneg %p5672_p1  ;;  %p5679_p3 = por %p5678_p7, %p5677_p2 }
  0xa5   : > { %p5680_p5 = pnand %p5679_p3, %p5673_p0 }
  0xa7   : > { %5683 = shalt.err (!%p5680_p5)
}
  0xa8   : > { %p7346_p9 = scmp.ne.s32.totalorder %s7335_s20, 0  ;;  %s6115_s22 = scalar_lea.hbm %s7300_s12, %s5997_s21 }
  0xa9   : > { %s648_s23 = scalar_lea.vmem [#allocation12], %s5938_s1  ;;  %s646_s5 = scalar_lea.sflag [#allocation13], %s5938_s1 }
  0xaa   : > { %5096 = dma.hbm_to_vmem [thread:$0]  (!%p7346_p9), %s6072_s30, 16, %s616_s9, %s6008_s24  }
  0xab   : > { %s655_s3 = sshll.u32 %s648_s23, 4  ;;  %s5684_s11 = scalar_lea.hbm %s6115_s22, 16  ;;  %s656_s3 = int_to_ptr.vmem [resolvable:$true] %s655_s3 }
  0xac   : > { %p5685_p3 = scmp.ne.s32.totalorder %s6115_s22, %s5684_s11  ;;  %s5689_s30 = scalar_lea.hbm %s7300_s12, 32 }
  0xad   : > { %p5690_p4 = scmp.lt.u32.totalorder %s6115_s22, %s7300_s12  ;;  %p5691_p11 = scmp.lt.u32.totalorder %s5689_s30, %s5684_s11 }
  0xae   : > { %p5687_p6 = pnand %p5685_p3, %p5964_p12  ;;  %p5693_p10 = scmp.lt.u32.totalorder %s5684_s11, %s6115_s22 }
  0xaf   : > { %p5692_p13 = por %p5691_p11, %p5690_p4 }
  0xb0   : > { %p5688_p8 = pneg %p5687_p6 }
  0xb1   : > { %p5694_p1 = por %p5693_p10, %p5692_p13 }
  0xb3   : > { %p5695_p0 = pnand %p5694_p1, %p5688_p8 }
  0xb5   : > { %5698 = shalt.err (!%p5695_p0)
}
  0xb6   : > { %s5699_s1 = scalar_lea.vmem %s656_s3, 16  ;;  %s5799_s14 = smov [#allocation12]  }
  0xb7   : > { %p5700_p2 = scmp.ne.s32.totalorder %s656_s3, %s5699_s1  ;;  %s5704_s15 = sshll.u32 %s5799_s14, 4  ;;  %s5705_s15 = int_to_ptr.vmem [resolvable:$false] %s5704_s15 }
  0xb8   : > { %s5706_s4 = scalar_lea.vmem %s5705_s15, 32  ;;  %p5707_p3 = scmp.lt.s32.totalorder %s656_s3, %s5705_s15 }
  0xb9   : > { %p5702_p7 = pnand %p5700_p2, %p5964_p12  ;;  %p5708_p6 = scmp.lt.s32.totalorder %s5706_s4, %s5699_s1 }
  0xbb   : > { %p5703_p5 = pneg %p5702_p7  ;;  %p5709_p9 = por %p5708_p6, %p5707_p3 }
  0xbd   : > { %p5710_p4 = pnand %p5709_p9, %p5703_p5 }
  0xbf   : > { %5713 = shalt.err (!%p5710_p4)
}
  0xc0   : > { %p7347_p11 = scmp.ne.s32.totalorder %s7335_s20, 0  ;;  %p7348_p8 = scmp.ne.s32.totalorder %s7340_s17, 0 }
  0xc1   : > { %s6139_s16 = sand.u32 (!%p7348_p8), 1, %s5782_s25   ;;  %p7349_p12 = scmp.ne.s32.totalorder (!%p7348_p8), %s7334_s19, 0 }
  0xc2   : > { %5099 = dma.hbm_to_vmem [thread:$0]  (!%p7347_p11), %s6115_s22, 16, %s656_s3, %s646_s5  }
  0xc3   : > { %664 = sbr.rel (%p7348_p8) target bundleno = 5053 (0x13bd), region = 88  ;;  %s667_s7 = scalar_lea.sflag (!%p7348_p8), [#allocation4], %s6139_s16 }
  0xc4   : > { %s5063_s0 = smul.u32 (!%p7348_p8), 192, %s6139_s16 }
  0xc6   : > { %s6143_s29 = scalar_lea.vmem (!%p7348_p8), [#allocation3], %s5063_s0 }
  0xca   : > { %5757 = dma.done.wait (%p7349_p12), %s667_s7, 3072  }
  0xcb   : > { %5759 = vsyncadd (%p7349_p12), %s667_s7, 4294964224  ;;  %s675_s20 = sand.u32 1, %s5916_s28   ;;  %s5064_s17 = smul.u32 3, %s6139_s16 }
  0xcc   : > { %s676_s18 = scalar_lea.sflag [#allocation7], %s675_s20 }
  0xcd   : > { %s6151_s13 = scalar_lea.vmem [#allocation6], %s5064_s17 }
  0xce   : > { %5761 = dma.done.wait (%p7349_p12), %s676_s18, 64  }
  0xcf   : > { %5763 = vsyncadd (%p7349_p12), %s676_s18, 4294967232  ;;  %s693_s10 = scalar_lea.sflag [#allocation10], %s675_s20 }
  0xd0   : > { %5765 = dma.done.wait (%p7349_p12), %s693_s10, 32  }
  0xd1   : > { %5767 = vsyncadd (%p7349_p12), %s693_s10, 4294967264  ;;  %s709_s3 = scalar_lea.sflag [#allocation13], %s6139_s16 }
  0xd2   : > { %5769 = dma.done.wait (%p7349_p12), %s709_s3, 16  }
  0xd3   : > { %5771 = vsyncadd (%p7349_p12), %s709_s3, 4294967280  ;;  %p803_p9 = scmp.lt.s32.totalorder %s5916_s28, 1  ;;  %s7350_s30 = sld [smem:[#allocation24_spill]] }
  0xd4   : > { %s7351_s7 = sld [smem:[#allocation27_spill]]  ;;  %s7352_s10 = sld [smem:[#allocation29_spill]] }
  0xd5   : > { %s6172_s11 = scalar_select %p803_p9, %s5916_s28, 1 }
  0xd6   : > { %s7354_s22 = sld [smem:[#allocation30_spill]]  ;;  %p4497_p13 = scmp.ne.s32.totalorder %s5916_s28, 0 }
  0xd7   : > { %s808_s14 = scalar_lea.vmem %s7290_s2, %s6172_s11  ;;  %s4648_s19 = sshll.u32 %s6172_s11, 6 }
  0xd8   : > { %s4649_s15 = sshll.u32 %s6172_s11, 8  ;;  %s4494_s27 = sshll.u32 %s6172_s11, 2 }
  0xd9   : > { %s805_s9 = scalar_lea.vmem %s7350_s30, %s6172_s11  ;;  %s7353_s30 = sld [smem:[#allocation31_spill]] }
  0xda   : > { %s6187_s20 = scalar_lea.vmem %s7351_s7, %s4648_s19  ;;  %s6192_s3 = scalar_lea.vmem %s7352_s10, %s4649_s15 }
  0xdb   : > { %836 = sbr.rel (%p4497_p13) target bundleno = 232 (0xe8), region = 116  ;;  %s7355_s0 = sld [smem:[#allocation23_spill]] (!%p4497_p13) }
  0xdc   : > { %s6203_s26 = scalar_lea.vmem %s7354_s22, %s4494_s27 }
  0xdf   : > { %s6198_s23 = scalar_lea.vmem %s7353_s30, %s4649_s15 }
  0xe1   : > { %v4652_v0 = vld [vmem:[%s7355_s0] sm:$0xff] (!%p4497_p13)   ;;  %v4667_v1 = vld [vmem:[%s7355_s0 + $0x8] sm:$0xff] (!%p4497_p13)   ;;  %v4668_v2 = vld [vmem:[%s7355_s0 + $0x10] sm:$0xff] (!%p4497_p13)  }
  0xe2   : > { %v4653_v3 = vunpack.c.l.bf16 %v4652_v0  ;;  %v4654_v4 = vunpack.c.h.bf16 %v4652_v0  ;;  %v4657_v5 = vunpack.c.l.bf16 %v4667_v1  ;;  %v4658_v6 = vunpack.c.h.bf16 %v4667_v1  ;;  %v4669_v7 = vld [vmem:[%s7355_s0 + $0x18] sm:$0xff]  }
  0xe3   : > { %v4661_v8 = vunpack.c.l.bf16 %v4668_v2  ;;  %v4662_v9 = vunpack.c.h.bf16 %v4668_v2  ;;  %v4665_v10 = vunpack.c.l.bf16 %v4669_v7  ;;  %v4666_v11 = vunpack.c.h.bf16 %v4669_v7 }
  0xe4   : > { %853 = vst [vmem:[#allocation2] sm:$0xff] %v4653_v3  ;;  %854 = vst [vmem:[#allocation2 + $0x8] sm:$0xff] %v4654_v4 }
  0xe5   : > { %855 = vst [vmem:[#allocation2 + $0x10] sm:$0xff] %v4657_v5  ;;  %856 = vst [vmem:[#allocation2 + $0x18] sm:$0xff] %v4658_v6 }
  0xe6   : > { %857 = vst [vmem:[#allocation2 + $0x20] sm:$0xff] %v4661_v8  ;;  %858 = vst [vmem:[#allocation2 + $0x28] sm:$0xff] %v4662_v9 }
  0xe7   : > { %859 = vst [vmem:[#allocation2 + $0x30] sm:$0xff] %v4665_v10  ;;  %860 = vst [vmem:[#allocation2 + $0x38] sm:$0xff] %v4666_v11 }
  0xe8 PF: > { %v5204_v20 = vld [vmem:[%s6143_s29 + $0x4] ss:$12 sps:$4 sm:$0xff]   ;;  %v5206_v21 = vld [vmem:[%s6143_s29] ss:$12 sps:$4 sm:$0xff]   ;;  %v5207_v22 = vld [vmem:[%s6143_s29 + $0x1c] ss:$12 sps:$4 sm:$0xff]  }
  0xe9   : > { %v5209_v23 = vld [vmem:[%s6143_s29 + $0x8] ss:$12 sps:$4 sm:$0xff]   ;;  %1286 = vmatprep.subr.bf16.mxu0 %v5204_v20  ;;  %v5210_v56 = vld [vmem:[%s6143_s29 + $0x18] ss:$12 sps:$4 sm:$0xff]   ;;  %v5213_v58 = vld [vmem:[%s6143_s29 + $0x20] ss:$12 sps:$4 sm:$0xff]  }
  0xea   : > { %1287 = vmatpush1.bf16.msra.mxu0 %v5206_v21  ;;  %4847 = vmatprep.subr.bf16.mxu1 %v5209_v23  ;;  %v5211_v57 = vld [vmem:[%s6143_s29 + $0x34] ss:$12 sps:$4 sm:$0xff]   ;;  %v5214_v59 = vld [vmem:[%s6143_s29 + $0x30] ss:$12 sps:$4 sm:$0xff]   ;;  %v5215_v60 = vld [vmem:[%s6143_s29 + $0x4c] ss:$12 sps:$4 sm:$0xff]  }
  0xeb   : > { %v861_v12 = vld [vmem:[#allocation2] sm:$0xff]  ;;  %v862_v14 = vld [vmem:[#allocation2 + $0x8] sm:$0xff]  ;;  %1288 = vmatprep.subr.bf16.mxu0 %v5207_v22  ;;  %4848 = vmatpush3.bf16.msra.mxu1 %v5209_v23  ;;  %v5221_v0 = vld [vmem:[%s6143_s29 + $0x50] ss:$12 sps:$4 sm:$0xff]   ;;  %v5800_v11 = vmov 0   ;;  %vm1439_vm0 = vcmask 261120  }
  0xec   : > { %v863_v13 = vld [vmem:[#allocation2 + $0x10] sm:$0xff]  ;;  %1021 = vadd.xlane.f32.xlu0 %v861_v12  ;;  %v864_v15 = vld [vmem:[#allocation2 + $0x18] sm:$0xff]  ;;  %4849 = vmatprep.subr.bf16.mxu1 %v5213_v58  ;;  %v5222_v1 = vld [vmem:[%s6143_s29 + $0x60] ss:$12 sps:$4 sm:$0xff]   ;;  %s5802_s11 = smov 64   ;;  %vm2970_vm2 = vcmask 523264  }
  0xed   : > { %1025 = vadd.xlane.f32.xlu1 %v863_v13  ;;  %v865_v16 = vld [vmem:[#allocation2 + $0x20] sm:$0xff]  ;;  %v866_v17 = vld [vmem:[#allocation2 + $0x28] sm:$0xff]  ;;  %v5230_v7 = vld [vmem:[%s6143_s29 + $0x90] ss:$12 sps:$4 sm:$0xff]   ;;  %1318 = vmatprep.mubr.bf16.mxu0 %v5800_v11  ;;  %vm2979_vm3 = vcmask 785408   ;;  %p4632_p10 = scmp.ne.s32.totalorder %s5916_s28, 1 }
  0xee   : > { %v867_v18 = vld [vmem:[#allocation2 + $0x30] sm:$0xff]  ;;  %v868_v19 = vld [vmem:[#allocation2 + $0x38] sm:$0xff]  ;;  %1289 = vmatpush1.bf16.msra.mxu0 %v5210_v56  ;;  %v5229_v6 = vld [vmem:[%s6143_s29 + $0x80] ss:$12 sps:$4 sm:$0xff]   ;;  %vm4089_vm4 = vcmask (!%p4632_p10), 1041409   ;;  %vm4092_vm5 = vcmask (!%p4632_p10), 1041408  }
  0xef   : > { %1290 = vmatprep.subr.bf16.mxu0 %v5211_v57  ;;  %4850 = vmatpush3.bf16.msra.mxu1 %v5213_v58  ;;  %v5217_v61 = vld [vmem:[%s6143_s29 + $0x38] ss:$12 sps:$4 sm:$0xff]   ;;  %v5218_v62 = vld [vmem:[%s6143_s29 + $0x48] ss:$12 sps:$4 sm:$0xff]   ;;  %s7361_s21 = sld [smem:[#allocation34_spill]] (!%p4632_p10)  ;;  %vm5805_vm6 = vmmov (!%p4632_p10), 0  }
  0xf0   : > { %1023 = vadd.xlane.f32.xlu0 %v862_v14  ;;  %4851 = vmatprep.subr.bf16.mxu1 %v5217_v61  ;;  %v5219_v63 = vld [vmem:[%s6143_s29 + $0x64] ss:$12 sps:$4 sm:$0xff]   ;;  %v5223_v2 = vld [vmem:[%s6143_s29 + $0x7c] ss:$12 sps:$4 sm:$0xff]   ;;  %v5227_v5 = vld [vmem:[%s6143_s29 + $0x94] ss:$12 sps:$4 sm:$0xff]  }
  0xf1   : > { %1027 = vadd.xlane.f32.xlu1 %v864_v15  ;;  %v5225_v3 = vld [vmem:[%s6143_s29 + $0x68] ss:$12 sps:$4 sm:$0xff]   ;;  %v5226_v4 = vld [vmem:[%s6143_s29 + $0x78] ss:$12 sps:$4 sm:$0xff]  }
  0xf2   : > { %1291 = vmatpush1.bf16.msra.mxu0 %v5214_v59  ;;  %v5231_v8 = vld [vmem:[%s6143_s29 + $0xac] ss:$12 sps:$4 sm:$0xff]   ;;  %v5234_v10 = vld [vmem:[%s6143_s29 + $0xa8] ss:$12 sps:$4 sm:$0xff]  }
  0xf3   : > { %1292 = vmatprep.subr.bf16.mxu0 %v5215_v60  ;;  %4852 = vmatpush3.bf16.msra.mxu1 %v5217_v61  ;;  %v5233_v9 = vld [vmem:[%s6143_s29 + $0x98] ss:$12 sps:$4 sm:$0xff]  }
  0xf4   : > { %1029 = vadd.xlane.f32.xlu0 %v865_v16  ;;  %4853 = vmatprep.subr.bf16.mxu1 %v5221_v0 }
  0xf5   : > { %1031 = vadd.xlane.f32.xlu1 %v866_v17 }
  0xf6   : > { %1293 = vmatpush1.bf16.msra.mxu0 %v5218_v62 }
  0xf7   : > { %1294 = vmatprep.subr.bf16.mxu0 %v5219_v63  ;;  %4854 = vmatpush3.bf16.msra.mxu1 %v5221_v0 }
  0xf8   : > { %1033 = vadd.xlane.f32.xlu0 %v867_v18  ;;  %4855 = vmatprep.subr.bf16.mxu1 %v5225_v3 }
  0xf9   : > { %1035 = vadd.xlane.f32.xlu1 %v868_v19 }
  0xfa   : > { %1295 = vmatpush1.bf16.msra.mxu0 %v5222_v1 }
  0xfb   : > { %1296 = vmatprep.subr.bf16.mxu0 %v5223_v2  ;;  %4856 = vmatpush3.bf16.msra.mxu1 %v5225_v3 }
  0xfc   : > { %4857 = vmatprep.subr.bf16.mxu1 %v5229_v6 }
  0xfe   : > { %1297 = vmatpush1.bf16.msra.mxu0 %v5226_v4 }
  0xff   : > { %1298 = vmatprep.subr.bf16.mxu0 %v5227_v5  ;;  %4858 = vmatpush3.bf16.msra.mxu1 %v5229_v6 }
 0x100   : > { %4859 = vmatprep.subr.bf16.mxu1 %v5233_v9 }
 0x102   : > { %1299 = vmatpush1.bf16.msra.mxu0 %v5230_v7 }
 0x103   : > { %1300 = vmatprep.subr.bf16.mxu0 %v5231_v8  ;;  %4860 = vmatpush3.bf16.msra.mxu1 %v5233_v9 }
 0x106   : > { %1301 = vmatpush1.bf16.msra.mxu0 %v5234_v10 }
 0x179   : > { %v1022_v24 = vpop.xlane.xlu0 %1021 }
 0x17a   : > { %v1026_v25 = vpop.xlane.xlu1 %1025  ;;  %v1038_v26 = vmul.f32 0.0078125, %v1022_v24 }
 0x17b   : > { %v1040_v27 = vmul.f32 0.0078125, %v1026_v25 }
 0x17c   : > { %v6222_v28 = vsub.f32 %v861_v12, %v1038_v26  ;;  %v5235_v12 = vld [vmem:[%s6143_s29 + $0xb0] ss:$12 sps:$4 sm:$0xff]  }
 0x17d   : > { %v6224_v29 = vsub.f32 %v863_v13, %v1040_v27  ;;  %v1024_v30 = vpop.xlane.xlu0 %1023  ;;  %4861 = vmatprep.subr.bf16.mxu1 %v5235_v12 }
 0x17e   : > { %v1028_v31 = vpop.xlane.xlu1 %1027  ;;  %v1039_v32 = vmul.f32 0.0078125, %v1024_v30  ;;  %v1054_v33 = vmul.f32 %v6222_v28, %v6222_v28  ;;  %4862 = vmatpush3.bf16.msra.mxu1 %v5235_v12 }
 0x17f   : > { %v1041_v34 = vmul.f32 0.0078125, %v1028_v31  ;;  %v1056_v35 = vmul.f32 %v6224_v29, %v6224_v29 }
 0x180   : > { %1062 = vadd.xlane.f32.xlu0 %v1054_v33  ;;  %v6230_v36 = vsub.f32 %v862_v14, %v1039_v32 }
 0x181   : > { %v6232_v37 = vsub.f32 %v864_v15, %v1041_v34  ;;  %v1030_v38 = vpop.xlane.xlu0 %1029 }
 0x182   : > { %v1032_v39 = vpop.xlane.xlu1 %1031  ;;  %v1042_v40 = vmul.f32 0.0078125, %v1030_v38  ;;  %v1055_v41 = vmul.f32 %v6230_v36, %v6230_v36 }
 0x183   : > { %v1043_v42 = vmul.f32 0.0078125, %v1032_v39  ;;  %v1057_v43 = vmul.f32 %v6232_v37, %v6232_v37 }
 0x184   : > { %1066 = vadd.xlane.f32.xlu0 %v1056_v35  ;;  %1064 = vadd.xlane.f32.xlu1 %v1055_v41  ;;  %v6238_v44 = vsub.f32 %v865_v16, %v1042_v40 }
 0x185   : > { %v6240_v45 = vsub.f32 %v866_v17, %v1043_v42  ;;  %v1034_v46 = vpop.xlane.xlu0 %1033  ;;  %v4498_v42 = vld [vmem:[%s805_s9] ss:$0 sm:$0xff]  ;;  %s5803_s9 = smov 32  }
 0x186   : > { %v1036_v47 = vpop.xlane.xlu1 %1035  ;;  %v1044_v48 = vmul.f32 0.0078125, %v1034_v46  ;;  %v1058_v49 = vmul.f32 %v6238_v44, %v6238_v44 }
 0x187   : > { %v1045_v50 = vmul.f32 0.0078125, %v1036_v47  ;;  %v1059_v51 = vmul.f32 %v6240_v45, %v6240_v45 }
 0x188   : > { %1068 = vadd.xlane.f32.xlu1 %v1057_v43  ;;  %1070 = vadd.xlane.f32.xlu0 %v1058_v49  ;;  %v6246_v52 = vsub.f32 %v867_v18, %v1044_v48 }
 0x189   : > { %v6248_v53 = vsub.f32 %v868_v19, %v1045_v50 }
 0x18a   : > { %v1060_v54 = vmul.f32 %v6246_v52, %v6246_v52 }
 0x18b   : > { %v1061_v55 = vmul.f32 %v6248_v53, %v6248_v53 }
 0x18c   : > { %1072 = vadd.xlane.f32.xlu1 %v1059_v51  ;;  %1074 = vadd.xlane.f32.xlu0 %v1060_v54 }
 0x190   : > { %1076 = vadd.xlane.f32.xlu1 %v1061_v55 }
 0x20d   : > { %v1063_v13 = vpop.xlane.xlu0 %1062 }
 0x20e   : > { %v1078_v14 = vmul.f32 0.0078125, %v1063_v13 }
 0x210   : > { %v1086_v15 = vadd.f32 1e-06, %v1078_v14 }
 0x211   : > { %v1065_v16 = vpop.xlane.xlu1 %1064  ;;  %v1067_v17 = vpop.xlane.xlu0 %1066 }
 0x212   : > { %5324 = vrsqrt.f32 %v1086_v15  ;;  %v1079_v18 = vmul.f32 0.0078125, %v1065_v16  ;;  %v1080_v19 = vmul.f32 0.0078125, %v1067_v17  ;;  %v903_v15 = vld [vmem:[%s6151_s13] sm:$0x7]  ;;  %s5801_s13 = smov 96  }
 0x214   : > { %v1087_v20 = vadd.f32 1e-06, %v1079_v18  ;;  %v1088_v21 = vadd.f32 1e-06, %v1080_v19 }
 0x215   : > { %v1069_v22 = vpop.xlane.xlu1 %1068  ;;  %v1071_v23 = vpop.xlane.xlu0 %1070 }
 0x216   : > { %5326 = vrsqrt.f32 %v1087_v20  ;;  %v1081_v24 = vmul.f32 0.0078125, %v1069_v22  ;;  %v1082_v25 = vmul.f32 0.0078125, %v1071_v23 }
 0x217   : > { %5328 = vrsqrt.f32 %v1088_v21 }
 0x218   : > { %v1089_v26 = vadd.f32 1e-06, %v1081_v24  ;;  %v1090_v27 = vadd.f32 1e-06, %v1082_v25 }
 0x219   : > { %v1073_v30 = vpop.xlane.xlu1 %1072  ;;  %v1075_v31 = vpop.xlane.xlu0 %1074 }
 0x21a   : > { %5330 = vrsqrt.f32 %v1089_v26  ;;  %v1083_v32 = vmul.f32 0.0078125, %v1073_v30  ;;  %v1084_v33 = vmul.f32 0.0078125, %v1075_v31 }
 0x21b   : > { %5332 = vrsqrt.f32 %v1090_v27 }
 0x21c   : > { %v5325_v34 = vpop.eup %5324  ;;  %v1091_v35 = vadd.f32 1e-06, %v1083_v32  ;;  %v1092_v38 = vadd.f32 1e-06, %v1084_v33 }
 0x21d   : > { %v1077_v39 = vpop.xlane.xlu1 %1076  ;;  %v1102_v40 = vmul.f32 %v5325_v34, %v6222_v28  ;;  %v4499_v28 = vld [vmem:[%s808_s14] ss:$0 sm:$0xff]  ;;  %s7357_s14 = scalar_lea.vmem [#allocation8], %s6139_s16 }
 0x21e   : > { %5334 = vrsqrt.f32 %v1091_v35  ;;  %v1085_v41 = vmul.f32 0.0078125, %v1077_v39 }
 0x21f   : > { %5336 = vrsqrt.f32 %v1092_v38  ;;  %v1116_v49 = vmul.f32 %v4498_v42, %v1102_v40 }
 0x220   : > { %v5327_v43 = vpop.eup %5326  ;;  %v1093_v46 = vadd.f32 1e-06, %v1085_v41 }
 0x221   : > { %v5329_v47 = vpop.eup %5328  ;;  %v1103_v48 = vmul.f32 %v5327_v43, %v6230_v36  ;;  %v1130_v57 = vadd.f32 %v4499_v28, %v1116_v49 }
 0x222   : > { %5338 = vrsqrt.f32 %v1093_v46  ;;  %v1104_v50 = vmul.f32 %v5329_v47, %v6224_v29 }
 0x223   : > { %v1117_v51 = vmul.f32 %v4498_v42, %v1103_v48 }
 0x224   : > { %v5331_v54 = vpop.eup %5330  ;;  %v1118_v55 = vmul.f32 %v4498_v42, %v1104_v50 }
 0x225   : > { %v5333_v56 = vpop.eup %5332  ;;  %v1131_v58 = vadd.f32 %v4499_v28, %v1117_v51  ;;  %v1105_v59 = vmul.f32 %v5331_v54, %v6232_v37 }
 0x226   : > { %v1106_v60 = vmul.f32 %v5333_v56, %v6238_v44  ;;  %v1132_v63 = vadd.f32 %v4499_v28, %v1118_v55 }
 0x227   : > { %v1138_v36 = vpack.c.bf16 %v1131_v58, %v1130_v57  ;;  %v1119_v61 = vmul.f32 %v4498_v42, %v1105_v59 }
 0x228   : > { %v5335_v62 = vpop.eup %5334  ;;  %v1120_v2 = vmul.f32 %v4498_v42, %v1106_v60 }
 0x229   : > { %v5337_v0 = vpop.eup %5336  ;;  %1319 = vmatmul.mubr.bf16.vlgmr.msra.gmra.mrb[0].mxu0 %v1138_v36  ;;  %4863 = vmatprep.mubr.bf16.mxu1 %v1138_v36  ;;  %v1133_v1 = vadd.f32 %v4499_v28, %v1119_v61  ;;  %v1107_v29 = vmul.f32 %v5335_v62, %v6240_v45 }
 0x22a   : > { %1328 = vmatprep.mubr.bf16.mxu0 %v5800_v11  ;;  %v1108_v3 = vmul.f32 %v5337_v0, %v6246_v52  ;;  %v1134_v44 = vadd.f32 %v4499_v28, %v1120_v2  ;;  %v1143_v52 = vlaneseq }
 0x22b   : > { %v1139_v4 = vpack.c.bf16 %v1133_v1, %v1132_v63  ;;  %v1121_v5 = vmul.f32 %v4498_v42, %v1107_v29 }
 0x22c   : > { %v5339_v37 = vpop.eup %5338  ;;  %v1122_v8 = vmul.f32 %v4498_v42, %v1108_v3  ;;  %v6297_v14 = vshrl.u32 %v1143_v52, 7 }
 0x22d   : > { %4864 = vmatmul.mubr.bf16.vlgmr.msra.gmra.mrb[0].mxu1 %v1139_v4  ;;  %v1135_v6 = vadd.f32 %v4499_v28, %v1121_v5  ;;  %v1109_v7 = vmul.f32 %v5339_v37, %v6248_v53 }
 0x22e   : > { %v1136_v45 = vadd.f32 %v4499_v28, %v1122_v8  ;;  %v1145_v53 = vsub.s32 0, %v6297_v14  ;;  %v1149_v16 = vsub.s32 1, %v6297_v14  ;;  %v1153_v18 = vsub.s32 2, %v6297_v14 }
 0x22f   : > { %v1140_v9 = vpack.c.bf16 %v1135_v6, %v1134_v44  ;;  %v1123_v10 = vmul.f32 %v4498_v42, %v1109_v7 }
 0x230   : > { %v6304_v17 = vrot.slane %v903_v15, %v1145_v53  ;;  %v6309_v20 = vrot.slane %v903_v15, %v1149_v16  ;;  %v1154_v26 = vrot.slane %v903_v15, %v1153_v18 }
 0x231   : > { %1329 = vmatmul.mubr.bf16.gmra.mrb[4].mxu0 %v1139_v4  ;;  %4867 = vmatprep.mubr.bf16.mxu1 %v1140_v9  ;;  %v1137_v12 = vadd.f32 %v4499_v28, %v1123_v10 }
 0x232   : > { %1338 = vmatprep.mubr.bf16.mxu0 %v5800_v11 }
 0x233   : > { %v1141_v13 = vpack.c.bf16 %v1137_v12, %v1136_v45 }
 0x235   : > { %4868 = vmatmul.mubr.bf16.gmra.mrb[4].mxu1 %v1141_v13 }
 0x239   : > { %1339 = vmatmul.mubr.bf16.gmra.mrb[8].mxu0 %v1140_v9 }
 0x23a   : > { %1348 = vmatprep.mubr.bf16.mxu0 %v5800_v11 }
 0x241   : > { %1349 = vmatmul.mubr.bf16.gmra.mrb[12].mxu0 %v1141_v13 }
 0x2fc   : > { %v1320_v19 = vpop.f32.mrb[0].mxu0 }
 0x2fd   : > { %v1322_v21 = vpop.f32.mrb[1].mxu0  ;;  %v1321_v23 = vadd.f32 %v1320_v19, %v6304_v17 }
 0x2fe   : > { %v1324_v22 = vpop.f32.mrb[2].mxu0  ;;  %v1323_v27 = vadd.f32 %v1322_v21, %v6309_v20 }
 0x2ff   : > { %v1325_v24 = vadd.f32 %v1324_v22, %v6304_v17  ;;  %v1326_v25 = vpop.f32.mrb[3].mxu0 }
 0x300   : > { %v1327_v30 = vadd.f32 %v1326_v25, %v6309_v20  ;;  %v4865_v31 = vpop.f32.mrb[0].mxu1 }
 0x301   : > { %v6317_v32 = vpack.c.bf16 %v1325_v24, %v1321_v23  ;;  %v1393_v33 = vpop.f32.mrb[1].mxu1  ;;  %v1402_v38 = vadd.f32 %v4865_v31, %v1154_v26 }
 0x302   : > { %v6319_v34 = vpack.c.bf16 %v1327_v30, %v1323_v27  ;;  %v4866_v35 = vpop.f32.mrb[2].mxu1  ;;  %v1394_v41 = vadd.f32 %v1393_v33, %v1154_v26 }
 0x303   : > { %v1405_v39 = vadd.f32 %v4866_v35, %v1154_v26  ;;  %v1396_v40 = vpop.f32.mrb[3].mxu1  ;;  %4875 = vmatprep.mubr.msk.bf16.mxu1 %vm1439_vm0, %v6317_v32 }
 0x304   : > { %v1397_v42 = vadd.f32 %v1396_v40, %v1154_v26  ;;  %v1330_v43 = vpop.f32.mrb[4].mxu0  ;;  %5043 = vmatprep.subr.msk.bf16.mxu1 %vm1439_vm0, %v6319_v34  ;;  %v1447_v46 = vsel %vm1439_vm0, %v6319_v34, 0 }
 0x305   : > { %v6327_v47 = vpack.c.bf16 %v1405_v39, %v1402_v38  ;;  %v1332_v48 = vpop.f32.mrb[5].mxu0  ;;  %4872 = vmatpush3.bf16.xpose.msra.mxu1 %v1447_v46  ;;  %v1331_v50 = vadd.f32 %v1330_v43, %v6304_v17 }
 0x306   : > { %v6329_v49 = vpack.c.bf16 %v1397_v42, %v1394_v41  ;;  %v1334_v28 = vpop.f32.mrb[6].mxu0  ;;  %v1333_v55 = vadd.f32 %v1332_v48, %v6309_v20 }
 0x307   : > { %v1335_v51 = vadd.f32 %v1334_v28, %v6304_v17  ;;  %v1336_v54 = vpop.f32.mrb[7].mxu0 }
 0x308   : > { %v1337_v56 = vadd.f32 %v1336_v54, %v6309_v20  ;;  %v4869_v57 = vpop.f32.mrb[4].mxu1 }
 0x309   : > { %v6335_v58 = vpack.c.bf16 %v1335_v51, %v1331_v50  ;;  %v1418_v59 = vadd.f32 %v4869_v57, %v1154_v26  ;;  %v1409_v60 = vpop.f32.mrb[5].mxu1 }
 0x30a   : > { %v6337_v36 = vpack.c.bf16 %v1337_v56, %v1333_v55  ;;  %v4870_v61 = vpop.f32.mrb[6].mxu1  ;;  %v1410_v0 = vadd.f32 %v1409_v60, %v1154_v26 }
 0x30b   : > { %v1421_v62 = vadd.f32 %v4870_v61, %v1154_v26  ;;  %v1412_v63 = vpop.f32.mrb[7].mxu1 }
 0x30c   : > { %v1413_v1 = vadd.f32 %v1412_v63, %v1154_v26  ;;  %v1340_v29 = vpop.f32.mrb[8].mxu0  ;;  %5044 = vmatprep.subr.msk.bf16.mxu1 %vm1439_vm0, %v6337_v36  ;;  %v1450_v2 = vsel %vm1439_vm0, %v6337_v36, 0 }
 0x30d   : > { %v6343_v3 = vpack.c.bf16 %v1421_v62, %v1418_v59  ;;  %v1342_v4 = vpop.f32.mrb[9].mxu0  ;;  %4874 = vmatpush3.bf16.xpose.msra.mxu1 %v1450_v2  ;;  %v1341_v44 = vadd.f32 %v1340_v29, %v6304_v17 }
 0x30e   : > { %v6345_v5 = vpack.c.bf16 %v1413_v1, %v1410_v0  ;;  %v1344_v37 = vpop.f32.mrb[10].mxu0  ;;  %v1343_v8 = vadd.f32 %v1342_v4, %v6309_v20 }
 0x30f   : > { %v1345_v6 = vadd.f32 %v1344_v37, %v6304_v17  ;;  %v1346_v7 = vpop.f32.mrb[11].mxu0 }
 0x310   : > { %v1347_v9 = vadd.f32 %v1346_v7, %v6309_v20 }
 0x311   : > { %v6351_v10 = vpack.c.bf16 %v1345_v6, %v1341_v44 }
 0x312   : > { %v6353_v45 = vpack.c.bf16 %v1347_v9, %v1343_v8 }
 0x314   : > { %v1350_v12 = vpop.f32.mrb[12].mxu0  ;;  %4876 = vmatmul.mubr.msk.bf16.vlgmr.msra.gmra.mrb[8].mxu1 %vm1439_vm0, %v6335_v58  ;;  %5045 = vmatprep.subr.msk.bf16.mxu1 %vm1439_vm0, %v6353_v45  ;;  %v1508_v13 = vsel %vm1439_vm0, %v6353_v45, 0 }
 0x315   : > { %v1352_v15 = vpop.f32.mrb[13].mxu0  ;;  %4880 = vmatpush3.bf16.xpose.msra.mxu1 %v1508_v13  ;;  %4883 = vmatprep.mubr.msk.bf16.mxu1 %vm1439_vm0, %v6351_v10  ;;  %v1351_v21 = vadd.f32 %v1350_v12, %v6304_v17 }
 0x316   : > { %v1354_v19 = vpop.f32.mrb[14].mxu0  ;;  %v1353_v24 = vadd.f32 %v1352_v15, %v6309_v20 }
 0x317   : > { %v1355_v22 = vadd.f32 %v1354_v19, %v6304_v17  ;;  %v1356_v23 = vpop.f32.mrb[15].mxu0  ;;  %v6383_v17 = vand.u32 127, %v1143_v52 }
 0x318   : > { %v1357_v25 = vadd.f32 %v1356_v23, %v6309_v20 }
 0x319   : > { %v6367_v26 = vpack.c.bf16 %v1355_v22, %v1351_v21  ;;  %vm1438_vm1 = vcmp.lt.s32.totalorder %v6383_v17, 17 }
 0x31a   : > { %v6369_v27 = vpack.c.bf16 %v1357_v25, %v1353_v24 }
 0x31c   : > { %5046 = vmatprep.subr.msk.bf16.mxu1 %vm1439_vm0, %v6369_v27  ;;  %v1511_v30 = vsel %vm1439_vm0, %v6369_v27, 0 }
 0x31d   : > { %4882 = vmatpush3.bf16.xpose.msra.mxu1 %v1511_v30 }
 0x31e   : > { %4887 = vmatprep.subr.bf16.mxu1 %v6329_v49 }
 0x324   : > { %4884 = vmatmul.mubr.msk.bf16.vlgmr.msra.gmra.mrb[12].mxu1 %vm1439_vm0, %v6367_v26 }
 0x325   : > { %4888 = vmatpush3.bf16.msra.mxu1 %v6329_v49 }
 0x326   : > { %4889 = vmatprep.subr.bf16.mxu1 %v6327_v47 }
 0x329   : > { %4890 = vmatpush3.bf16.msra.mxu1 %v6327_v47 }
 0x32a   : > { %4895 = vmatprep.subr.bf16.mxu1 %v6345_v5 }
 0x3e7   : > { %v4877_v20 = vpop.f32.mrb[8].mxu1 }
 0x3e8   : > { %v1486_v31 = vpop.f32.mrb[9].mxu1  ;;  %v1566_v40 = vsel %vm1438_vm1, %v4877_v20, -1e+30 }
 0x3e9   : > { %v1564_v33 = vsel %vm1438_vm1, %v1486_v31, -1e+30  ;;  %v4878_v35 = vpop.f32.mrb[10].mxu1  ;;  %v1578_v43 = vsel %vm1439_vm0, %v1566_v40, -inf }
 0x3ea   : > { %v1489_v38 = vpop.f32.mrb[11].mxu1  ;;  %v1572_v39 = vsel %vm1439_vm0, %v1564_v33, -inf  ;;  %v1567_v42 = vsel %vm1438_vm1, %v4878_v35, -1e+30 }
 0x3eb   : > { %v1565_v41 = vsel %vm1438_vm1, %v1489_v38, -1e+30  ;;  %1573 = vmax.xlane.f32.xlu0 %v1572_v39  ;;  %v1581_v46 = vsel %vm1439_vm0, %v1567_v42, -inf }
 0x3ec   : > { %v1575_v52 = vsel %vm1439_vm0, %v1565_v41, -inf }
 0x3ed   : > { %1576 = vmax.xlane.f32.xlu1 %v1575_v52 }
 0x3ef   : > { %1579 = vmax.xlane.f32.xlu0 %v1578_v43 }
 0x3f1   : > { %1582 = vmax.xlane.f32.xlu1 %v1581_v46 }
 0x3f7   : > { %v4885_v48 = vpop.f32.mrb[12].mxu1 }
 0x3f8   : > { %v1547_v28 = vpop.f32.mrb[13].mxu1  ;;  %v6406_v56 = vsel %vm1438_vm1, %v4885_v48, -1e+30 }
 0x3f9   : > { %v6400_v50 = vsel %vm1438_vm1, %v1547_v28, -1e+30  ;;  %v4886_v51 = vpop.f32.mrb[14].mxu1  ;;  %v1590_v61 = vsel %vm1439_vm0, %v6406_v56, -inf }
 0x3fa   : > { %v1550_v54 = vpop.f32.mrb[15].mxu1  ;;  %v1584_v55 = vsel %vm1439_vm0, %v6400_v50, -inf  ;;  %v1571_v60 = vsel %vm1438_vm1, %v4886_v51, -1e+30 }
 0x3fb   : > { %v1569_v57 = vsel %vm1438_vm1, %v1550_v54, -1e+30  ;;  %1585 = vmax.xlane.f32.xlu0 %v1584_v55  ;;  %v1593_v62 = vsel %vm1439_vm0, %v1571_v60, -inf }
 0x3fc   : > { %v1587_v59 = vsel %vm1439_vm0, %v1569_v57, -inf }
 0x3fd   : > { %1588 = vmax.xlane.f32.xlu1 %v1587_v59 }
 0x3ff   : > { %1591 = vmax.xlane.f32.xlu0 %v1590_v61 }
 0x401   : > { %1594 = vmax.xlane.f32.xlu1 %v1593_v62 }
 0x412   : > { %1784 = vrot.lane.b32.xlu1 %v6337_v36, %s5801_s13 }
 0x416   : > { %1776 = vrot.lane.b32.xlu1 %v6317_v32, %s5801_s13 }
 0x478   : > { %v1574_v63 = vpop.xlane.xlu0 %1573 }
 0x479   : > { %v1596_v0 = vsub.f32 %v1564_v33, %v1574_v63 }
 0x47a   : > { %v1577_v1 = vpop.xlane.xlu1 %1576 }
 0x47b   : > { %v1597_v2 = vsub.f32 %v1565_v41, %v1577_v1  ;;  %v1604_v37 = vmul.f32 1.442695, %v1596_v0 }
 0x47c   : > { %v1580_v29 = vpop.xlane.xlu0 %1579 }
 0x47d   : > { %v1598_v4 = vsub.f32 %v1566_v40, %v1580_v29  ;;  %v1606_v8 = vmul.f32 1.442695, %v1597_v2 }
 0x47e   : > { %v1583_v44 = vpop.xlane.xlu1 %1582 }
 0x47f   : > { %v1608_v6 = vmul.f32 1.442695, %v1598_v4  ;;  %v1599_v7 = vsub.f32 %v1567_v42, %v1583_v44 }
 0x481   : > { %5340 = vpow2.f32 %v1608_v6  ;;  %v1610_v9 = vmul.f32 1.442695, %v1599_v7 }
 0x482   : > { %5342 = vpow2.f32 %v1604_v37 }
 0x483   : > { %5344 = vpow2.f32 %v1610_v9 }
 0x484   : > { %5346 = vpow2.f32 %v1606_v8 }
 0x488   : > { %v1586_v43 = vpop.xlane.xlu0 %1585 }
 0x489   : > { %v1600_v28 = vsub.f32 %v6400_v50, %v1586_v43 }
 0x48a   : > { %v1589_v12 = vpop.xlane.xlu1 %1588 }
 0x48b   : > { %v6420_v13 = vpop.eup %5340  ;;  %v1601_v22 = vsub.f32 %v1569_v57, %v1589_v12  ;;  %v1612_v54 = vmul.f32 1.442695, %v1600_v28 }
 0x48c   : > { %v6422_v15 = vpop.eup %5342  ;;  %v1626_v19 = vsel %vm1439_vm0, %v6420_v13, 0.0  ;;  %v1592_v46 = vpop.xlane.xlu0 %1591 }
 0x48d   : > { %v5345_v21 = vpop.eup %5344  ;;  %1627 = vadd.xlane.f32.xlu0 %v1626_v19  ;;  %v1620_v20 = vsel %vm1439_vm0, %v6422_v15, 0.0  ;;  %v1614_v31 = vmul.f32 1.442695, %v1601_v22  ;;  %v1602_v48 = vsub.f32 %v6406_v56, %v1592_v46 }
 0x48e   : > { %v1595_v23 = vpop.xlane.xlu1 %1594  ;;  %v1629_v24 = vsel %vm1439_vm0, %v5345_v21, 0.0  ;;  %v5347_v25 = vpop.eup %5346 }
 0x48f   : > { %v1603_v30 = vsub.f32 %v1571_v60, %v1595_v23  ;;  %1630 = vadd.xlane.f32.xlu1 %v1629_v24  ;;  %v1623_v38 = vsel %vm1439_vm0, %v5347_v25, 0.0  ;;  %v1616_v51 = vmul.f32 1.442695, %v1602_v48 }
 0x491   : > { %v1618_v33 = vmul.f32 1.442695, %v1603_v30  ;;  %1621 = vadd.xlane.f32.xlu0 %v1620_v20 }
 0x492   : > { %v1785_v35 = vpop.permute.xlu1 %1784 }
 0x493   : > { %5348 = vpow2.f32 %v1618_v33  ;;  %1624 = vadd.xlane.f32.xlu1 %v1623_v38  ;;  %v1796_v44 = vsel %vm1439_vm0, %v1785_v35, 0 }
 0x494   : > { %5350 = vpow2.f32 %v1614_v31 }
 0x495   : > { %5352 = vpow2.f32 %v1616_v51 }
 0x496   : > { %v1777_v39 = vpop.permute.xlu1 %1776  ;;  %5354 = vpow2.f32 %v1612_v54 }
 0x497   : > { %4907 = vmatprep.mubr.msk.bf16.mxu0 %vm1439_vm0, %v1777_v39 }
 0x49d   : > { %v6431_v40 = vpop.eup %5348 }
 0x49e   : > { %v1641_v41 = vsel %vm1439_vm0, %v6431_v40, 0.0  ;;  %v6435_v52 = vpop.eup %5350 }
 0x49f   : > { %1642 = vadd.xlane.f32.xlu1 %v1641_v41  ;;  %v1635_v42 = vsel %vm1439_vm0, %v6435_v52, 0.0  ;;  %v5353_v55 = vpop.eup %5352 }
 0x4a0   : > { %v1638_v57 = vsel %vm1439_vm0, %v5353_v55, 0.0  ;;  %v5355_v59 = vpop.eup %5354 }
 0x4a1   : > { %v1632_v50 = vsel %vm1439_vm0, %v5355_v59, 0.0 }
 0x4a3   : > { %1636 = vadd.xlane.f32.xlu1 %v1635_v42 }
 0x4a7   : > { %1782 = vrot.lane.b32.xlu0 %v6319_v34, %s5801_s13 }
 0x4b4   : > { %1778 = vrot.lane.b32.xlu1 %v6335_v58, %s5801_s13 }
 0x4b8   : > { %1857 = vrot.lane.b32.xlu1 %v6369_v27, %s5801_s13 }
 0x4bc   : > { %1851 = vrot.lane.b32.xlu1 %v6367_v26, %s5801_s13 }
 0x4c6   : > { %1639 = vadd.xlane.f32.xlu0 %v1638_v57 }
 0x4ca   : > { %1633 = vadd.xlane.f32.xlu0 %v1632_v50 }
 0x4e0   : > { %1855 = vrot.lane.b32.xlu0 %v6353_v45, %s5801_s13 }
 0x4e4   : > { %1849 = vrot.lane.b32.xlu0 %v6351_v10, %s5801_s13 }
 0x51a   : > { %v1628_v56 = vpop.xlane.xlu0 %1627 }
 0x51c   : > { %v1631_v60 = vpop.xlane.xlu1 %1630 }
 0x51d   : > { %5356 = vrcp.f32 %v1631_v60 }
 0x51e   : > { %v1622_v61 = vpop.xlane.xlu0 %1621 }
 0x51f   : > { %5358 = vrcp.f32 %v1622_v61 }
 0x520   : > { %5360 = vrcp.f32 %v1628_v56  ;;  %v1625_v62 = vpop.xlane.xlu1 %1624 }
 0x521   : > { %5362 = vrcp.f32 %v1625_v62 }
 0x522   : > { %v1783_v63 = vpop.permute.xlu0 %1782 }
 0x523   : > { %5047 = vmatprep.subr.msk.bf16.mxu0 %vm1439_vm0, %v1783_v63  ;;  %v1793_v0 = vsel %vm1439_vm0, %v1783_v63, 0 }
 0x524   : > { %4904 = vmatpush3.bf16.xpose.msra.mxu0 %v1793_v0 }
 0x525   : > { %5048 = vmatprep.subr.msk.bf16.mxu0 %vm1439_vm0, %v1785_v35 }
 0x527   : > { %v5357_v1 = vpop.eup %5356 }
 0x528   : > { %v1655_v37 = vmul.f32 %v5357_v1, %v5345_v21 }
 0x529   : > { %v5359_v29 = vpop.eup %5358 }
 0x52a   : > { %v5361_v2 = vpop.eup %5360  ;;  %v1652_v7 = vmul.f32 %v5359_v29, %v6422_v15 }
 0x52b   : > { %v5363_v4 = vpop.eup %5362  ;;  %v1654_v9 = vmul.f32 %v5361_v2, %v6420_v13 }
 0x52c   : > { %4906 = vmatpush3.bf16.xpose.msra.mxu0 %v1796_v44  ;;  %v1643_v6 = vpop.xlane.xlu1 %1642  ;;  %v1653_v8 = vmul.f32 %v5363_v4, %v5347_v25 }
 0x52d   : > { %v1661_v19 = vpack.c.bf16 %v1655_v37, %v1654_v9 }
 0x52e   : > { %v1660_v12 = vpack.c.bf16 %v1653_v8, %v1652_v7 }
 0x530   : > { %4891 = vmatprep.mubr.msk.bf16.mxu1 %vm1439_vm0, %v1660_v12  ;;  %v1637_v22 = vpop.xlane.xlu1 %1636 }
 0x531   : > { %4892 = vmatmul.mubr.msk.bf16.vlgmr.msra.gmra.mrb[16].mxu1 %vm1439_vm0, %v1661_v19 }
 0x532   : > { %4896 = vmatpush3.bf16.msra.mxu1 %v6345_v5 }
 0x533   : > { %4897 = vmatprep.subr.bf16.mxu1 %v6343_v3 }
 0x534   : > { %v1779_v21 = vpop.permute.xlu1 %1778 }
 0x535   : > { %4908 = vmatmul.mubr.msk.bf16.vlgmr.msra.gmra.mrb[16].mxu0 %vm1439_vm0, %v1779_v21 }
 0x536   : > { %4898 = vmatpush3.bf16.msra.mxu1 %v6343_v3 }
 0x538   : > { %v1858_v46 = vpop.permute.xlu1 %1857 }
 0x539   : > { %v1869_v48 = vsel %vm1439_vm0, %v1858_v46, 0 }
 0x553   : > { %v1640_v15 = vpop.xlane.xlu0 %1639 }
 0x554   : > { %5364 = vrcp.f32 %v1640_v15 }
 0x555   : > { %5366 = vrcp.f32 %v1637_v22 }
 0x556   : > { %5368 = vrcp.f32 %v1643_v6 }
 0x557   : > { %v1634_v13 = vpop.xlane.xlu0 %1633 }
 0x558   : > { %5370 = vrcp.f32 %v1634_v13 }
 0x55b   : > { %v1856_v23 = vpop.permute.xlu0 %1855 }
 0x55c   : > { %5049 = vmatprep.subr.msk.bf16.mxu1 %vm1439_vm0, %v1856_v23  ;;  %v1866_v43 = vsel %vm1439_vm0, %v1856_v23, 0 }
 0x55e   : > { %v5365_v24 = vpop.eup %5364 }
 0x55f   : > { %v5367_v25 = vpop.eup %5366  ;;  %v1658_v31 = vmul.f32 %v5365_v24, %v5353_v55  ;;  %v1850_v42 = vpop.permute.xlu0 %1849 }
 0x560   : > { %v5369_v30 = vpop.eup %5368  ;;  %v1657_v35 = vmul.f32 %v5367_v25, %v6435_v52  ;;  %v1852_v52 = vpop.permute.xlu1 %1851 }
 0x561   : > { %v1659_v38 = vmul.f32 %v5369_v30, %v6431_v40 }
 0x562   : > { %v5371_v20 = vpop.eup %5370 }
 0x563   : > { %v1656_v33 = vmul.f32 %v5371_v20, %v5355_v59  ;;  %v1663_v41 = vpack.c.bf16 %v1659_v38, %v1658_v31 }
 0x565   : > { %v1662_v39 = vpack.c.bf16 %v1657_v35, %v1656_v33 }
 0x567   : > { %4899 = vmatprep.mubr.msk.bf16.mxu1 %vm1439_vm0, %v1662_v39 }
 0x568   : > { %4900 = vmatmul.mubr.msk.bf16.vlgmr.msra.gmra.mrb[20].mxu1 %vm1439_vm0, %v1663_v41 }
 0x569   : > { %4912 = vmatpush3.bf16.xpose.msra.mxu1 %v1866_v43  ;;  %4915 = vmatprep.mubr.msk.bf16.mxu1 %vm1439_vm0, %v1850_v42 }
 0x56a   : > { %5050 = vmatprep.subr.msk.bf16.mxu1 %vm1439_vm0, %v1858_v46 }
 0x571   : > { %4914 = vmatpush3.bf16.xpose.msra.mxu1 %v1869_v48 }
 0x578   : > { %4916 = vmatmul.mubr.msk.bf16.vlgmr.msra.gmra.mrb[24].mxu1 %vm1439_vm0, %v1852_v52 }
 0x604   : > { %v6477_v40 = vpop.f32.mrb[16].mxu1 }
 0x605   : > { %v6479_v28 = vpop.f32.mrb[17].mxu1 }
 0x606   : > { %v6481_v51 = vpop.f32.mrb[18].mxu1 }
 0x607   : > { %v6483_v54 = vpop.f32.mrb[19].mxu1 }
 0x608   : > { %v4909_v55 = vpop.f32.mrb[16].mxu0 }
 0x609   : > { %v1832_v57 = vpop.f32.mrb[17].mxu0  ;;  %v1922_v61 = vsel %vm1438_vm1, %v4909_v55, -1e+30 }
 0x60a   : > { %v1920_v59 = vsel %vm1438_vm1, %v1832_v57, -1e+30  ;;  %v4910_v50 = vpop.f32.mrb[18].mxu0  ;;  %v1934_v0 = vsel %vm1439_vm0, %v1922_v61, -inf }
 0x60b   : > { %v1835_v56 = vpop.f32.mrb[19].mxu0  ;;  %v1928_v60 = vsel %vm1439_vm0, %v1920_v59, -inf  ;;  %v1923_v1 = vsel %vm1438_vm1, %v4910_v50, -1e+30 }
 0x60c   : > { %v1921_v62 = vsel %vm1438_vm1, %v1835_v56, -1e+30  ;;  %1929 = vmax.xlane.f32.xlu0 %v1928_v60  ;;  %v1937_v29 = vsel %vm1439_vm0, %v1923_v1, -inf }
 0x60d   : > { %v1931_v63 = vsel %vm1439_vm0, %v1921_v62, -inf }
 0x60e   : > { %1932 = vmax.xlane.f32.xlu1 %v1931_v63 }
 0x610   : > { %1935 = vmax.xlane.f32.xlu0 %v1934_v0 }
 0x614   : > { %1938 = vmax.xlane.f32.xlu0 %v1937_v29 }
 0x63b   : > { %v6497_v2 = vpop.f32.mrb[20].mxu1 }
 0x63c   : > { %v6499_v4 = vpop.f32.mrb[21].mxu1 }
 0x63d   : > { %v6501_v37 = vpop.f32.mrb[22].mxu1 }
 0x63e   : > { %v6503_v44 = vpop.f32.mrb[23].mxu1 }
 0x64b   : > { %v4917_v6 = vpop.f32.mrb[24].mxu1 }
 0x64c   : > { %v1905_v7 = vpop.f32.mrb[25].mxu1  ;;  %v1926_v22 = vsel %vm1438_vm1, %v4917_v6, -1e+30 }
 0x64d   : > { %v1924_v8 = vsel %vm1438_vm1, %v1905_v7, -1e+30  ;;  %v4918_v9 = vpop.f32.mrb[26].mxu1  ;;  %v1946_v23 = vsel %vm1439_vm0, %v1926_v22, -inf }
 0x64e   : > { %v1908_v12 = vpop.f32.mrb[27].mxu1  ;;  %v1940_v19 = vsel %vm1439_vm0, %v1924_v8, -inf  ;;  %v1927_v13 = vsel %vm1438_vm1, %v4918_v9, -1e+30 }
 0x64f   : > { %v1925_v21 = vsel %vm1438_vm1, %v1908_v12, -1e+30  ;;  %1941 = vmax.xlane.f32.xlu0 %v1940_v19  ;;  %v1949_v24 = vsel %vm1439_vm0, %v1927_v13, -inf }
 0x650   : > { %v1943_v15 = vsel %vm1439_vm0, %v1925_v21, -inf }
 0x651   : > { %1944 = vmax.xlane.f32.xlu1 %v1943_v15 }
 0x653   : > { %1947 = vmax.xlane.f32.xlu0 %v1946_v23 }
 0x655   : > { %1950 = vmax.xlane.f32.xlu1 %v1949_v24 }
 0x699   : > { %v1930_v25 = vpop.xlane.xlu0 %1929 }
 0x69a   : > { %v1952_v30 = vsub.f32 %v1920_v59, %v1930_v25 }
 0x69b   : > { %v1933_v20 = vpop.xlane.xlu1 %1932 }
 0x69c   : > { %v1960_v31 = vmul.f32 1.442695, %v1952_v30  ;;  %v1953_v33 = vsub.f32 %v1921_v62, %v1933_v20 }
 0x69d   : > { %v1936_v35 = vpop.xlane.xlu0 %1935 }
 0x69e   : > { %5372 = vpow2.f32 %v1960_v31  ;;  %v1962_v38 = vmul.f32 1.442695, %v1953_v33  ;;  %v1954_v39 = vsub.f32 %v1922_v61, %v1936_v35 }
 0x6a0   : > { %5374 = vpow2.f32 %v1962_v38  ;;  %v1964_v41 = vmul.f32 1.442695, %v1954_v39 }
 0x6a1   : > { %v1939_v42 = vpop.xlane.xlu0 %1938 }
 0x6a2   : > { %5376 = vpow2.f32 %v1964_v41  ;;  %v1955_v43 = vsub.f32 %v1923_v1, %v1939_v42 }
 0x6a4   : > { %v1966_v46 = vmul.f32 1.442695, %v1955_v43 }
 0x6a6   : > { %5378 = vpow2.f32 %v1966_v46 }
 0x6a8   : > { %v6517_v48 = vpop.eup %5372 }
 0x6a9   : > { %v1976_v52 = vsel %vm1439_vm0, %v6517_v48, 0.0 }
 0x6aa   : > { %v6521_v55 = vpop.eup %5374  ;;  %1977 = vadd.xlane.f32.xlu0 %v1976_v52 }
 0x6ab   : > { %v1979_v57 = vsel %vm1439_vm0, %v6521_v55, 0.0 }
 0x6ac   : > { %v6525_v59 = vpop.eup %5376  ;;  %1980 = vadd.xlane.f32.xlu1 %v1979_v57 }
 0x6ad   : > { %v1982_v50 = vsel %vm1439_vm0, %v6525_v59, 0.0 }
 0x6ae   : > { %1983 = vadd.xlane.f32.xlu0 %v1982_v50 }
 0x6b0   : > { %v6529_v56 = vpop.eup %5378 }
 0x6b1   : > { %v1985_v60 = vsel %vm1439_vm0, %v6529_v56, 0.0 }
 0x6b2   : > { %1986 = vadd.xlane.f32.xlu1 %v1985_v60 }
 0x6c3   : > { %2024 = vrot.lane.b32.xlu1 %v6327_v47, %s5801_s13 }
 0x6c4   : > { %2022 = vrot.lane.b32.xlu0 %v6329_v49, %s5801_s13 }
 0x6c7   : > { %2085 = vrot.lane.b32.xlu1 %v6345_v5, %s5801_s13 }
 0x6c8   : > { %2150 = vrot.lane.b32.xlu0 %v6319_v34, %s5802_s11 }
 0x6cb   : > { %2152 = vrot.lane.b32.xlu1 %v6337_v36, %s5802_s11 }
 0x6cc   : > { %2087 = vrot.lane.b32.xlu0 %v6343_v3, %s5801_s13 }
 0x6d0   : > { %2146 = vrot.lane.b32.xlu0 %v6317_v32, %s5802_s11 }
 0x6dc   : > { %v1942_v61 = vpop.xlane.xlu0 %1941 }
 0x6dd   : > { %v1956_v62 = vsub.f32 %v1924_v8, %v1942_v61 }
 0x6de   : > { %v1945_v63 = vpop.xlane.xlu1 %1944 }
 0x6df   : > { %v1968_v0 = vmul.f32 1.442695, %v1956_v62  ;;  %v1957_v7 = vsub.f32 %v1925_v21, %v1945_v63 }
 0x6e0   : > { %v1948_v1 = vpop.xlane.xlu0 %1947 }
 0x6e1   : > { %5380 = vpow2.f32 %v1968_v0  ;;  %v1958_v29 = vsub.f32 %v1926_v22, %v1948_v1  ;;  %v1970_v15 = vmul.f32 1.442695, %v1957_v7 }
 0x6e2   : > { %v1951_v6 = vpop.xlane.xlu1 %1950 }
 0x6e3   : > { %v1972_v9 = vmul.f32 1.442695, %v1958_v29  ;;  %v1959_v12 = vsub.f32 %v1927_v13, %v1951_v6 }
 0x6e5   : > { %5382 = vpow2.f32 %v1972_v9  ;;  %v1974_v19 = vmul.f32 1.442695, %v1959_v12 }
 0x6e7   : > { %5384 = vpow2.f32 %v1974_v19 }
 0x6e8   : > { %5386 = vpow2.f32 %v1970_v15 }
 0x6eb   : > { %v6547_v23 = vpop.eup %5380 }
 0x6ec   : > { %v1988_v24 = vsel %vm1439_vm0, %v6547_v23, 0.0 }
 0x6ef   : > { %v6551_v8 = vpop.eup %5382  ;;  %1989 = vadd.xlane.f32.xlu0 %v1988_v24 }
 0x6f0   : > { %v1994_v22 = vsel %vm1439_vm0, %v6551_v8, 0.0 }
 0x6f1   : > { %v6555_v25 = vpop.eup %5384  ;;  %1995 = vadd.xlane.f32.xlu1 %v1994_v22 }
 0x6f2   : > { %v1997_v21 = vsel %vm1439_vm0, %v6555_v25, 0.0  ;;  %v6559_v13 = vpop.eup %5386 }
 0x6f3   : > { %v1991_v30 = vsel %vm1439_vm0, %v6559_v13, 0.0 }
 0x6f5   : > { %1998 = vadd.xlane.f32.xlu1 %v1997_v21 }
 0x6f9   : > { %1992 = vadd.xlane.f32.xlu1 %v1991_v30 }
 0x705   : > { %2219 = vrot.lane.b32.xlu0 %v6353_v45, %s5802_s11 }
 0x709   : > { %2215 = vrot.lane.b32.xlu0 %v6351_v10, %s5802_s11 }
 0x70a   : > { %2148 = vrot.lane.b32.xlu1 %v6335_v58, %s5802_s11 }
 0x70e   : > { %2221 = vrot.lane.b32.xlu1 %v6369_v27, %s5802_s11 }
 0x712   : > { %2217 = vrot.lane.b32.xlu1 %v6367_v26, %s5802_s11 }
 0x737   : > { %v1978_v20 = vpop.xlane.xlu0 %1977 }
 0x738   : > { %5388 = vrcp.f32 %v1978_v20 }
 0x739   : > { %v1981_v31 = vpop.xlane.xlu1 %1980 }
 0x73a   : > { %5390 = vrcp.f32 %v1981_v31 }
 0x73b   : > { %v1984_v33 = vpop.xlane.xlu0 %1983 }
 0x73c   : > { %5392 = vrcp.f32 %v1984_v33 }
 0x73f   : > { %v2023_v35 = vpop.permute.xlu0 %2022  ;;  %v1987_v38 = vpop.xlane.xlu1 %1986 }
 0x740   : > { %5394 = vrcp.f32 %v1987_v38  ;;  %4919 = vmatprep.subr.bf16.mxu0 %v2023_v35 }
 0x741   : > { %4920 = vmatpush3.bf16.msra.mxu0 %v2023_v35 }
 0x742   : > { %v5389_v39 = vpop.eup %5388 }
 0x743   : > { %v2151_v41 = vpop.permute.xlu0 %2150  ;;  %v2025_v42 = vpop.permute.xlu1 %2024  ;;  %v2008_v46 = vmul.f32 %v5389_v39, %v6517_v48 }
 0x744   : > { %v5391_v43 = vpop.eup %5390  ;;  %4921 = vmatprep.subr.bf16.mxu0 %v2025_v42 }
 0x745   : > { %4922 = vmatpush3.bf16.msra.mxu0 %v2025_v42  ;;  %v2009_v52 = vmul.f32 %v5391_v43, %v6521_v55  ;;  %v2161_v55 = vsel %vm1439_vm0, %v2151_v41, 0 }
 0x746   : > { %5051 = vmatprep.subr.msk.bf16.mxu0 %vm1439_vm0, %v2151_v41  ;;  %v5393_v60 = vpop.eup %5392 }
 0x747   : > { %v2086_v57 = vpop.permute.xlu1 %2085  ;;  %v2016_v50 = vpack.c.bf16 %v2009_v52, %v2008_v46  ;;  %v2088_v61 = vpop.permute.xlu0 %2087  ;;  %v2010_v63 = vmul.f32 %v5393_v60, %v6525_v59 }
 0x748   : > { %4927 = vmatprep.subr.bf16.mxu1 %v2086_v57 }
 0x749   : > { %4923 = vmatprep.mubr.msk.bf16.mxu0 %vm1439_vm0, %v2016_v50  ;;  %4928 = vmatpush3.bf16.msra.mxu1 %v2086_v57 }
 0x74a   : > { %v5395_v62 = vpop.eup %5394  ;;  %4929 = vmatprep.subr.bf16.mxu1 %v2088_v61 }
 0x74b   : > { %v2011_v0 = vmul.f32 %v5395_v62, %v6529_v56  ;;  %v2147_v1 = vpop.permute.xlu0 %2146  ;;  %v2153_v29 = vpop.permute.xlu1 %2152 }
 0x74c   : > { %v2164_v6 = vsel %vm1439_vm0, %v2153_v29, 0 }
 0x74d   : > { %4930 = vmatpush3.bf16.msra.mxu1 %v2088_v61  ;;  %v2017_v48 = vpack.c.bf16 %v2011_v0, %v2010_v63 }
 0x74f   : > { %4924 = vmatmul.mubr.msk.bf16.vlgmr.msra.gmra.mrb[20].mxu0 %vm1439_vm0, %v2017_v48 }
 0x750   : > { %4936 = vmatpush3.bf16.xpose.msra.mxu0 %v2161_v55  ;;  %4939 = vmatprep.mubr.msk.bf16.mxu0 %vm1439_vm0, %v2147_v1 }
 0x751   : > { %5052 = vmatprep.subr.msk.bf16.mxu0 %vm1439_vm0, %v2153_v29 }
 0x758   : > { %4938 = vmatpush3.bf16.xpose.msra.mxu0 %v2164_v6 }
 0x77c   : > { %v1990_v7 = vpop.xlane.xlu0 %1989 }
 0x77e   : > { %v1996_v59 = vpop.xlane.xlu1 %1995 }
 0x780   : > { %v2220_v9 = vpop.permute.xlu0 %2219 }
 0x781   : > { %5053 = vmatprep.subr.msk.bf16.mxu1 %vm1439_vm0, %v2220_v9  ;;  %v2230_v39 = vsel %vm1439_vm0, %v2220_v9, 0 }
 0x782   : > { %v1999_v56 = vpop.xlane.xlu1 %1998 }
 0x783   : > { %5396 = vrcp.f32 %v1999_v56 }
 0x784   : > { %5398 = vrcp.f32 %v1990_v7  ;;  %v2216_v41 = vpop.permute.xlu0 %2215 }
 0x785   : > { %5400 = vrcp.f32 %v1996_v59 }
 0x786   : > { %v1993_v12 = vpop.xlane.xlu1 %1992 }
 0x787   : > { %5402 = vrcp.f32 %v1993_v12 }
 0x78a   : > { %v2149_v19 = vpop.permute.xlu1 %2148 }
 0x78b   : > { %4940 = vmatmul.mubr.msk.bf16.vlgmr.msra.gmra.mrb[24].mxu0 %vm1439_vm0, %v2149_v19 }
 0x78d   : > { %v5397_v15 = vpop.eup %5396 }
 0x78e   : > { %v5399_v24 = vpop.eup %5398  ;;  %v2015_v30 = vmul.f32 %v5397_v15, %v6555_v25  ;;  %v2222_v42 = vpop.permute.xlu1 %2221 }
 0x78f   : > { %v5401_v22 = vpop.eup %5400  ;;  %v2012_v20 = vmul.f32 %v5399_v24, %v6547_v23  ;;  %v2233_v23 = vsel %vm1439_vm0, %v2222_v42, 0 }
 0x790   : > { %v2014_v33 = vmul.f32 %v5401_v22, %v6551_v8 }
 0x791   : > { %v5403_v21 = vpop.eup %5402 }
 0x792   : > { %v2013_v31 = vmul.f32 %v5403_v21, %v6559_v13  ;;  %v2019_v38 = vpack.c.bf16 %v2015_v30, %v2014_v33  ;;  %v2218_v25 = vpop.permute.xlu1 %2217 }
 0x794   : > { %v2018_v35 = vpack.c.bf16 %v2013_v31, %v2012_v20 }
 0x796   : > { %4931 = vmatprep.mubr.msk.bf16.mxu1 %vm1439_vm0, %v2018_v35 }
 0x797   : > { %4932 = vmatmul.mubr.msk.bf16.vlgmr.msra.gmra.mrb[28].mxu1 %vm1439_vm0, %v2019_v38 }
 0x798   : > { %4944 = vmatpush3.bf16.xpose.msra.mxu1 %v2230_v39  ;;  %4947 = vmatprep.mubr.msk.bf16.mxu1 %vm1439_vm0, %v2216_v41 }
 0x799   : > { %5054 = vmatprep.subr.msk.bf16.mxu1 %vm1439_vm0, %v2222_v42 }
 0x7a0   : > { %4946 = vmatpush3.bf16.xpose.msra.mxu1 %v2233_v23 }
 0x7a7   : > { %4948 = vmatmul.mubr.msk.bf16.vlgmr.msra.gmra.mrb[32].mxu1 %vm1439_vm0, %v2218_v25 }
 0x822   : > { %v6597_v8 = vpop.f32.mrb[20].mxu0 }
 0x823   : > { %v6599_v13 = vpop.f32.mrb[21].mxu0 }
 0x824   : > { %v6601_v43 = vpop.f32.mrb[22].mxu0 }
 0x825   : > { %v5149_v46 = vpack.i.bf16 %v6601_v43, %v6597_v8  ;;  %v6605_v52 = vpop.f32.mrb[23].mxu0 }
 0x826   : > { %v5144_v57 = vpack.i.bf16 %v6605_v52, %v6599_v13 }
 0x85e   : > { %v4941_v50 = vpop.f32.mrb[24].mxu0 }
 0x85f   : > { %v2200_v60 = vpop.f32.mrb[25].mxu0  ;;  %v2286_v48 = vsel %vm1438_vm1, %v4941_v50, -1e+30 }
 0x860   : > { %v2284_v61 = vsel %vm1438_vm1, %v2200_v60, -1e+30  ;;  %v4942_v62 = vpop.f32.mrb[26].mxu0  ;;  %v2298_v29 = vsel %vm1439_vm0, %v2286_v48, -inf }
 0x861   : > { %v2203_v63 = vpop.f32.mrb[27].mxu0  ;;  %v2292_v0 = vsel %vm1439_vm0, %v2284_v61, -inf  ;;  %v2287_v6 = vsel %vm1438_vm1, %v4942_v62, -1e+30 }
 0x862   : > { %v2285_v55 = vsel %vm1438_vm1, %v2203_v63, -1e+30  ;;  %2293 = vmax.xlane.f32.xlu0 %v2292_v0  ;;  %v2301_v7 = vsel %vm1439_vm0, %v2287_v6, -inf }
 0x863   : > { %v2295_v1 = vsel %vm1439_vm0, %v2285_v55, -inf }
 0x864   : > { %2296 = vmax.xlane.f32.xlu1 %v2295_v1 }
 0x866   : > { %2299 = vmax.xlane.f32.xlu0 %v2298_v29 }
 0x86a   : > { %v6621_v59 = vpop.f32.mrb[28].mxu1  ;;  %2302 = vmax.xlane.f32.xlu0 %v2301_v7 }
 0x86b   : > { %v6623_v9 = vpop.f32.mrb[29].mxu1 }
 0x86c   : > { %v6625_v56 = vpop.f32.mrb[30].mxu1 }
 0x86d   : > { %v5179_v12 = vpack.i.bf16 %v6625_v56, %v6621_v59  ;;  %v6629_v19 = vpop.f32.mrb[31].mxu1 }
 0x86e   : > { %v5174_v15 = vpack.i.bf16 %v6629_v19, %v6623_v9 }
 0x87a   : > { %v4949_v24 = vpop.f32.mrb[32].mxu1 }
 0x87b   : > { %v2269_v22 = vpop.f32.mrb[33].mxu1  ;;  %v2290_v33 = vsel %vm1438_vm1, %v4949_v24, -1e+30 }
 0x87c   : > { %v2288_v21 = vsel %vm1438_vm1, %v2269_v22, -1e+30  ;;  %v4950_v30 = vpop.f32.mrb[34].mxu1  ;;  %v2310_v41 = vsel %vm1439_vm0, %v2290_v33, -inf }
 0x87d   : > { %v2272_v20 = vpop.f32.mrb[35].mxu1  ;;  %v2304_v31 = vsel %vm1439_vm0, %v2288_v21, -inf  ;;  %v2291_v39 = vsel %vm1438_vm1, %v4950_v30, -1e+30 }
 0x87e   : > { %v2289_v35 = vsel %vm1438_vm1, %v2272_v20, -1e+30  ;;  %2305 = vmax.xlane.f32.xlu0 %v2304_v31  ;;  %v2313_v42 = vsel %vm1439_vm0, %v2291_v39, -inf }
 0x87f   : > { %v2307_v38 = vsel %vm1439_vm0, %v2289_v35, -inf }
 0x880   : > { %2308 = vmax.xlane.f32.xlu1 %v2307_v38 }
 0x882   : > { %2311 = vmax.xlane.f32.xlu0 %v2310_v41 }
 0x884   : > { %2314 = vmax.xlane.f32.xlu1 %v2313_v42 }
 0x8ef   : > { %v2294_v23 = vpop.xlane.xlu0 %2293 }
 0x8f0   : > { %v2316_v25 = vsub.f32 %v2284_v61, %v2294_v23 }
 0x8f1   : > { %v2297_v50 = vpop.xlane.xlu1 %2296 }
 0x8f2   : > { %v2324_v60 = vmul.f32 1.442695, %v2316_v25  ;;  %v2317_v62 = vsub.f32 %v2285_v55, %v2297_v50 }
 0x8f3   : > { %v2300_v63 = vpop.xlane.xlu0 %2299 }
 0x8f4   : > { %5404 = vpow2.f32 %v2324_v60  ;;  %v2326_v0 = vmul.f32 1.442695, %v2317_v62  ;;  %v2318_v1 = vsub.f32 %v2286_v48, %v2300_v63 }
 0x8f6   : > { %5406 = vpow2.f32 %v2326_v0  ;;  %v2328_v29 = vmul.f32 1.442695, %v2318_v1 }
 0x8f7   : > { %v2303_v7 = vpop.xlane.xlu0 %2302 }
 0x8f8   : > { %5408 = vpow2.f32 %v2328_v29  ;;  %v2319_v24 = vsub.f32 %v2287_v6, %v2303_v7 }
 0x8fa   : > { %v2330_v22 = vmul.f32 1.442695, %v2319_v24 }
 0x8fc   : > { %5410 = vpow2.f32 %v2330_v22 }
 0x8fe   : > { %v6645_v30 = vpop.eup %5404 }
 0x8ff   : > { %v2340_v20 = vsel %vm1439_vm0, %v6645_v30, 0.0 }
 0x900   : > { %v6649_v61 = vpop.eup %5406  ;;  %2341 = vadd.xlane.f32.xlu0 %v2340_v20 }
 0x901   : > { %v2343_v55 = vsel %vm1439_vm0, %v6649_v61, 0.0 }
 0x902   : > { %v6653_v31 = vpop.eup %5408  ;;  %2344 = vadd.xlane.f32.xlu1 %v2343_v55 }
 0x903   : > { %v2346_v48 = vsel %vm1439_vm0, %v6653_v31, 0.0 }
 0x904   : > { %2347 = vadd.xlane.f32.xlu0 %v2346_v48 }
 0x906   : > { %v6657_v6 = vpop.eup %5410 }
 0x907   : > { %v2349_v38 = vsel %vm1439_vm0, %v6657_v6, 0.0 }
 0x908   : > { %2350 = vadd.xlane.f32.xlu1 %v2349_v38 }
 0x90b   : > { %v2306_v41 = vpop.xlane.xlu0 %2305 }
 0x90c   : > { %v2320_v25 = vsub.f32 %v2288_v21, %v2306_v41 }
 0x90d   : > { %v2309_v42 = vpop.xlane.xlu1 %2308 }
 0x90e   : > { %v2332_v62 = vmul.f32 1.442695, %v2320_v25 }
 0x90f   : > { %v2312_v23 = vpop.xlane.xlu0 %2311 }
 0x910   : > { %v2322_v50 = vsub.f32 %v2290_v33, %v2312_v23  ;;  %5412 = vpow2.f32 %v2332_v62 }
 0x911   : > { %v2315_v60 = vpop.xlane.xlu1 %2314 }
 0x912   : > { %v2336_v63 = vmul.f32 1.442695, %v2322_v50  ;;  %v2323_v0 = vsub.f32 %v2291_v39, %v2315_v60 }
 0x914   : > { %5414 = vpow2.f32 %v2336_v63  ;;  %v2338_v1 = vmul.f32 1.442695, %v2323_v0 }
 0x916   : > { %5416 = vpow2.f32 %v2338_v1 }
 0x919   : > { %2386 = vrot.lane.b32.xlu1 %v6327_v47, %s5802_s11 }
 0x91a   : > { %2384 = vrot.lane.b32.xlu0 %v6329_v49, %s5802_s11  ;;  %v6675_v29 = vpop.eup %5412 }
 0x91d   : > { %2445 = vrot.lane.b32.xlu1 %v6345_v5, %s5802_s11 }
 0x91e   : > { %2510 = vrot.lane.b32.xlu0 %v6319_v34, %s5803_s9  ;;  %v2321_v34 = vsub.f32 %v2289_v35, %v2309_v42  ;;  %v6677_v7 = vpop.eup %5414 }
 0x91f   : > { %v2358_v21 = vsel %vm1439_vm0, %v6677_v7, 0.0 }
 0x920   : > { %v6683_v33 = vpop.eup %5416 }
 0x921   : > { %2512 = vrot.lane.b32.xlu1 %v6337_v36, %s5803_s9  ;;  %v2334_v36 = vmul.f32 1.442695, %v2321_v34  ;;  %v2361_v35 = vsel %vm1439_vm0, %v6683_v33, 0.0 }
 0x922   : > { %2447 = vrot.lane.b32.xlu0 %v6343_v3, %s5802_s11 }
 0x923   : > { %5418 = vpow2.f32 %v2334_v36 }
 0x926   : > { %2506 = vrot.lane.b32.xlu0 %v6317_v32, %s5803_s9  ;;  %v2352_v32 = vsel %vm1439_vm0, %v6675_v29, 0.0 }
 0x92d   : > { %v6687_v39 = vpop.eup %5418 }
 0x92e   : > { %v2355_v24 = vsel %vm1439_vm0, %v6687_v39, 0.0 }
 0x945   : > { %2353 = vadd.xlane.f32.xlu0 %v2352_v32  ;;  %2359 = vadd.xlane.f32.xlu1 %v2358_v21 }
 0x949   : > { %2362 = vadd.xlane.f32.xlu1 %v2361_v35 }
 0x94d   : > { %2356 = vadd.xlane.f32.xlu1 %v2355_v24 }
 0x95b   : > { %2579 = vrot.lane.b32.xlu0 %v6353_v45, %s5803_s9 }
 0x95e   : > { %2508 = vrot.lane.b32.xlu1 %v6335_v58, %s5803_s9 }
 0x95f   : > { %2575 = vrot.lane.b32.xlu0 %v6351_v10, %s5803_s9 }
 0x962   : > { %2581 = vrot.lane.b32.xlu1 %v6369_v27, %s5803_s9 }
 0x966   : > { %2577 = vrot.lane.b32.xlu1 %v6367_v26, %s5803_s9 }
 0x98d   : > { %v2342_v22 = vpop.xlane.xlu0 %2341 }
 0x98e   : > { %5420 = vrcp.f32 %v2342_v22 }
 0x98f   : > { %v2345_v20 = vpop.xlane.xlu1 %2344 }
 0x990   : > { %5422 = vrcp.f32 %v2345_v20 }
 0x991   : > { %v2348_v55 = vpop.xlane.xlu0 %2347 }
 0x992   : > { %5424 = vrcp.f32 %v2348_v55 }
 0x995   : > { %v2385_v48 = vpop.permute.xlu0 %2384  ;;  %v2351_v45 = vpop.xlane.xlu1 %2350 }
 0x996   : > { %5426 = vrcp.f32 %v2351_v45  ;;  %4951 = vmatprep.subr.bf16.mxu0 %v2385_v48 }
 0x997   : > { %4952 = vmatpush3.bf16.msra.mxu0 %v2385_v48 }
 0x998   : > { %v5421_v58 = vpop.eup %5420 }
 0x999   : > { %v2511_v38 = vpop.permute.xlu0 %2510  ;;  %v2387_v10 = vpop.permute.xlu1 %2386  ;;  %v2372_v27 = vmul.f32 %v5421_v58, %v6645_v30 }
 0x99a   : > { %v5423_v41 = vpop.eup %5422  ;;  %4953 = vmatprep.subr.bf16.mxu0 %v2387_v10 }
 0x99b   : > { %4954 = vmatpush3.bf16.msra.mxu0 %v2387_v10  ;;  %v2373_v26 = vmul.f32 %v5423_v41, %v6649_v61  ;;  %v2521_v61 = vsel %vm1439_vm0, %v2511_v38, 0 }
 0x99c   : > { %5055 = vmatprep.subr.msk.bf16.mxu0 %vm1439_vm0, %v2511_v38  ;;  %v5425_v25 = vpop.eup %5424 }
 0x99d   : > { %v2446_v42 = vpop.permute.xlu1 %2445  ;;  %v2380_v23 = vpack.c.bf16 %v2373_v26, %v2372_v27  ;;  %v2448_v50 = vpop.permute.xlu0 %2447  ;;  %v2374_v62 = vmul.f32 %v5425_v25, %v6653_v31 }
 0x99e   : > { %4959 = vmatprep.subr.bf16.mxu1 %v2446_v42 }
 0x99f   : > { %4955 = vmatprep.mubr.msk.bf16.mxu0 %vm1439_vm0, %v2380_v23  ;;  %4960 = vmatpush3.bf16.msra.mxu1 %v2446_v42 }
 0x9a0   : > { %v5427_v60 = vpop.eup %5426  ;;  %4961 = vmatprep.subr.bf16.mxu1 %v2448_v50 }
 0x9a1   : > { %v2375_v63 = vmul.f32 %v5427_v60, %v6657_v6  ;;  %v2507_v0 = vpop.permute.xlu0 %2506  ;;  %v2513_v34 = vpop.permute.xlu1 %2512 }
 0x9a2   : > { %v2524_v1 = vsel %vm1439_vm0, %v2513_v34, 0 }
 0x9a3   : > { %4962 = vmatpush3.bf16.msra.mxu1 %v2448_v50  ;;  %v2381_v30 = vpack.c.bf16 %v2375_v63, %v2374_v62 }
 0x9a5   : > { %4956 = vmatmul.mubr.msk.bf16.vlgmr.msra.gmra.mrb[28].mxu0 %vm1439_vm0, %v2381_v30 }
 0x9a6   : > { %4968 = vmatpush3.bf16.xpose.msra.mxu0 %v2521_v61  ;;  %4971 = vmatprep.mubr.msk.bf16.mxu0 %vm1439_vm0, %v2507_v0 }
 0x9a7   : > { %5056 = vmatprep.subr.msk.bf16.mxu0 %vm1439_vm0, %v2513_v34 }
 0x9ae   : > { %4970 = vmatpush3.bf16.xpose.msra.mxu0 %v2524_v1 }
 0x9d2   : > { %v2354_v36 = vpop.xlane.xlu0 %2353  ;;  %v2360_v31 = vpop.xlane.xlu1 %2359 }
 0x9d6   : > { %v2580_v32 = vpop.permute.xlu0 %2579  ;;  %v2363_v6 = vpop.xlane.xlu1 %2362 }
 0x9d7   : > { %5057 = vmatprep.subr.msk.bf16.mxu1 %vm1439_vm0, %v2580_v32  ;;  %5428 = vrcp.f32 %v2363_v6  ;;  %v2590_v27 = vsel %vm1439_vm0, %v2580_v32, 0 }
 0x9d8   : > { %5430 = vrcp.f32 %v2354_v36 }
 0x9d9   : > { %5432 = vrcp.f32 %v2360_v31 }
 0x9da   : > { %v2357_v21 = vpop.xlane.xlu1 %2356  ;;  %v2576_v26 = vpop.permute.xlu0 %2575 }
 0x9db   : > { %5434 = vrcp.f32 %v2357_v21 }
 0x9de   : > { %v2509_v35 = vpop.permute.xlu1 %2508 }
 0x9df   : > { %4972 = vmatmul.mubr.msk.bf16.vlgmr.msra.gmra.mrb[32].mxu0 %vm1439_vm0, %v2509_v35 }
 0x9e1   : > { %v5429_v24 = vpop.eup %5428 }
 0x9e2   : > { %v5431_v22 = vpop.eup %5430  ;;  %v2379_v48 = vmul.f32 %v5429_v24, %v6683_v33  ;;  %v2582_v42 = vpop.permute.xlu1 %2581 }
 0x9e3   : > { %v5433_v20 = vpop.eup %5432  ;;  %v2376_v45 = vmul.f32 %v5431_v22, %v6675_v29  ;;  %v2593_v29 = vsel %vm1439_vm0, %v2582_v42, 0 }
 0x9e4   : > { %v2378_v38 = vmul.f32 %v5433_v20, %v6677_v7 }
 0x9e5   : > { %v5435_v55 = vpop.eup %5434 }
 0x9e6   : > { %v2377_v58 = vmul.f32 %v5435_v55, %v6687_v39  ;;  %v2383_v41 = vpack.c.bf16 %v2379_v48, %v2378_v38  ;;  %v2578_v33 = vpop.permute.xlu1 %2577 }
 0x9e8   : > { %v2382_v10 = vpack.c.bf16 %v2377_v58, %v2376_v45 }
 0x9ea   : > { %4963 = vmatprep.mubr.msk.bf16.mxu1 %vm1439_vm0, %v2382_v10 }
 0x9eb   : > { %4964 = vmatmul.mubr.msk.bf16.vlgmr.msra.gmra.mrb[36].mxu1 %vm1439_vm0, %v2383_v41 }
 0x9ec   : > { %4976 = vmatpush3.bf16.xpose.msra.mxu1 %v2590_v27  ;;  %4979 = vmatprep.mubr.msk.bf16.mxu1 %vm1439_vm0, %v2576_v26 }
 0x9ed   : > { %5058 = vmatprep.subr.msk.bf16.mxu1 %vm1439_vm0, %v2582_v42 }
 0x9f4   : > { %4978 = vmatpush3.bf16.xpose.msra.mxu1 %v2593_v29 }
 0x9fb   : > { %4980 = vmatmul.mubr.msk.bf16.vlgmr.msra.gmra.mrb[40].mxu1 %vm1439_vm0, %v2578_v33 }
 0xa78   : > { %v6725_v7 = vpop.f32.mrb[28].mxu0 }
 0xa79   : > { %v6727_v39 = vpop.f32.mrb[29].mxu0 }
 0xa7a   : > { %v6729_v23 = vpop.f32.mrb[30].mxu0 }
 0xa7b   : > { %v5159_v25 = vpack.i.bf16 %v6729_v23, %v6725_v7  ;;  %v6733_v50 = vpop.f32.mrb[31].mxu0 }
 0xa7c   : > { %v5154_v60 = vpack.i.bf16 %v6733_v50, %v6727_v39 }
 0xab2   : > { %v4973_v62 = vpop.f32.mrb[32].mxu0 }
 0xab3   : > { %v2560_v63 = vpop.f32.mrb[33].mxu0  ;;  %v2646_v1 = vsel %vm1438_vm1, %v4973_v62, -1e+30 }
 0xab4   : > { %v2644_v30 = vsel %vm1438_vm1, %v2560_v63, -1e+30  ;;  %v4974_v61 = vpop.f32.mrb[34].mxu0  ;;  %v2658_v32 = vsel %vm1439_vm0, %v2646_v1, -inf }
 0xab5   : > { %v2563_v0 = vpop.f32.mrb[35].mxu0  ;;  %v2652_v34 = vsel %vm1439_vm0, %v2644_v30, -inf  ;;  %v2647_v6 = vsel %vm1438_vm1, %v4974_v61, -1e+30 }
 0xab6   : > { %v2645_v36 = vsel %vm1438_vm1, %v2563_v0, -1e+30  ;;  %2653 = vmax.xlane.f32.xlu0 %v2652_v34  ;;  %v2661_v21 = vsel %vm1439_vm0, %v2647_v6, -inf }
 0xab7   : > { %v2655_v31 = vsel %vm1439_vm0, %v2645_v36, -inf }
 0xab8   : > { %2656 = vmax.xlane.f32.xlu1 %v2655_v31 }
 0xaba   : > { %2659 = vmax.xlane.f32.xlu0 %v2658_v32 }
 0xabe   : > { %v6749_v35 = vpop.f32.mrb[36].mxu1  ;;  %2662 = vmax.xlane.f32.xlu0 %v2661_v21 }
 0xabf   : > { %v6751_v24 = vpop.f32.mrb[37].mxu1 }
 0xac0   : > { %v6753_v22 = vpop.f32.mrb[38].mxu1 }
 0xac1   : > { %v5189_v20 = vpack.i.bf16 %v6753_v22, %v6749_v35  ;;  %v6757_v55 = vpop.f32.mrb[39].mxu1 }
 0xac2   : > { %v5184_v48 = vpack.i.bf16 %v6757_v55, %v6751_v24 }
 0xace   : > { %v4981_v45 = vpop.f32.mrb[40].mxu1 }
 0xacf   : > { %v2629_v58 = vpop.f32.mrb[41].mxu1  ;;  %v2650_v26 = vsel %vm1438_vm1, %v4981_v45, -1e+30 }
 0xad0   : > { %v2648_v38 = vsel %vm1438_vm1, %v2629_v58, -1e+30  ;;  %v4982_v10 = vpop.f32.mrb[42].mxu1  ;;  %v2670_v62 = vsel %vm1439_vm0, %v2650_v26, -inf }
 0xad1   : > { %v2664_v41 = vsel %vm1439_vm0, %v2648_v38, -inf  ;;  %v2632_v27 = vpop.f32.mrb[43].mxu1  ;;  %v2651_v33 = vsel %vm1438_vm1, %v4982_v10, -1e+30 }
 0xad2   : > { %v2649_v42 = vsel %vm1438_vm1, %v2632_v27, -1e+30  ;;  %2665 = vmax.xlane.f32.xlu0 %v2664_v41  ;;  %v2673_v63 = vsel %vm1439_vm0, %v2651_v33, -inf }
 0xad3   : > { %v2667_v29 = vsel %vm1439_vm0, %v2649_v42, -inf }
 0xad4   : > { %2668 = vmax.xlane.f32.xlu1 %v2667_v29 }
 0xad6   : > { %2671 = vmax.xlane.f32.xlu0 %v2670_v62 }
 0xad8   : > { %2674 = vmax.xlane.f32.xlu1 %v2673_v63 }
 0xb43   : > { %v2654_v61 = vpop.xlane.xlu0 %2653 }
 0xb44   : > { %v2676_v0 = vsub.f32 %v2644_v30, %v2654_v61 }
 0xb45   : > { %v2657_v34 = vpop.xlane.xlu1 %2656 }
 0xb46   : > { %v2684_v31 = vmul.f32 1.442695, %v2676_v0  ;;  %v2677_v32 = vsub.f32 %v2645_v36, %v2657_v34 }
 0xb47   : > { %v2660_v21 = vpop.xlane.xlu0 %2659 }
 0xb48   : > { %5436 = vpow2.f32 %v2684_v31  ;;  %v2686_v45 = vmul.f32 1.442695, %v2677_v32  ;;  %v2678_v58 = vsub.f32 %v2646_v1, %v2660_v21 }
 0xb4a   : > { %5438 = vpow2.f32 %v2686_v45  ;;  %v2688_v41 = vmul.f32 1.442695, %v2678_v58 }
 0xb4b   : > { %v2663_v17 = vpop.xlane.xlu0 %2662 }
 0xb4c   : > { %5440 = vpow2.f32 %v2688_v41  ;;  %v2679_v10 = vsub.f32 %v2647_v6, %v2663_v17 }
 0xb4e   : > { %v2690_v27 = vmul.f32 1.442695, %v2679_v10 }
 0xb50   : > { %5442 = vpow2.f32 %v2690_v27 }
 0xb52   : > { %v5437_v29 = vpop.eup %5436 }
 0xb53   : > { %v2700_v62 = vsel %vm1439_vm0, %v5437_v29, 0.0 }
 0xb54   : > { %v5439_v63 = vpop.eup %5438  ;;  %2701 = vadd.xlane.f32.xlu0 %v2700_v62 }
 0xb55   : > { %v2703_v30 = vsel %vm1439_vm0, %v5439_v63, 0.0 }
 0xb56   : > { %v6775_v61 = vpop.eup %5440  ;;  %2704 = vadd.xlane.f32.xlu1 %v2703_v30 }
 0xb57   : > { %v2706_v1 = vsel %vm1439_vm0, %v6775_v61, 0.0 }
 0xb58   : > { %2707 = vadd.xlane.f32.xlu0 %v2706_v1 }
 0xb5a   : > { %v6779_v36 = vpop.eup %5442 }
 0xb5b   : > { %v2709_v6 = vsel %vm1439_vm0, %v6779_v36, 0.0 }
 0xb5c   : > { %2710 = vadd.xlane.f32.xlu1 %v2709_v6 }
 0xb5f   : > { %v2666_v0 = vpop.xlane.xlu0 %2665 }
 0xb60   : > { %v2680_v34 = vsub.f32 %v2648_v38, %v2666_v0 }
 0xb61   : > { %v2669_v38 = vpop.xlane.xlu1 %2668 }
 0xb62   : > { %v2692_v21 = vmul.f32 1.442695, %v2680_v34  ;;  %v2681_v62 = vsub.f32 %v2649_v42, %v2669_v38 }
 0xb63   : > { %v2672_v31 = vpop.xlane.xlu0 %2671 }
 0xb64   : > { %v2682_v32 = vsub.f32 %v2650_v26, %v2672_v31  ;;  %v2694_v30 = vmul.f32 1.442695, %v2681_v62 }
 0xb65   : > { %v2675_v10 = vpop.xlane.xlu1 %2674 }
 0xb66   : > { %v2696_v45 = vmul.f32 1.442695, %v2682_v32  ;;  %v2683_v27 = vsub.f32 %v2651_v33, %v2675_v10 }
 0xb68   : > { %5444 = vpow2.f32 %v2696_v45 }
 0xb69   : > { %5446 = vpow2.f32 %v2692_v21 }
 0xb6d   : > { %2746 = vrot.lane.b32.xlu1 %v6327_v47, %s5803_s9  ;;  %v2698_v47 = vmul.f32 1.442695, %v2683_v27 }
 0xb6f   : > { %5448 = vpow2.f32 %v2698_v47 }
 0xb70   : > { %5450 = vpow2.f32 %v2694_v30  ;;  %v5236_v30 = vld [vmem:[%s6187_s20] sm:$0xff]  }
 0xb71   : > { %2805 = vrot.lane.b32.xlu1 %v6345_v5, %s5803_s9 }
 0xb72   : > { %v6787_v58 = vpop.eup %5444 }
 0xb73   : > { %v2718_v41 = vsel %vm1439_vm0, %v6787_v58, 0.0  ;;  %v6791_v17 = vpop.eup %5446 }
 0xb74   : > { %2719 = vadd.xlane.f32.xlu0 %v2718_v41  ;;  %v2712_v26 = vsel %vm1439_vm0, %v6791_v17, 0.0 }
 0xb78   : > { %2713 = vadd.xlane.f32.xlu0 %v2712_v26 }
 0xb79   : > { %v5449_v5 = vpop.eup %5448 }
 0xb7a   : > { %v2721_v1 = vsel %vm1439_vm0, %v5449_v5, 0.0  ;;  %v5451_v6 = vpop.eup %5450 }
 0xb7b   : > { %v2715_v42 = vsel %vm1439_vm0, %v5451_v6, 0.0 }
 0xb8e   : > { %2744 = vrot.lane.b32.xlu0 %v6329_v49, %s5803_s9 }
 0xb92   : > { %5145 = vrot.lane.b32.xlu0 %v5144_v57, %s5803_s9 }
 0xb95   : > { %2722 = vadd.xlane.f32.xlu1 %v2721_v1  ;;  %v5237_v1 = vld [vmem:[%s6187_s20 + $0x8] sm:$0xff]  }
 0xb96   : > { %5155 = vrot.lane.b32.xlu0 %v5154_v60, %s5802_s11 }
 0xb99   : > { %2716 = vadd.xlane.f32.xlu1 %v2715_v42  ;;  %v5242_v42 = vld [vmem:[%s6187_s20 + $0x30] sm:$0xff]  }
 0xbaa   : > { %2807 = vrot.lane.b32.xlu1 %v6343_v3, %s5803_s9 }
 0xbae   : > { %5150 = vrot.lane.b32.xlu1 %v5149_v46, %s5803_s9 }
 0xbb2   : > { %5160 = vrot.lane.b32.xlu1 %v5159_v25, %s5802_s11 }
 0xbe1   : > { %v2702_v49 = vpop.xlane.xlu0 %2701 }
 0xbe2   : > { %5452 = vrcp.f32 %v2702_v49  ;;  %v5243_v49 = vld [vmem:[%s6187_s20 + $0x38] sm:$0xff]  }
 0xbe3   : > { %v2705_v13 = vpop.xlane.xlu1 %2704 }
 0xbe4   : > { %5454 = vrcp.f32 %v2705_v13 }
 0xbe5   : > { %v2708_v8 = vpop.xlane.xlu0 %2707 }
 0xbe9   : > { %v2711_v52 = vpop.xlane.xlu1 %2710 }
 0xbea   : > { %5456 = vrcp.f32 %v2711_v52 }
 0xbeb   : > { %5458 = vrcp.f32 %v2708_v8 }
 0xbec   : > { %v5453_v57 = vpop.eup %5452 }
 0xbed   : > { %v2747_v39 = vpop.permute.xlu1 %2746  ;;  %v2732_v60 = vmul.f32 %v5453_v57, %v5437_v29 }
 0xbee   : > { %v5455_v50 = vpop.eup %5454 }
 0xbef   : > { %v2733_v3 = vmul.f32 %v5455_v50, %v5439_v63 }
 0xbf1   : > { %v2806_v33 = vpop.permute.xlu1 %2805  ;;  %v2740_v0 = vpack.c.bf16 %v2733_v3, %v2732_v60 }
 0xbf2   : > { %4991 = vmatprep.subr.bf16.mxu1 %v2806_v33 }
 0xbf3   : > { %4987 = vmatprep.mubr.msk.bf16.mxu0 %vm1439_vm0, %v2740_v0  ;;  %4992 = vmatpush3.bf16.msra.mxu1 %v2806_v33 }
 0xbf4   : > { %v5457_v7 = vpop.eup %5456 }
 0xbf5   : > { %v5459_v25 = vpop.eup %5458  ;;  %v2735_v34 = vmul.f32 %v5457_v7, %v6779_v36 }
 0xbf6   : > { %v2734_v29 = vmul.f32 %v5459_v25, %v6775_v61 }
 0xbf8   : > { %v2741_v63 = vpack.c.bf16 %v2735_v34, %v2734_v29 }
 0xc01   : > { %v2720_v43 = vpop.xlane.xlu0 %2719 }
 0xc05   : > { %v2714_v46 = vpop.xlane.xlu0 %2713 }
 0xc09   : > { %v2745_v23 = vpop.permute.xlu0 %2744 }
 0xc0a   : > { %4983 = vmatprep.subr.bf16.mxu0 %v2745_v23 }
 0xc0b   : > { %4984 = vmatpush3.bf16.msra.mxu0 %v2745_v23 }
 0xc0c   : > { %4985 = vmatprep.subr.bf16.mxu0 %v2747_v39 }
 0xc0d   : > { %v5146_v19 = vpop.permute.xlu0 %5145 }
 0xc0e   : > { %v5148_v35 = vunpack.i.h.bf16 %v5146_v19  ;;  %v5147_v22 = vunpack.i.l.bf16 %v5146_v19 }
 0xc0f   : > { %4986 = vmatpush3.bf16.msra.mxu0 %v2747_v39 }
 0xc10   : > { %4999 = vmatprep.subr.bf16.mxu0 %v5236_v30  ;;  %v2963_v7 = vsel %vm1439_vm0, %v6483_v54, %v5148_v35  ;;  %v2962_v23 = vsel %vm1439_vm0, %v6479_v28, %v5147_v22 }
 0xc12   : > { %4988 = vmatmul.mubr.msk.bf16.vlgmr.msra.gmra.mrb[36].mxu0 %vm1439_vm0, %v2741_v63 }
 0xc13   : > { %5000 = vmatpush3.bf16.msra.mxu0 %v5236_v30 }
 0xc14   : > { %5001 = vmatprep.subr.bf16.mxu0 %v5237_v1 }
 0xc17   : > { %5002 = vmatpush3.bf16.msra.mxu0 %v5237_v1 }
 0xc22   : > { %v2723_v31 = vpop.xlane.xlu1 %2722 }
 0xc23   : > { %5460 = vrcp.f32 %v2723_v31 }
 0xc24   : > { %5462 = vrcp.f32 %v2714_v46 }
 0xc25   : > { %5464 = vrcp.f32 %v2720_v43 }
 0xc26   : > { %v2717_v32 = vpop.xlane.xlu1 %2716 }
 0xc27   : > { %5466 = vrcp.f32 %v2717_v32 }
 0xc2a   : > { %v2808_v21 = vpop.permute.xlu1 %2807 }
 0xc2b   : > { %4993 = vmatprep.subr.bf16.mxu1 %v2808_v21 }
 0xc2c   : > { %4994 = vmatpush3.bf16.msra.mxu1 %v2808_v21 }
 0xc2d   : > { %v5461_v45 = vpop.eup %5460 }
 0xc2e   : > { %v5463_v36 = vpop.eup %5462  ;;  %v2739_v38 = vmul.f32 %v5461_v45, %v5449_v5  ;;  %v5240_v5 = vld [vmem:[%s6187_s20 + $0x20] sm:$0xff]   ;;  %v5151_v9 = vpop.permute.xlu1 %5150 }
 0xc2f   : > { %v5465_v41 = vpop.eup %5464  ;;  %v2736_v26 = vmul.f32 %v5463_v36, %v6791_v17  ;;  %v5238_v17 = vld [vmem:[%s6187_s20 + $0x10] sm:$0xff]   ;;  %v5153_v8 = vunpack.i.h.bf16 %v5151_v9  ;;  %v5152_v43 = vunpack.i.l.bf16 %v5151_v9 }
 0xc30   : > { %v2738_v27 = vmul.f32 %v5465_v41, %v6787_v58  ;;  %5003 = vmatprep.subr.bf16.mxu0 %v5238_v17  ;;  %v5239_v58 = vld [vmem:[%s6187_s20 + $0x18] sm:$0xff]  }
 0xc31   : > { %v5467_v61 = vpop.eup %5466  ;;  %5004 = vmatpush3.bf16.msra.mxu0 %v5238_v17  ;;  %v2965_v34 = vsel %vm1439_vm0, %v6481_v51, %v5153_v8  ;;  %v2964_v29 = vsel %vm1439_vm0, %v6477_v40, %v5152_v43  ;;  %v4564_v8 = vld [vmem:[%s7357_s14] ss:$0 sm:$0xff] }
 0xc32   : > { %v2737_v10 = vmul.f32 %v5467_v61, %v5451_v6  ;;  %v2743_v47 = vpack.c.bf16 %v2739_v38, %v2738_v27  ;;  %5005 = vmatprep.subr.bf16.mxu0 %v5239_v58  ;;  %v5241_v6 = vld [vmem:[%s6187_s20 + $0x28] sm:$0xff]   ;;  %s7358_s20 = scalar_lea.vmem [#allocation9], %s6139_s16 }
 0xc34   : > { %v2742_v62 = vpack.c.bf16 %v2737_v10, %v2736_v26 }
 0xc35   : > { %5006 = vmatpush3.bf16.msra.mxu0 %v5239_v58 }
 0xc36   : > { %4995 = vmatprep.mubr.msk.bf16.mxu1 %vm1439_vm0, %v2742_v62  ;;  %5007 = vmatprep.subr.bf16.mxu0 %v5240_v5 }
 0xc37   : > { %4996 = vmatmul.mubr.msk.bf16.vlgmr.msra.gmra.mrb[44].mxu1 %vm1439_vm0, %v2743_v47 }
 0xc38   : > { %3460 = vmatprep.mubr.bf16.mxu1 %v5800_v11 }
 0xc39   : > { %5008 = vmatpush3.bf16.msra.mxu0 %v5240_v5 }
 0xc3a   : > { %5009 = vmatprep.subr.bf16.mxu0 %v5241_v6 }
 0xc3d   : > { %5010 = vmatpush3.bf16.msra.mxu0 %v5241_v6 }
 0xc3e   : > { %5011 = vmatprep.subr.bf16.mxu0 %v5242_v42 }
 0xc41   : > { %5012 = vmatpush3.bf16.msra.mxu0 %v5242_v42 }
 0xc42   : > { %5013 = vmatprep.subr.bf16.mxu0 %v5243_v49 }
 0xc45   : > { %5014 = vmatpush3.bf16.msra.mxu0 %v5243_v49 }
 0xce5   : > { %v4989_v13 = vpop.f32.mrb[36].mxu0 }
 0xce6   : > { %v2790_v52 = vpop.f32.mrb[37].mxu0 }
 0xce7   : > { %v4990_v57 = vpop.f32.mrb[38].mxu0 }
 0xce8   : > { %v5169_v39 = vpack.i.bf16 %v4990_v57, %v4989_v13  ;;  %v2793_v50 = vpop.f32.mrb[39].mxu0 }
 0xce9   : > { %v5164_v60 = vpack.i.bf16 %v2793_v50, %v2790_v52 }
 0xcea   : > { %5170 = vrot.lane.b32.xlu1 %v5169_v39, %s5801_s13 }
 0xceb   : > { %5165 = vrot.lane.b32.xlu0 %v5164_v60, %s5801_s13 }
 0xcee   : > { %5180 = vrot.lane.b32.xlu1 %v5179_v12, %s5803_s9 }
 0xcef   : > { %5175 = vrot.lane.b32.xlu0 %v5174_v15, %s5803_s9  ;;  %v5161_v15 = vpop.permute.xlu1 %5160  ;;  %s7362_s9 = sld [smem:[#allocation32_spill]] (!%p4632_p10) }
 0xcf0   : > { %v5163_v24 = vunpack.i.h.bf16 %v5161_v15  ;;  %v5162_v55 = vunpack.i.l.bf16 %v5161_v15 }
 0xcf2   : > { %5190 = vrot.lane.b32.xlu1 %v5189_v20, %s5802_s11  ;;  %v5156_v20 = vpop.permute.xlu0 %5155  ;;  %v2973_v21 = vsel %vm2970_vm2, %v2964_v29, %v5162_v55  ;;  %v2974_v45 = vsel %vm2970_vm2, %v2965_v34, %v5163_v24  ;;  %v5516_v24 = vld [vmem:[#allocation2] sm:$0xff]  ;;  %v5518_v34 = vld [vmem:[#allocation2 + $0x8] sm:$0xff] }
 0xcf3   : > { %5185 = vrot.lane.b32.xlu0 %v5184_v48, %s5802_s11  ;;  %v5158_v48 = vunpack.i.h.bf16 %v5156_v20  ;;  %v5157_v46 = vunpack.i.l.bf16 %v5156_v20 }
 0xcf5   : > { %v2971_v28 = vsel %vm2970_vm2, %v2962_v23, %v5157_v46  ;;  %v2972_v41 = vsel %vm2970_vm2, %v2963_v7, %v5158_v48  ;;  %v5517_v7 = vld [vmem:[#allocation2 + $0x10] sm:$0xff] }
 0xd0a   : > { %v4997_v3 = vpop.f32.mrb[44].mxu1 }
 0xd0b   : > { %v2851_v33 = vpop.f32.mrb[45].mxu1 }
 0xd0c   : > { %v4998_v0 = vpop.f32.mrb[46].mxu1 }
 0xd0d   : > { %v5199_v59 = vpack.i.bf16 %v4998_v0, %v4997_v3  ;;  %v2854_v56 = vpop.f32.mrb[47].mxu1 }
 0xd0e   : > { %v5194_v12 = vpack.i.bf16 %v2854_v56, %v2851_v33 }
 0xd0f   : > { %5200 = vrot.lane.b32.xlu1 %v5199_v59, %s5801_s13 }
 0xd10   : > { %5195 = vrot.lane.b32.xlu0 %v5194_v12, %s5801_s13 }
 0xd5c   : > { %v5171_v25 = vpop.permute.xlu1 %5170 }
 0xd5d   : > { %v5173_v63 = vunpack.i.h.bf16 %v5171_v25  ;;  %v5172_v31 = vunpack.i.l.bf16 %v5171_v25  ;;  %v5166_v32 = vpop.permute.xlu0 %5165 }
 0xd5e   : > { %v5168_v54 = vunpack.i.h.bf16 %v5166_v32  ;;  %v5167_v36 = vunpack.i.l.bf16 %v5166_v32  ;;  %v5519_v32 = vld [vmem:[#allocation2 + $0x18] sm:$0xff] }
 0xd5f   : > { %v2982_v61 = vsel %vm2979_vm3, %v2973_v21, %v5172_v31  ;;  %v2983_v51 = vsel %vm2979_vm3, %v2974_v45, %v5173_v63 }
 0xd60   : > { %v2989_v38 = vpack.c.bf16 %v2983_v51, %v2982_v61  ;;  %v2980_v40 = vsel %vm2979_vm3, %v2971_v28, %v5167_v36  ;;  %v2981_v26 = vsel %vm2979_vm3, %v2972_v41, %v5168_v54  ;;  %v5181_v27 = vpop.permute.xlu1 %5180  ;;  %v5520_v28 = vld [vmem:[#allocation2 + $0x20] sm:$0xff] }
 0xd61   : > { %v2988_v10 = vpack.c.bf16 %v2981_v26, %v2980_v40  ;;  %v5176_v62 = vpop.permute.xlu0 %5175  ;;  %v5183_v30 = vunpack.i.h.bf16 %v5181_v27  ;;  %v5182_v1 = vunpack.i.l.bf16 %v5181_v27 }
 0xd62   : > { %v5178_v58 = vunpack.i.h.bf16 %v5176_v62  ;;  %v5177_v5 = vunpack.i.l.bf16 %v5176_v62  ;;  %v5523_v62 = vld [vmem:[#allocation2 + $0x38] sm:$0xff] }
 0xd63   : > { %5015 = vmatprep.mubr.bf16.mxu0 %v2988_v10  ;;  %v2969_v52 = vsel %vm1439_vm0, %v6501_v37, %v5183_v30  ;;  %v2968_v57 = vsel %vm1439_vm0, %v6497_v2, %v5182_v1  ;;  %v5522_v10 = vld [vmem:[#allocation2 + $0x28] sm:$0xff] }
 0xd64   : > { %5016 = vmatmul.mubr.bf16.vlgmr.msra.gmra.mrb[40].mxu0 %v2989_v38  ;;  %v5191_v47 = vpop.permute.xlu1 %5190  ;;  %v2967_v50 = vsel %vm1439_vm0, %v6503_v44, %v5178_v58  ;;  %v2966_v60 = vsel %vm1439_vm0, %v6499_v4, %v5177_v5  ;;  %v5521_v38 = vld [vmem:[#allocation2 + $0x30] sm:$0xff] }
 0xd65   : > { %v5186_v17 = vpop.permute.xlu0 %5185  ;;  %v5193_v6 = vunpack.i.h.bf16 %v5191_v47  ;;  %v5192_v42 = vunpack.i.l.bf16 %v5191_v47  ;;  %v5244_v58 = vld [vmem:[%s6192_s3] ss:$16 sps:$4 sm:$0xff]   ;;  %v5246_v5 = vld [vmem:[%s6192_s3 + $0x4] ss:$16 sps:$4 sm:$0xff]  }
 0xd66   : > { %v5188_v49 = vunpack.i.h.bf16 %v5186_v17  ;;  %v5187_v13 = vunpack.i.l.bf16 %v5186_v17  ;;  %3428 = vmatprep.subr.bf16.mxu1 %v5246_v5 }
 0xd67   : > { %v2977_v59 = vsel %vm2970_vm2, %v2968_v57, %v5192_v42  ;;  %v2978_v56 = vsel %vm2970_vm2, %v2969_v52, %v5193_v6  ;;  %v5247_v6 = vld [vmem:[%s6192_s3 + $0x8] ss:$16 sps:$4 sm:$0xff]   ;;  %v5249_v42 = vld [vmem:[%s6192_s3 + $0xc] ss:$16 sps:$4 sm:$0xff]   ;;  %3429 = vmatpush1.bf16.msra.mxu1 %v5244_v58  ;;  %v5250_v52 = vld [vmem:[%s6192_s3 + $0x20] ss:$16 sps:$4 sm:$0xff]  }
 0xd68   : > { %v2975_v9 = vsel %vm2970_vm2, %v2966_v60, %v5187_v13  ;;  %v2976_v2 = vsel %vm2970_vm2, %v2967_v50, %v5188_v49  ;;  %v5252_v49 = vld [vmem:[%s6192_s3 + $0x24] ss:$16 sps:$4 sm:$0xff]   ;;  %v5255_v13 = vld [vmem:[%s6192_s3 + $0x2c] ss:$16 sps:$4 sm:$0xff]   ;;  %3501 = vmatprep.subr.bf16.mxu0 %v5249_v42  ;;  %v5253_v57 = vld [vmem:[%s6192_s3 + $0x28] ss:$16 sps:$4 sm:$0xff]  }
 0xd69   : > { %3502 = vmatpush1.bf16.msra.mxu0 %v5247_v6  ;;  %3430 = vmatprep.subr.bf16.mxu1 %v5252_v49 }
 0xd6a   : > { %3503 = vmatprep.subr.bf16.mxu0 %v5255_v13 }
 0xd6b   : > { %3431 = vmatpush1.bf16.msra.mxu1 %v5250_v52 }
 0xd6d   : > { %3504 = vmatpush1.bf16.msra.mxu0 %v5253_v57 }
 0xd81   : > { %v5201_v39 = vpop.permute.xlu1 %5200 }
 0xd82   : > { %v5203_v3 = vunpack.i.h.bf16 %v5201_v39  ;;  %v5202_v33 = vunpack.i.l.bf16 %v5201_v39  ;;  %v5196_v0 = vpop.permute.xlu0 %5195 }
 0xd83   : > { %v5198_v12 = vunpack.i.h.bf16 %v5196_v0  ;;  %v5197_v37 = vunpack.i.l.bf16 %v5196_v0 }
 0xd84   : > { %v2986_v19 = vsel %vm2979_vm3, %v2977_v59, %v5202_v33  ;;  %v2987_v44 = vsel %vm2979_vm3, %v2978_v56, %v5203_v3 }
 0xd85   : > { %v2984_v4 = vsel %vm2979_vm3, %v2975_v9, %v5197_v37  ;;  %v2985_v15 = vsel %vm2979_vm3, %v2976_v2, %v5198_v12  ;;  %v2991_v35 = vpack.c.bf16 %v2987_v44, %v2986_v19 }
 0xd86   : > { %v2990_v22 = vpack.c.bf16 %v2985_v15, %v2984_v4 }
 0xd88   : > { %5019 = vmatprep.mubr.bf16.mxu0 %v2990_v22  ;;  %v5261_v22 = vld [vmem:[%s6192_s3 + $0x4c] ss:$16 sps:$4 sm:$0xff]  }
 0xd89   : > { %5020 = vmatmul.mubr.bf16.gmra.mrb[44].mxu0 %v2991_v35  ;;  %v5258_v35 = vld [vmem:[%s6192_s3 + $0x44] ss:$16 sps:$4 sm:$0xff]   ;;  %3505 = vmatprep.subr.bf16.mxu0 %v5261_v22 }
 0xd8a   : > { %3533 = vmatprep.mubr.bf16.mxu0 %v5800_v11  ;;  %3432 = vmatprep.subr.bf16.mxu1 %v5258_v35 }
 0xe37   : > { %v5017_v20 = vpop.f32.mrb[40].mxu0 }
 0xe38   : > { %v3074_v43 = vpop.f32.mrb[41].mxu0  ;;  %v3107_v23 = vadd.f32 %v5517_v7, %v5017_v20  ;;  %v5256_v20 = vld [vmem:[%s6192_s3 + $0x40] ss:$16 sps:$4 sm:$0xff]   ;;  %v5273_v7 = vld [vmem:[%s6192_s3 + $0x8c] ss:$16 sps:$4 sm:$0xff]  }
 0xe39   : > { %v3105_v55 = vadd.f32 %v5516_v24, %v3074_v43  ;;  %v5018_v48 = vpop.f32.mrb[42].mxu0  ;;  %3433 = vmatpush1.bf16.msra.mxu1 %v5256_v20  ;;  %v5264_v43 = vld [vmem:[%s6192_s3 + $0x64] ss:$16 sps:$4 sm:$0xff]   ;;  %v5267_v24 = vld [vmem:[%s6192_s3 + $0x6c] ss:$16 sps:$4 sm:$0xff]  }
 0xe3a   : > { %v3077_v46 = vpop.f32.mrb[43].mxu0  ;;  %v6894_v31 = vadd.f32 %v4564_v8, %v3107_v23  ;;  %v3108_v21 = vadd.f32 %v5519_v32, %v5018_v48  ;;  %v5265_v48 = vld [vmem:[%s6192_s3 + $0x68] ss:$16 sps:$4 sm:$0xff]   ;;  %3434 = vmatprep.subr.bf16.mxu1 %v5264_v43  ;;  %v5268_v23 = vld [vmem:[%s6192_s3 + $0x80] ss:$16 sps:$4 sm:$0xff]  }
 0xe3b   : > { %v6889_v25 = vadd.f32 %v4564_v8, %v3105_v55  ;;  %v3106_v29 = vadd.f32 %v5518_v34, %v3077_v46  ;;  %v5262_v55 = vld [vmem:[%s6192_s3 + $0x60] ss:$16 sps:$4 sm:$0xff]   ;;  %v5270_v46 = vld [vmem:[%s6192_s3 + $0x84] ss:$16 sps:$4 sm:$0xff]   ;;  %v5271_v34 = vld [vmem:[%s6192_s3 + $0x88] ss:$16 sps:$4 sm:$0xff]  }
 0xe3c   : > { %v6898_v45 = vadd.f32 %v4564_v8, %v3108_v21  ;;  %v5279_v32 = vld [vmem:[%s6192_s3 + $0xac] ss:$16 sps:$4 sm:$0xff]   ;;  %v5274_v21 = vld [vmem:[%s6192_s3 + $0xa0] ss:$16 sps:$4 sm:$0xff]  }
 0xe3d   : > { %v6891_v63 = vadd.f32 %v4564_v8, %v3106_v29  ;;  %3127 = vadd.xlane.f32.xlu0 %v6889_v25  ;;  %3435 = vmatpush1.bf16.msra.mxu1 %v5262_v55  ;;  %v5276_v29 = vld [vmem:[%s6192_s3 + $0xa4] ss:$16 sps:$4 sm:$0xff]   ;;  %v4565_v55 = vld [vmem:[%s7358_s20] ss:$0 sm:$0xff] }
 0xe3e   : > { %3436 = vmatprep.subr.bf16.mxu1 %v5270_v46 }
 0xe3f   : > { %3129 = vadd.xlane.f32.xlu1 %v6891_v63 }
 0xe41   : > { %3131 = vadd.xlane.f32.xlu0 %v6894_v31  ;;  %3437 = vmatpush1.bf16.msra.mxu1 %v5268_v23 }
 0xe42   : > { %3438 = vmatprep.subr.bf16.mxu1 %v5276_v29 }
 0xe45   : > { %3133 = vadd.xlane.f32.xlu0 %v6898_v45  ;;  %3439 = vmatpush1.bf16.msra.mxu1 %v5274_v21 }
 0xe5c   : > { %v5021_v54 = vpop.f32.mrb[44].mxu0 }
 0xe5d   : > { %v3090_v36 = vpop.f32.mrb[45].mxu0  ;;  %v3111_v40 = vadd.f32 %v5521_v38, %v5021_v54  ;;  %v5277_v54 = vld [vmem:[%s6192_s3 + $0xa8] ss:$16 sps:$4 sm:$0xff]  }
 0xe5e   : > { %v3109_v41 = vadd.f32 %v5520_v28, %v3090_v36  ;;  %v5022_v61 = vpop.f32.mrb[46].mxu0  ;;  %v5282_v36 = vld [vmem:[%s6192_s3 + $0xc4] ss:$16 sps:$4 sm:$0xff]   ;;  %v5285_v28 = vld [vmem:[%s6192_s3 + $0xcc] ss:$16 sps:$4 sm:$0xff]  }
 0xe5f   : > { %v3093_v51 = vpop.f32.mrb[47].mxu0  ;;  %v3112_v47 = vadd.f32 %v5523_v62, %v5022_v61  ;;  %v6906_v1 = vadd.f32 %v4564_v8, %v3111_v40  ;;  %v5280_v61 = vld [vmem:[%s6192_s3 + $0xc0] ss:$16 sps:$4 sm:$0xff]   ;;  %3440 = vmatprep.subr.bf16.mxu1 %v5282_v36  ;;  %v5288_v40 = vld [vmem:[%s6192_s3 + $0xe4] ss:$16 sps:$4 sm:$0xff]  }
 0xe60   : > { %v6901_v26 = vadd.f32 %v4564_v8, %v3109_v41  ;;  %v3110_v27 = vadd.f32 %v5522_v10, %v3093_v51  ;;  %v5283_v51 = vld [vmem:[%s6192_s3 + $0xc8] ss:$16 sps:$4 sm:$0xff]   ;;  %3441 = vmatpush1.bf16.msra.mxu1 %v5280_v61 }
 0xe61   : > { %v6909_v17 = vadd.f32 %v4564_v8, %v3112_v47  ;;  %v5289_v62 = vld [vmem:[%s6192_s3 + $0xe8] ss:$16 sps:$4 sm:$0xff]   ;;  %v5291_v47 = vld [vmem:[%s6192_s3 + $0xec] ss:$16 sps:$4 sm:$0xff]   ;;  %3442 = vmatprep.subr.bf16.mxu1 %v5288_v40 }
 0xe62   : > { %v6903_v30 = vadd.f32 %v4564_v8, %v3110_v27  ;;  %3135 = vadd.xlane.f32.xlu0 %v6901_v26  ;;  %v5259_v8 = vld [vmem:[%s6192_s3 + $0x48] ss:$16 sps:$4 sm:$0xff]   ;;  %v5286_v27 = vld [vmem:[%s6192_s3 + $0xe0] ss:$16 sps:$4 sm:$0xff]   ;;  %s7359_s3 = scalar_lea.vmem [#allocation11], %s6139_s16 }
 0xe63   : > { %3506 = vmatpush1.bf16.msra.mxu0 %v5259_v8  ;;  %v4566_v29 = vld [vmem:[%s7359_s3] ss:$0 sm:$0xff]  ;;  %s7363_s3 = sld [smem:[#allocation33_spill]] (!%p4632_p10) }
 0xe64   : > { %3137 = vadd.xlane.f32.xlu1 %v6903_v30  ;;  %3507 = vmatprep.subr.bf16.mxu0 %v5267_v24 }
 0xe65   : > { %3443 = vmatpush1.bf16.msra.mxu1 %v5286_v27 }
 0xe66   : > { %3139 = vadd.xlane.f32.xlu0 %v6906_v1 }
 0xe67   : > { %3508 = vmatpush1.bf16.msra.mxu0 %v5265_v48 }
 0xe68   : > { %3141 = vadd.xlane.f32.xlu1 %v6909_v17  ;;  %3509 = vmatprep.subr.bf16.mxu0 %v5273_v7 }
 0xe6b   : > { %3510 = vmatpush1.bf16.msra.mxu0 %v5271_v34 }
 0xe6c   : > { %3511 = vmatprep.subr.bf16.mxu0 %v5279_v32 }
 0xe6f   : > { %3512 = vmatpush1.bf16.msra.mxu0 %v5277_v54 }
 0xe70   : > { %3513 = vmatprep.subr.bf16.mxu0 %v5285_v28 }
 0xe73   : > { %3514 = vmatpush1.bf16.msra.mxu0 %v5283_v51 }
 0xe74   : > { %3515 = vmatprep.subr.bf16.mxu0 %v5291_v47 }
 0xe77   : > { %3516 = vmatpush1.bf16.msra.mxu0 %v5289_v62 }
 0xeca   : > { %v3128_v39 = vpop.xlane.xlu0 %3127 }
 0xecb   : > { %v3143_v50 = vmul.f32 0.0078125, %v3128_v39 }
 0xecc   : > { %v3130_v60 = vpop.xlane.xlu1 %3129 }
 0xecd   : > { %v6922_v3 = vsub.f32 %v6889_v25, %v3143_v50  ;;  %v3144_v33 = vmul.f32 0.0078125, %v3130_v60 }
 0xece   : > { %v3132_v0 = vpop.xlane.xlu0 %3131 }
 0xecf   : > { %v6925_v59 = vsub.f32 %v6891_v63, %v3144_v33  ;;  %v3145_v56 = vmul.f32 0.0078125, %v3132_v0  ;;  %v3159_v12 = vmul.f32 %v6922_v3, %v6922_v3 }
 0xed1   : > { %v6930_v37 = vsub.f32 %v6894_v31, %v3145_v56  ;;  %3167 = vadd.xlane.f32.xlu0 %v3159_v12  ;;  %v3160_v9 = vmul.f32 %v6925_v59, %v6925_v59 }
 0xed2   : > { %v3134_v2 = vpop.xlane.xlu0 %3133 }
 0xed3   : > { %v3146_v19 = vmul.f32 0.0078125, %v3134_v2  ;;  %3169 = vadd.xlane.f32.xlu1 %v3160_v9  ;;  %v3161_v44 = vmul.f32 %v6930_v37, %v6930_v37 }
 0xed5   : > { %v6937_v4 = vsub.f32 %v6898_v45, %v3146_v19  ;;  %3171 = vadd.xlane.f32.xlu0 %v3161_v44 }
 0xed7   : > { %v3162_v15 = vmul.f32 %v6937_v4, %v6937_v4 }
 0xed9   : > { %3173 = vadd.xlane.f32.xlu1 %v3162_v15 }
 0xeef   : > { %v3136_v41 = vpop.xlane.xlu0 %3135 }
 0xef0   : > { %v3147_v38 = vmul.f32 0.0078125, %v3136_v41 }
 0xef1   : > { %v3138_v10 = vpop.xlane.xlu1 %3137 }
 0xef2   : > { %v6966_v58 = vsub.f32 %v6901_v26, %v3147_v38  ;;  %v3148_v5 = vmul.f32 0.0078125, %v3138_v10 }
 0xef3   : > { %v3140_v6 = vpop.xlane.xlu0 %3139 }
 0xef4   : > { %v6969_v42 = vsub.f32 %v6903_v30, %v3148_v5  ;;  %v3149_v49 = vmul.f32 0.0078125, %v3140_v6  ;;  %v3163_v13 = vmul.f32 %v6966_v58, %v6966_v58 }
 0xef5   : > { %v3142_v52 = vpop.xlane.xlu1 %3141 }
 0xef6   : > { %v6974_v57 = vsub.f32 %v6906_v1, %v3149_v49  ;;  %v3150_v39 = vmul.f32 0.0078125, %v3142_v52  ;;  %3175 = vadd.xlane.f32.xlu0 %v3163_v13  ;;  %v3164_v50 = vmul.f32 %v6969_v42, %v6969_v42 }
 0xef8   : > { %v6979_v60 = vsub.f32 %v6909_v17, %v3150_v39  ;;  %3177 = vadd.xlane.f32.xlu1 %v3164_v50  ;;  %v3165_v33 = vmul.f32 %v6974_v57, %v6974_v57 }
 0xefa   : > { %3179 = vadd.xlane.f32.xlu0 %v3165_v33  ;;  %v3166_v0 = vmul.f32 %v6979_v60, %v6979_v60 }
 0xefc   : > { %3181 = vadd.xlane.f32.xlu1 %v3166_v0 }
 0xf5e   : > { %v3168_v56 = vpop.xlane.xlu0 %3167 }
 0xf5f   : > { %v3183_v12 = vmul.f32 0.0078125, %v3168_v56 }
 0xf60   : > { %v3170_v9 = vpop.xlane.xlu1 %3169 }
 0xf61   : > { %v3191_v2 = vadd.f32 1e-06, %v3183_v12  ;;  %v3184_v19 = vmul.f32 0.0078125, %v3170_v9 }
 0xf62   : > { %v3172_v44 = vpop.xlane.xlu0 %3171 }
 0xf63   : > { %5468 = vrsqrt.f32 %v3191_v2  ;;  %v3192_v15 = vadd.f32 1e-06, %v3184_v19  ;;  %v3185_v35 = vmul.f32 0.0078125, %v3172_v44 }
 0xf65   : > { %5470 = vrsqrt.f32 %v3192_v15  ;;  %v3193_v22 = vadd.f32 1e-06, %v3185_v35 }
 0xf66   : > { %v3174_v20 = vpop.xlane.xlu1 %3173 }
 0xf67   : > { %5472 = vrsqrt.f32 %v3193_v22  ;;  %v3186_v8 = vmul.f32 0.0078125, %v3174_v20 }
 0xf69   : > { %v3194_v43 = vadd.f32 1e-06, %v3186_v8 }
 0xf6b   : > { %5474 = vrsqrt.f32 %v3194_v43 }
 0xf6d   : > { %v5469_v24 = vpop.eup %5468 }
 0xf6e   : > { %v3207_v48 = vmul.f32 %v5469_v24, %v6922_v3  ;;  %v5293_v24 = vld [vmem:[%s6198_s23 + $0xc0] sm:$0xff]  }
 0xf6f   : > { %v5471_v46 = vpop.eup %5470  ;;  %4798 = vmatprep.subr.bf16.mxu0 %v5293_v24 }
 0xf70   : > { %v3208_v7 = vmul.f32 %v5471_v46, %v6925_v59  ;;  %v3221_v23 = vmul.f32 %v4565_v55, %v3207_v48  ;;  %v5294_v48 = vld [vmem:[%s6198_s23] sm:$0xff]   ;;  %v5297_v46 = vld [vmem:[%s6198_s23 + $0xc8] sm:$0xff]  }
 0xf71   : > { %v5473_v34 = vpop.eup %5472 }
 0xf72   : > { %v3222_v32 = vmul.f32 %v4565_v55, %v3208_v7  ;;  %v3235_v21 = vadd.f32 %v4566_v29, %v3221_v23  ;;  %v3209_v36 = vmul.f32 %v5473_v34, %v6930_v37  ;;  %v5298_v7 = vld [vmem:[%s6198_s23 + $0x8] sm:$0xff]   ;;  %v5300_v34 = vld [vmem:[%s6198_s23 + $0x50] sm:$0xff]  }
 0xf73   : > { %v5299_v23 = vld [vmem:[%s6198_s23 + $0x88] sm:$0xff]  }
 0xf74   : > { %v3236_v54 = vadd.f32 %v4566_v29, %v3222_v32  ;;  %v3223_v51 = vmul.f32 %v4565_v55, %v3209_v36  ;;  %v5302_v32 = vld [vmem:[%s6198_s23 + $0x10] sm:$0xff]   ;;  %v5305_v36 = vld [vmem:[%s6198_s23 + $0xd8] sm:$0xff]  }
 0xf75   : > { %v5475_v28 = vpop.eup %5474 }
 0xf76   : > { %v3243_v41 = vpack.c.bf16 %v3236_v54, %v3235_v21  ;;  %v3210_v61 = vmul.f32 %v5475_v28, %v6937_v4  ;;  %v3237_v38 = vadd.f32 %v4566_v29, %v3223_v51  ;;  %v5303_v21 = vld [vmem:[%s6198_s23 + $0x90] sm:$0xff]   ;;  %v5304_v54 = vld [vmem:[%s6198_s23 + $0x58] sm:$0xff]   ;;  %v5309_v51 = vld [vmem:[%s6198_s23 + $0xe0] sm:$0xff]  }
 0xf77   : > { %v5306_v28 = vld [vmem:[%s6198_s23 + $0x18] sm:$0xff]  }
 0xf78   : > { %3461 = vmatmul.mubr.bf16.vlgmr.msra.gmra.mrb[48].mxu1 %v3243_v41  ;;  %3534 = vmatmul.mubr.bf16.vlgmr.msra.gmra.mrb[48].mxu0 %v3243_v41  ;;  %v3224_v3 = vmul.f32 %v4565_v55, %v3210_v61  ;;  %v5307_v41 = vld [vmem:[%s6198_s23 + $0x98] sm:$0xff]   ;;  %v5308_v61 = vld [vmem:[%s6198_s23 + $0x60] sm:$0xff]  }
 0xf79   : > { %3470 = vmatprep.mubr.bf16.mxu1 %v5800_v11  ;;  %3543 = vmatprep.mubr.bf16.mxu0 %v5800_v11 }
 0xf7a   : > { %v3238_v59 = vadd.f32 %v4566_v29, %v3224_v3  ;;  %v5310_v3 = vld [vmem:[%s6198_s23 + $0x20] sm:$0xff]  }
 0xf7c   : > { %v3244_v40 = vpack.c.bf16 %v3238_v59, %v3237_v38  ;;  %v5311_v59 = vld [vmem:[%s6198_s23 + $0xa0] sm:$0xff]   ;;  %v5312_v38 = vld [vmem:[%s6198_s23 + $0x68] sm:$0xff]  }
 0xf80   : > { %3471 = vmatmul.mubr.bf16.gmra.mrb[52].mxu1 %v3244_v40  ;;  %3544 = vmatmul.mubr.bf16.gmra.mrb[52].mxu0 %v3244_v40  ;;  %v5313_v40 = vld [vmem:[%s6198_s23 + $0xe8] sm:$0xff]  }
 0xf81   : > { %3480 = vmatprep.mubr.bf16.mxu1 %v5800_v11  ;;  %3553 = vmatprep.mubr.bf16.mxu0 %v5800_v11 }
 0xf83   : > { %v3176_v37 = vpop.xlane.xlu0 %3175 }
 0xf84   : > { %v3187_v10 = vmul.f32 0.0078125, %v3176_v37  ;;  %v5314_v37 = vld [vmem:[%s6198_s23 + $0x28] sm:$0xff]  }
 0xf85   : > { %v3178_v4 = vpop.xlane.xlu1 %3177 }
 0xf86   : > { %v3195_v27 = vadd.f32 1e-06, %v3187_v10  ;;  %v3188_v62 = vmul.f32 0.0078125, %v3178_v4  ;;  %v5315_v10 = vld [vmem:[%s6198_s23 + $0xa8] sm:$0xff]   ;;  %v5316_v4 = vld [vmem:[%s6198_s23 + $0x70] sm:$0xff]  }
 0xf87   : > { %v3180_v47 = vpop.xlane.xlu0 %3179 }
 0xf88   : > { %5476 = vrsqrt.f32 %v3195_v27  ;;  %v3196_v5 = vadd.f32 1e-06, %v3188_v62  ;;  %v3189_v6 = vmul.f32 0.0078125, %v3180_v47  ;;  %v5317_v27 = vld [vmem:[%s6198_s23 + $0xf0] sm:$0xff]  }
 0xf89   : > { %v3182_v49 = vpop.xlane.xlu1 %3181  ;;  %v5318_v62 = vld [vmem:[%s6198_s23 + $0x30] sm:$0xff]  }
 0xf8a   : > { %5478 = vrsqrt.f32 %v3196_v5  ;;  %v3197_v13 = vadd.f32 1e-06, %v3189_v6  ;;  %v3190_v52 = vmul.f32 0.0078125, %v3182_v49  ;;  %v5319_v47 = vld [vmem:[%s6198_s23 + $0xb0] sm:$0xff]   ;;  %v5320_v5 = vld [vmem:[%s6198_s23 + $0x78] sm:$0xff]  }
 0xf8b   : > { %v5321_v6 = vld [vmem:[%s6198_s23 + $0xf8] sm:$0xff]  }
 0xf8c   : > { %5480 = vrsqrt.f32 %v3197_v13  ;;  %v3198_v39 = vadd.f32 1e-06, %v3190_v52  ;;  %v5322_v49 = vld [vmem:[%s6198_s23 + $0x38] sm:$0xff]   ;;  %v955_v52 = vld [vmem:[%s6203_s26] sm:$0xf]  ;;  %s7360_s26 = scalar_lea.vmem [#allocation12], %s6139_s16 }
 0xf8d   : > { %v5323_v13 = vld [vmem:[%s6198_s23 + $0xb8] sm:$0xff]  }
 0xf8e   : > { %5482 = vrsqrt.f32 %v3198_v39  ;;  %v3262_v39 = vsub.s32 3, %v6297_v14 }
 0xf92   : > { %v5477_v50 = vpop.eup %5476 }
 0xf93   : > { %v3211_v33 = vmul.f32 %v5477_v50, %v6966_v58  ;;  %v7039_v50 = vrot.slane %v955_v52, %v1145_v53 }
 0xf94   : > { %v5479_v0 = vpop.eup %5478 }
 0xf95   : > { %v3212_v56 = vmul.f32 %v5479_v0, %v6969_v42  ;;  %v3225_v12 = vmul.f32 %v4565_v55, %v3211_v33  ;;  %v7043_v33 = vrot.slane %v955_v52, %v1153_v18 }
 0xf96   : > { %v5481_v9 = vpop.eup %5480 }
 0xf97   : > { %v3226_v2 = vmul.f32 %v4565_v55, %v3212_v56  ;;  %v3239_v44 = vadd.f32 %v4566_v29, %v3225_v12  ;;  %v3213_v35 = vmul.f32 %v5481_v9, %v6974_v57  ;;  %v7047_v12 = vrot.slane %v955_v52, %v1149_v16 }
 0xf98   : > { %v5483_v19 = vpop.eup %5482  ;;  %v7049_v9 = vrot.slane %v955_v52, %v3262_v39 }
 0xf99   : > { %v3240_v15 = vadd.f32 %v4566_v29, %v3226_v2  ;;  %v3214_v22 = vmul.f32 %v5483_v19, %v6979_v60  ;;  %v3227_v58 = vmul.f32 %v4565_v55, %v3213_v35  ;;  %v5292_v60 = vld [vmem:[%s6198_s23 + $0x40] sm:$0xff]  }
 0xf9a   : > { %4758 = vmatprep.subr.bf16.mxu1 %v5292_v60 }
 0xf9b   : > { %v3245_v20 = vpack.c.bf16 %v3240_v15, %v3239_v44  ;;  %v3228_v8 = vmul.f32 %v4565_v55, %v3214_v22  ;;  %v3241_v43 = vadd.f32 %v4566_v29, %v3227_v58  ;;  %v5295_v55 = vld [vmem:[%s6198_s23 + $0x80] sm:$0xff]   ;;  %4759 = vmatpush3.bf16.msra.mxu1 %v5294_v48 }
 0xf9c   : > { %4799 = vmatpush3.bf16.msra.mxu0 %v5295_v55 }
 0xf9d   : > { %3481 = vmatmul.mubr.bf16.gmra.mrb[56].mxu1 %v3245_v20  ;;  %3554 = vmatmul.mubr.bf16.gmra.mrb[56].mxu0 %v3245_v20  ;;  %v3242_v42 = vadd.f32 %v4566_v29, %v3228_v8  ;;  %v5301_v29 = vld [vmem:[%s6198_s23 + $0xd0] sm:$0xff]  }
 0xf9e   : > { %3490 = vmatprep.mubr.bf16.mxu1 %v5800_v11  ;;  %3563 = vmatprep.mubr.bf16.mxu0 %v5800_v11  ;;  %v5296_v11 = vld [vmem:[%s6198_s23 + $0x48] sm:$0xff]   ;;  %s7364_s23 = sld [smem:[#allocation35_spill]] (!%p4632_p10) }
 0xf9f   : > { %v3246_v57 = vpack.c.bf16 %v3242_v42, %v3241_v43  ;;  %4760 = vmatprep.subr.bf16.mxu1 %v5296_v11  ;;  %4800 = vmatprep.subr.bf16.mxu0 %v5297_v46 }
 0xfa0   : > { %4761 = vmatpush3.bf16.msra.mxu1 %v5298_v7  ;;  %4801 = vmatpush3.bf16.msra.mxu0 %v5299_v23 }
 0xfa1   : > { %4762 = vmatprep.subr.bf16.mxu1 %v5300_v34  ;;  %4802 = vmatprep.subr.bf16.mxu0 %v5301_v29 }
 0xfa4   : > { %4763 = vmatpush3.bf16.msra.mxu1 %v5302_v32  ;;  %4803 = vmatpush3.bf16.msra.mxu0 %v5303_v21 }
 0xfa5   : > { %3491 = vmatmul.mubr.bf16.gmra.mrb[60].mxu1 %v3246_v57  ;;  %3564 = vmatmul.mubr.bf16.gmra.mrb[60].mxu0 %v3246_v57 }
 0xfa6   : > { %4764 = vmatprep.subr.bf16.mxu1 %v5304_v54  ;;  %4804 = vmatprep.subr.bf16.mxu0 %v5305_v36 }
 0xfa8   : > { %4765 = vmatpush3.bf16.msra.mxu1 %v5306_v28  ;;  %4805 = vmatpush3.bf16.msra.mxu0 %v5307_v41 }
 0xfa9   : > { %4766 = vmatprep.subr.bf16.mxu1 %v5308_v61  ;;  %4806 = vmatprep.subr.bf16.mxu0 %v5309_v51 }
 0xfac   : > { %4767 = vmatpush3.bf16.msra.mxu1 %v5310_v3  ;;  %4807 = vmatpush3.bf16.msra.mxu0 %v5311_v59 }
 0xfad   : > { %4768 = vmatprep.subr.bf16.mxu1 %v5312_v38  ;;  %4808 = vmatprep.subr.bf16.mxu0 %v5313_v40 }
 0xfb0   : > { %4769 = vmatpush3.bf16.msra.mxu1 %v5314_v37  ;;  %4809 = vmatpush3.bf16.msra.mxu0 %v5315_v10 }
 0xfb1   : > { %4770 = vmatprep.subr.bf16.mxu1 %v5316_v4  ;;  %4810 = vmatprep.subr.bf16.mxu0 %v5317_v27 }
 0xfb4   : > { %4771 = vmatpush3.bf16.msra.mxu1 %v5318_v62  ;;  %4811 = vmatpush3.bf16.msra.mxu0 %v5319_v47 }
 0xfb5   : > { %4772 = vmatprep.subr.bf16.mxu1 %v5320_v5  ;;  %4812 = vmatprep.subr.bf16.mxu0 %v5321_v6 }
 0xfb8   : > { %4773 = vmatpush3.bf16.msra.mxu1 %v5322_v49  ;;  %4813 = vmatpush3.bf16.msra.mxu0 %v5323_v13 }
0x104b   : > { %v3462_v0 = vpop.f32.mrb[48].mxu1  ;;  %v3535_v56 = vpop.f32.mrb[48].mxu0 }
0x104c   : > { %v3464_v2 = vpop.f32.mrb[49].mxu1  ;;  %v3537_v19 = vpop.f32.mrb[49].mxu0  ;;  %v3463_v35 = vadd.f32 %v3462_v0, %v7039_v50  ;;  %v3536_v53 = vadd.f32 %v3535_v56, %v7043_v33 }
0x104d   : > { %v3466_v44 = vpop.f32.mrb[50].mxu1  ;;  %v3539_v15 = vpop.f32.mrb[50].mxu0  ;;  %v3465_v14 = vadd.f32 %v3464_v2, %v7047_v12  ;;  %v3538_v16 = vadd.f32 %v3537_v19, %v7049_v9 }
0x104e   : > { %v3467_v22 = vadd.f32 %v3466_v44, %v7039_v50  ;;  %v3540_v18 = vadd.f32 %v3539_v15, %v7043_v33  ;;  %v3468_v20 = vpop.f32.mrb[51].mxu1  ;;  %v3541_v8 = vpop.f32.mrb[51].mxu0 }
0x104f   : > { %v3469_v58 = vadd.f32 %v3468_v20, %v7047_v12  ;;  %v3542_v42 = vadd.f32 %v3541_v8, %v7049_v9 }
0x1050   : > { %v7059_v43 = vpack.c.bf16 %v3467_v22, %v3463_v35  ;;  %v7061_v57 = vpack.c.bf16 %v3540_v18, %v3536_v53 }
0x1051   : > { %v7063_v60 = vpack.c.bf16 %v3469_v58, %v3465_v14  ;;  %v7065_v24 = vpack.c.bf16 %v3542_v42, %v3538_v16 }
0x1052   : > { %v3606_v48 = vmul.bf16 1027030327, %v7059_v43  ;;  %v3608_v55 = vmul.bf16 1027030327, %v7061_v57 }
0x1053   : > { %v3607_v11 = vmul.bf16 1027030327, %v7063_v60  ;;  %v3472_v46 = vpop.f32.mrb[52].mxu1  ;;  %v3545_v7 = vpop.f32.mrb[52].mxu0  ;;  %v3609_v29 = vmul.bf16 1027030327, %v7065_v24 }
0x1054   : > { %v3622_v23 = vmul.bf16 %v3606_v48, %v7059_v43  ;;  %v3624_v34 = vmul.bf16 %v3608_v55, %v7061_v57  ;;  %v3474_v32 = vpop.f32.mrb[53].mxu1  ;;  %v3547_v21 = vpop.f32.mrb[53].mxu0  ;;  %v3473_v54 = vadd.f32 %v3472_v46, %v7039_v50  ;;  %v3546_v36 = vadd.f32 %v3545_v7, %v7043_v33 }
0x1055   : > { %v3475_v28 = vadd.f32 %v3474_v32, %v7047_v12  ;;  %v3476_v41 = vpop.f32.mrb[54].mxu1  ;;  %v3549_v61 = vpop.f32.mrb[54].mxu0  ;;  %v3623_v51 = vmul.bf16 %v3607_v11, %v7063_v60  ;;  %v3548_v4 = vadd.f32 %v3547_v21, %v7049_v9  ;;  %v3625_v56 = vmul.bf16 %v3609_v29, %v7065_v24 }
0x1056   : > { %v3638_v3 = vmul.bf16 %v3622_v23, %v7059_v43  ;;  %v3640_v59 = vmul.bf16 %v3624_v34, %v7061_v57  ;;  %v3477_v38 = vadd.f32 %v3476_v41, %v7039_v50  ;;  %v3550_v40 = vadd.f32 %v3549_v61, %v7043_v33  ;;  %v3478_v37 = vpop.f32.mrb[55].mxu1  ;;  %v3551_v10 = vpop.f32.mrb[55].mxu0 }
0x1057   : > { %v3479_v27 = vadd.f32 %v3478_v37, %v7047_v12  ;;  %v3552_v62 = vadd.f32 %v3551_v10, %v7049_v9  ;;  %v3639_v47 = vmul.bf16 %v3623_v51, %v7063_v60  ;;  %v3641_v22 = vmul.bf16 %v3625_v56, %v7065_v24 }
0x1058   : > { %v3654_v5 = vadd.bf16 %v3638_v3, %v7059_v43  ;;  %v3656_v6 = vadd.bf16 %v3640_v59, %v7061_v57  ;;  %v7087_v49 = vpack.c.bf16 %v3477_v38, %v3473_v54  ;;  %v7089_v13 = vpack.c.bf16 %v3550_v40, %v3546_v36 }
0x1059   : > { %v7091_v52 = vpack.c.bf16 %v3479_v27, %v3475_v28  ;;  %v7093_v39 = vpack.c.bf16 %v3552_v62, %v3548_v4  ;;  %v3655_v0 = vadd.bf16 %v3639_v47, %v7063_v60  ;;  %v3657_v20 = vadd.bf16 %v3641_v22, %v7065_v24 }
0x105a   : > { %v3670_v2 = vmul.bf16 1061961548, %v3654_v5  ;;  %v3672_v19 = vmul.bf16 1061961548, %v3656_v6  ;;  %v3610_v44 = vmul.bf16 1027030327, %v7087_v49 }
0x105b   : > { %v3612_v15 = vmul.bf16 1027030327, %v7089_v13  ;;  %v3611_v35 = vmul.bf16 1027030327, %v7091_v52  ;;  %v3613_v53 = vmul.bf16 1027030327, %v7093_v39 }
0x105c   : > { %5484 = vtanh.bf16 %v3670_v2  ;;  %v3671_v18 = vmul.bf16 1061961548, %v3655_v0  ;;  %v3626_v16 = vmul.bf16 %v3610_v44, %v7087_v49  ;;  %v3673_v58 = vmul.bf16 1061961548, %v3657_v20 }
0x105d   : > { %5486 = vtanh.bf16 %v3672_v19  ;;  %v3627_v8 = vmul.bf16 %v3611_v35, %v7091_v52  ;;  %v3629_v14 = vmul.bf16 %v3613_v53, %v7093_v39  ;;  %v3628_v48 = vmul.bf16 %v3612_v15, %v7089_v13 }
0x105e   : > { %5488 = vtanh.bf16 %v3671_v18  ;;  %v3642_v11 = vmul.bf16 %v3626_v16, %v7087_v49  ;;  %v3591_v3 = vmul.bf16 1056980736, %v7063_v60  ;;  %v3590_v38 = vmul.bf16 1056980736, %v7059_v43 }
0x105f   : > { %v3643_v42 = vmul.bf16 %v3627_v8, %v7091_v52  ;;  %v3645_v55 = vmul.bf16 %v3629_v14, %v7093_v39  ;;  %5490 = vtanh.bf16 %v3673_v58  ;;  %v3644_v7 = vmul.bf16 %v3628_v48, %v7089_v13 }
0x1060   : > { %v3658_v34 = vadd.bf16 %v3642_v11, %v7087_v49  ;;  %v3593_v4 = vmul.bf16 1056980736, %v7065_v24  ;;  %v3592_v47 = vmul.bf16 1056980736, %v7061_v57  ;;  %v3595_v60 = vmul.bf16 1056980736, %v7091_v52 }
0x1061   : > { %v3659_v46 = vadd.bf16 %v3643_v42, %v7091_v52  ;;  %v3661_v23 = vadd.bf16 %v3645_v55, %v7093_v39  ;;  %v3660_v32 = vadd.bf16 %v3644_v7, %v7089_v13  ;;  %v3597_v43 = vmul.bf16 1056980736, %v7093_v39 }
0x1062   : > { %v3674_v54 = vmul.bf16 1061961548, %v3658_v34  ;;  %v3594_v53 = vmul.bf16 1056980736, %v7087_v49 }
0x1063   : > { %v3675_v29 = vmul.bf16 1061961548, %v3659_v46  ;;  %v3677_v21 = vmul.bf16 1061961548, %v3661_v23  ;;  %v3676_v36 = vmul.bf16 1061961548, %v3660_v32 }
0x1065   : > { %5492 = vtanh.bf16 %v3675_v29 }
0x1066   : > { %5494 = vtanh.bf16 %v3677_v21 }
0x1067   : > { %v5485_v28 = vpop.eup %5484  ;;  %5496 = vtanh.bf16 %v3674_v54 }
0x1068   : > { %v5487_v41 = vpop.eup %5486  ;;  %5498 = vtanh.bf16 %v3676_v36  ;;  %v3702_v51 = vadd.bf16 1065369472, %v5485_v28  ;;  %v3596_v36 = vmul.bf16 1056980736, %v7089_v13 }
0x1069   : > { %v5489_v61 = vpop.eup %5488  ;;  %v3704_v10 = vadd.bf16 1065369472, %v5487_v41 }
0x106a   : > { %v3703_v59 = vadd.bf16 1065369472, %v5489_v61  ;;  %v5491_v40 = vpop.eup %5490  ;;  %v3718_v62 = vmul.bf16 %v3702_v51, %v3590_v38 }
0x106b   : > { %v3705_v27 = vadd.bf16 1065369472, %v5491_v40  ;;  %v3720_v0 = vmul.bf16 %v3704_v10, %v3592_v47 }
0x106c   : > { %v3719_v37 = vmul.bf16 %v3703_v59, %v3591_v3 }
0x106d   : > { %v3721_v5 = vmul.bf16 %v3705_v27, %v3593_v4 }
0x106e   : > { %3964 = vmatprep.mubr.bf16.mxu1 %v3719_v37 }
0x106f   : > { %3965 = vmatmul.mubr.bf16.vlgmr.msra.gmra.mrb[64].mxu1 %v3718_v62  ;;  %4029 = vmatprep.mubr.bf16.mxu0 %v3721_v5 }
0x1070   : > { %v5493_v6 = vpop.eup %5492  ;;  %v3482_v56 = vpop.f32.mrb[56].mxu1  ;;  %4030 = vmatmul.mubr.bf16.vlgmr.msra.gmra.mrb[64].mxu0 %v3720_v0 }
0x1071   : > { %v3555_v2 = vpop.f32.mrb[56].mxu0  ;;  %v5495_v19 = vpop.eup %5494  ;;  %v3483_v44 = vadd.f32 %v3482_v56, %v7039_v50  ;;  %v3707_v35 = vadd.bf16 1065369472, %v5493_v6 }
0x1072   : > { %v3484_v24 = vpop.f32.mrb[57].mxu1  ;;  %v3557_v15 = vpop.f32.mrb[57].mxu0  ;;  %v3556_v22 = vadd.f32 %v3555_v2, %v7043_v33  ;;  %v3709_v39 = vadd.bf16 1065369472, %v5495_v19 }
0x1073   : > { %v5497_v57 = vpop.eup %5496  ;;  %v3485_v18 = vadd.f32 %v3484_v24, %v7047_v12  ;;  %v3558_v20 = vadd.f32 %v3557_v15, %v7049_v9  ;;  %v3486_v52 = vpop.f32.mrb[58].mxu1  ;;  %v3723_v55 = vmul.bf16 %v3707_v35, %v3595_v60 }
0x1074   : > { %v3559_v8 = vpop.f32.mrb[58].mxu0  ;;  %v5499_v14 = vpop.eup %5498  ;;  %v3487_v16 = vadd.f32 %v3486_v52, %v7039_v50  ;;  %v3706_v49 = vadd.bf16 1065369472, %v5497_v57  ;;  %v3725_v7 = vmul.bf16 %v3709_v39, %v3597_v43 }
0x1075   : > { %v3560_v58 = vadd.f32 %v3559_v8, %v7043_v33  ;;  %v3488_v42 = vpop.f32.mrb[59].mxu1  ;;  %v3561_v48 = vpop.f32.mrb[59].mxu0  ;;  %v3708_v23 = vadd.bf16 1065369472, %v5499_v14  ;;  %3972 = vmatprep.mubr.bf16.mxu1 %v3723_v55 }
0x1076   : > { %v3489_v11 = vadd.f32 %v3488_v42, %v7047_v12  ;;  %v3562_v46 = vadd.f32 %v3561_v48, %v7049_v9  ;;  %v7130_v34 = vpack.c.bf16 %v3487_v16, %v3483_v44  ;;  %v3722_v32 = vmul.bf16 %v3706_v49, %v3594_v53  ;;  %4037 = vmatprep.mubr.bf16.mxu0 %v3725_v7 }
0x1077   : > { %v7132_v29 = vpack.c.bf16 %v3560_v58, %v3556_v22  ;;  %v3724_v51 = vmul.bf16 %v3708_v23, %v3596_v36 }
0x1078   : > { %v7134_v21 = vpack.c.bf16 %v3489_v11, %v3485_v18  ;;  %v7136_v54 = vpack.c.bf16 %v3562_v46, %v3558_v20  ;;  %v3614_v28 = vmul.bf16 1027030327, %v7130_v34  ;;  %3973 = vmatmul.mubr.bf16.gmra.mrb[68].mxu1 %v3722_v32  ;;  %v3492_v3 = vpop.f32.mrb[60].mxu1  ;;  %v3565_v59 = vpop.f32.mrb[60].mxu0 }
0x1079   : > { %v3616_v38 = vmul.bf16 1027030327, %v7132_v29  ;;  %v3493_v40 = vadd.f32 %v3492_v3, %v7039_v50  ;;  %v3494_v37 = vpop.f32.mrb[61].mxu1  ;;  %v3567_v10 = vpop.f32.mrb[61].mxu0  ;;  %4038 = vmatmul.mubr.bf16.gmra.mrb[68].mxu0 %v3724_v51  ;;  %v3566_v4 = vadd.f32 %v3565_v59, %v7043_v33 }
0x107a   : > { %v3615_v41 = vmul.bf16 1027030327, %v7134_v21  ;;  %v3617_v61 = vmul.bf16 1027030327, %v7136_v54  ;;  %v3495_v13 = vadd.f32 %v3494_v37, %v7047_v12  ;;  %v3496_v27 = vpop.f32.mrb[62].mxu1  ;;  %v3569_v62 = vpop.f32.mrb[62].mxu0  ;;  %v3568_v6 = vadd.f32 %v3567_v10, %v7049_v9 }
0x107b   : > { %v3497_v0 = vadd.f32 %v3496_v27, %v7039_v50  ;;  %v3570_v56 = vadd.f32 %v3569_v62, %v7043_v33  ;;  %v3498_v2 = vpop.f32.mrb[63].mxu1  ;;  %v3571_v60 = vpop.f32.mrb[63].mxu0  ;;  %v3630_v43 = vmul.bf16 %v3614_v28, %v7130_v34  ;;  %v3632_v33 = vmul.bf16 %v3616_v38, %v7132_v29 }
0x107c   : > { %v3631_v47 = vmul.bf16 %v3615_v41, %v7134_v21  ;;  %v3633_v5 = vmul.bf16 %v3617_v61, %v7136_v54  ;;  %v3499_v19 = vadd.f32 %v3498_v2, %v7047_v12  ;;  %v3572_v44 = vadd.f32 %v3571_v60, %v7049_v9 }
0x107d   : > { %v7156_v35 = vpack.c.bf16 %v3497_v0, %v3493_v40  ;;  %v7158_v53 = vpack.c.bf16 %v3570_v56, %v3566_v4  ;;  %v3646_v50 = vmul.bf16 %v3630_v43, %v7130_v34  ;;  %v3648_v52 = vmul.bf16 %v3632_v33, %v7132_v29 }
0x107e   : > { %v3647_v24 = vmul.bf16 %v3631_v47, %v7134_v21  ;;  %v3649_v15 = vmul.bf16 %v3633_v5, %v7136_v54  ;;  %v7162_v57 = vpack.c.bf16 %v3499_v19, %v3495_v13  ;;  %v7164_v22 = vpack.c.bf16 %v3572_v44, %v3568_v6 }
0x107f   : > { %v3618_v18 = vmul.bf16 1027030327, %v7156_v35  ;;  %v3662_v20 = vadd.bf16 %v3646_v50, %v7130_v34  ;;  %v3620_v16 = vmul.bf16 1027030327, %v7158_v53  ;;  %v3664_v48 = vadd.bf16 %v3648_v52, %v7132_v29 }
0x1080   : > { %v3663_v12 = vadd.bf16 %v3647_v24, %v7134_v21  ;;  %v3665_v9 = vadd.bf16 %v3649_v15, %v7136_v54  ;;  %v3619_v8 = vmul.bf16 1027030327, %v7162_v57  ;;  %v3621_v39 = vmul.bf16 1027030327, %v7164_v22 }
0x1081   : > { %v3678_v42 = vmul.bf16 1061961548, %v3662_v20  ;;  %v3680_v11 = vmul.bf16 1061961548, %v3664_v48  ;;  %v3634_v46 = vmul.bf16 %v3618_v18, %v7156_v35  ;;  %v3636_v36 = vmul.bf16 %v3620_v16, %v7158_v53 }
0x1082   : > { %v3679_v14 = vmul.bf16 1061961548, %v3663_v12  ;;  %v3681_v58 = vmul.bf16 1061961548, %v3665_v9  ;;  %v3635_v55 = vmul.bf16 %v3619_v8, %v7162_v57  ;;  %v3637_v49 = vmul.bf16 %v3621_v39, %v7164_v22 }
0x1083   : > { %v3650_v32 = vmul.bf16 %v3634_v46, %v7156_v35  ;;  %v3652_v51 = vmul.bf16 %v3636_v36, %v7158_v53  ;;  %v3599_v13 = vmul.bf16 1056980736, %v7134_v21  ;;  %v3601_v47 = vmul.bf16 1056980736, %v7136_v54 }
0x1084   : > { %5500 = vtanh.bf16 %v3679_v14  ;;  %v3651_v7 = vmul.bf16 %v3635_v55, %v7162_v57  ;;  %v3653_v23 = vmul.bf16 %v3637_v49, %v7164_v22  ;;  %v3598_v56 = vmul.bf16 1056980736, %v7130_v34 }
0x1085   : > { %5502 = vtanh.bf16 %v3681_v58  ;;  %v3666_v61 = vadd.bf16 %v3650_v32, %v7156_v35  ;;  %v3668_v40 = vadd.bf16 %v3652_v51, %v7158_v53  ;;  %v3600_v43 = vmul.bf16 1056980736, %v7132_v29 }
0x1086   : > { %5504 = vtanh.bf16 %v3678_v42  ;;  %v3667_v28 = vadd.bf16 %v3651_v7, %v7162_v57  ;;  %v3669_v41 = vadd.bf16 %v3653_v23, %v7164_v22  ;;  %v3603_v54 = vmul.bf16 1056980736, %v7162_v57 }
0x1087   : > { %5506 = vtanh.bf16 %v3680_v11  ;;  %v3682_v38 = vmul.bf16 1061961548, %v3666_v61  ;;  %v3684_v37 = vmul.bf16 1061961548, %v3668_v40  ;;  %v3605_v12 = vmul.bf16 1056980736, %v7164_v22 }
0x1088   : > { %v3683_v3 = vmul.bf16 1061961548, %v3667_v28  ;;  %v3685_v59 = vmul.bf16 1061961548, %v3669_v41  ;;  %v3602_v29 = vmul.bf16 1056980736, %v7156_v35 }
0x1089   : > { %v3604_v8 = vmul.bf16 1056980736, %v7158_v53  ;;  %v7197_v22 = vld [vmem:[%s7360_s26] ss:$0 sm:$0xff] }
0x108a   : > { %5508 = vtanh.bf16 %v3683_v3 }
0x108b   : > { %5510 = vtanh.bf16 %v3685_v59 }
0x108c   : > { %5512 = vtanh.bf16 %v3682_v38 }
0x108d   : > { %5514 = vtanh.bf16 %v3684_v37 }
0x108f   : > { %v5501_v10 = vpop.eup %5500 }
0x1090   : > { %v5503_v4 = vpop.eup %5502  ;;  %v3711_v27 = vadd.bf16 1065369472, %v5501_v10 }
0x1091   : > { %v5505_v62 = vpop.eup %5504  ;;  %v3713_v5 = vadd.bf16 1065369472, %v5503_v4 }
0x1092   : > { %v5507_v6 = vpop.eup %5506  ;;  %v3727_v0 = vmul.bf16 %v3711_v27, %v3599_v13  ;;  %v3710_v2 = vadd.bf16 1065369472, %v5505_v62 }
0x1093   : > { %v3729_v60 = vmul.bf16 %v3713_v5, %v3601_v47  ;;  %v3712_v19 = vadd.bf16 1065369472, %v5507_v6 }
0x1094   : > { %3980 = vmatprep.mubr.bf16.mxu1 %v3727_v0  ;;  %v3726_v44 = vmul.bf16 %v3710_v2, %v3598_v56 }
0x1095   : > { %4045 = vmatprep.mubr.bf16.mxu0 %v3729_v60  ;;  %v3728_v24 = vmul.bf16 %v3712_v19, %v3600_v43  ;;  %v5509_v21 = vpop.eup %5508 }
0x1096   : > { %3981 = vmatmul.mubr.bf16.gmra.mrb[72].mxu1 %v3726_v44  ;;  %v5511_v15 = vpop.eup %5510  ;;  %v3715_v50 = vadd.bf16 1065369472, %v5509_v21 }
0x1097   : > { %4046 = vmatmul.mubr.bf16.gmra.mrb[72].mxu0 %v3728_v24  ;;  %v5513_v33 = vpop.eup %5512  ;;  %v3717_v34 = vadd.bf16 1065369472, %v5511_v15 }
0x1098   : > { %v5515_v9 = vpop.eup %5514  ;;  %v3731_v18 = vmul.bf16 %v3715_v50, %v3603_v54  ;;  %v3714_v20 = vadd.bf16 1065369472, %v5513_v33 }
0x1099   : > { %v3733_v52 = vmul.bf16 %v3717_v34, %v3605_v12  ;;  %v3716_v39 = vadd.bf16 1065369472, %v5515_v9 }
0x109a   : > { %3988 = vmatprep.mubr.bf16.mxu1 %v3731_v18  ;;  %v3730_v14 = vmul.bf16 %v3714_v20, %v3602_v29 }
0x109b   : > { %4053 = vmatprep.mubr.bf16.mxu0 %v3733_v52  ;;  %v3732_v16 = vmul.bf16 %v3716_v39, %v3604_v8 }
0x109e   : > { %3989 = vmatmul.mubr.bf16.gmra.mrb[76].mxu1 %v3730_v14 }
0x109f   : > { %4054 = vmatmul.mubr.bf16.gmra.mrb[76].mxu0 %v3732_v16 }
0x1142   : > { %v4774_v57 = vpop.f32.mrb[64].mxu1 }
0x1143   : > { %v4775_v58 = vpop.f32.mrb[65].mxu1  ;;  %v4814_v55 = vpop.f32.mrb[64].mxu0 }
0x1144   : > { %v4776_v42 = vadd.f32 %v4775_v58, %v4774_v57  ;;  %v4777_v48 = vpop.f32.mrb[66].mxu1  ;;  %v4815_v11 = vpop.f32.mrb[65].mxu0 }
0x1145   : > { %v4778_v35 = vpop.f32.mrb[67].mxu1  ;;  %v4816_v46 = vadd.f32 %v4815_v11, %v4814_v55  ;;  %v4817_v7 = vpop.f32.mrb[66].mxu0 }
0x1146   : > { %v3967_v49 = vadd.f32 %v4776_v42, %v7197_v22  ;;  %v4779_v53 = vadd.f32 %v4778_v35, %v4777_v48  ;;  %v4818_v32 = vpop.f32.mrb[67].mxu0 }
0x1147   : > { %v4819_v28 = vadd.f32 %v4818_v32, %v4817_v7 }
0x1148   : > { %v3970_v23 = vadd.f32 %v4779_v53, %v7197_v22  ;;  %v4032_v36 = vadd.f32 %v4816_v46, %v3967_v49 }
0x114a   : > { %v4062_v61 = vadd.f32 %v4032_v36, %v6889_v25  ;;  %v4035_v51 = vadd.f32 %v4819_v28, %v3970_v23 }
0x114b   : > { %v4780_v41 = vpop.f32.mrb[68].mxu1 }
0x114c   : > { %v4781_v3 = vpop.f32.mrb[69].mxu1  ;;  %4070 = vst [vmem:[#allocation2] sm:$0xff] %v4062_v61  ;;  %v4063_v40 = vadd.f32 %v4035_v51, %v6891_v63  ;;  %v4820_v37 = vpop.f32.mrb[68].mxu0 }
0x114d   : > { %v4782_v59 = vadd.f32 %v4781_v3, %v4780_v41  ;;  %v4783_v38 = vpop.f32.mrb[70].mxu1  ;;  %v4821_v13 = vpop.f32.mrb[69].mxu0 }
0x114e   : > { %v4784_v10 = vpop.f32.mrb[71].mxu1  ;;  %4071 = vst [vmem:[#allocation2 + $0x8] sm:$0xff] %v4063_v40  ;;  %v4822_v62 = vadd.f32 %v4821_v13, %v4820_v37  ;;  %v4823_v47 = vpop.f32.mrb[70].mxu0  ;;  %v5525_v13 = vld [vmem:[%s7361_s21 + $0x8] sm:$0xff] (!%p4632_p10)  }
0x114f   : > { %v3975_v4 = vadd.f32 %v4782_v59, %v7197_v22  ;;  %v4785_v27 = vadd.f32 %v4784_v10, %v4783_v38  ;;  %v4824_v6 = vpop.f32.mrb[71].mxu0  ;;  %v5524_v10 = vld [vmem:[%s7361_s21] sm:$0xff] (!%p4632_p10)  }
0x1150   : > { %v4825_v0 = vadd.f32 %v4824_v6, %v4823_v47  ;;  %v5528_v47 = vld [vmem:[%s7361_s21 + $0x20] sm:$0xff] (!%p4632_p10)   ;;  %v5530_v6 = vld [vmem:[%s7361_s21 + $0x30] sm:$0xff] (!%p4632_p10)  }
0x1151   : > { %v3978_v5 = vadd.f32 %v4785_v27, %v7197_v22  ;;  %v4040_v25 = vadd.f32 %v4822_v62, %v3975_v4  ;;  %v5804_v4 = vmov (!%p4632_p10), 0.0   ;;  %v5526_v27 = vld [vmem:[%s7361_s21 + $0x10] sm:$0xff] (!%p4632_p10)   ;;  %v5527_v62 = vld [vmem:[%s7361_s21 + $0x18] sm:$0xff] (!%p4632_p10)  }
0x1152   : > { %5023 = vmatprep.subr.bf16.mxu0 (!%p4632_p10), %v5804_v4  ;;  %5039 = vmatprep.mubr.msk.bf16.mxu0 (!%p4632_p10), %vm5805_vm6, %v5804_v4 }
0x1153   : > { %v4064_v56 = vadd.f32 %v4040_v25, %v6894_v31  ;;  %v4043_v2 = vadd.f32 %v4825_v0, %v3978_v5  ;;  %v4082_v23 = vld [vmem:[#allocation2] sm:$0x1] (!%p4632_p10)  ;;  %5024 = vmatpush3.bf16.msra.mxu0 (!%p4632_p10), %v5524_v10  ;;  %v5529_v5 = vld [vmem:[%s7361_s21 + $0x28] sm:$0xff] (!%p4632_p10)   ;;  %v5531_v25 = vld [vmem:[%s7361_s21 + $0x38] sm:$0xff] (!%p4632_p10)  }
0x1154   : > { %5025 = vmatprep.subr.bf16.mxu0 (!%p4632_p10), %v5804_v4 }
0x1155   : > { %4072 = vst [vmem:[#allocation2 + $0x10] sm:$0xff] %v4064_v56  ;;  %v4065_v63 = vadd.f32 %v4043_v2, %v6898_v45 }
0x1157   : > { %4073 = vst [vmem:[#allocation2 + $0x18] sm:$0xff] %v4065_v63  ;;  %5026 = vmatpush3.bf16.msra.mxu0 (!%p4632_p10), %v5525_v13 }
0x1158   : > { %5027 = vmatprep.subr.bf16.mxu0 (!%p4632_p10), %v5804_v4 }
0x115b   : > { %5028 = vmatpush3.bf16.msra.mxu0 (!%p4632_p10), %v5526_v27 }
0x115c   : > { %5029 = vmatprep.subr.bf16.mxu0 (!%p4632_p10), %v5804_v4 }
0x115f   : > { %5030 = vmatpush3.bf16.msra.mxu0 (!%p4632_p10), %v5527_v62 }
0x1160   : > { %5031 = vmatprep.subr.bf16.mxu0 (!%p4632_p10), %v5804_v4 }
0x1163   : > { %5032 = vmatpush3.bf16.msra.mxu0 (!%p4632_p10), %v5528_v47 }
0x1164   : > { %5033 = vmatprep.subr.bf16.mxu0 (!%p4632_p10), %v5804_v4 }
0x1167   : > { %5034 = vmatpush3.bf16.msra.mxu0 (!%p4632_p10), %v5529_v5 }
0x1168   : > { %5035 = vmatprep.subr.bf16.mxu0 (!%p4632_p10), %v5804_v4 }
0x1169   : > { %v4786_v60 = vpop.f32.mrb[72].mxu1 }
0x116a   : > { %v4826_v43 = vpop.f32.mrb[72].mxu0  ;;  %v4787_v19 = vpop.f32.mrb[73].mxu1 }
0x116b   : > { %v4788_v44 = vadd.f32 %v4787_v19, %v4786_v60  ;;  %v4827_v24 = vpop.f32.mrb[73].mxu0  ;;  %v4789_v21 = vpop.f32.mrb[74].mxu1  ;;  %5036 = vmatpush3.bf16.msra.mxu0 (!%p4632_p10), %v5530_v6  ;;  %v4633_v60 = vld [vmem:[%s7362_s9] ss:$0 sm:$0xff] (!%p4632_p10) }
0x116c   : > { %v4828_v15 = vadd.f32 %v4827_v24, %v4826_v43  ;;  %v4829_v54 = vpop.f32.mrb[74].mxu0  ;;  %v4790_v50 = vpop.f32.mrb[75].mxu1  ;;  %5037 = vmatprep.subr.bf16.mxu0 (!%p4632_p10), %v5804_v4 }
0x116d   : > { %v3983_v33 = vadd.f32 %v4788_v44, %v7197_v22  ;;  %v4791_v12 = vadd.f32 %v4790_v50, %v4789_v21  ;;  %v4830_v34 = vpop.f32.mrb[75].mxu0  ;;  %v4634_v44 = vld [vmem:[%s7363_s3] ss:$0 sm:$0xff] (!%p4632_p10) }
0x116e   : > { %v4831_v9 = vadd.f32 %v4830_v34, %v4829_v54 }
0x116f   : > { %v4048_v31 = vadd.f32 %v4828_v15, %v3983_v33  ;;  %v3986_v18 = vadd.f32 %v4791_v12, %v7197_v22  ;;  %5038 = vmatpush3.bf16.msra.mxu0 (!%p4632_p10), %v5531_v25 }
0x1171   : > { %v4066_v45 = vadd.f32 %v4048_v31, %v6901_v26  ;;  %v4051_v29 = vadd.f32 %v4831_v9, %v3986_v18  ;;  %v4792_v20 = vpop.f32.mrb[76].mxu1 }
0x1172   : > { %v4832_v52 = vpop.f32.mrb[76].mxu0  ;;  %v4793_v8 = vpop.f32.mrb[77].mxu1 }
0x1173   : > { %4074 = vst [vmem:[#allocation2 + $0x20] sm:$0xff] %v4066_v45  ;;  %v4067_v39 = vadd.f32 %v4051_v29, %v6903_v30  ;;  %v4794_v14 = vadd.f32 %v4793_v8, %v4792_v20  ;;  %v4833_v16 = vpop.f32.mrb[77].mxu0  ;;  %v4795_v57 = vpop.f32.mrb[78].mxu1  ;;  %v4635_v29 = vld [vmem:[%s7364_s23] ss:$0 sm:$0xff] (!%p4632_p10) }
0x1174   : > { %v4834_v58 = vadd.f32 %v4833_v16, %v4832_v52  ;;  %v4835_v42 = vpop.f32.mrb[78].mxu0  ;;  %v4796_v48 = vpop.f32.mrb[79].mxu1 }
0x1175   : > { %4075 = vst [vmem:[#allocation2 + $0x28] sm:$0xff] %v4067_v39  ;;  %v3991_v55 = vadd.f32 %v4794_v14, %v7197_v22  ;;  %v4797_v35 = vadd.f32 %v4796_v48, %v4795_v57  ;;  %v4836_v49 = vpop.f32.mrb[79].mxu0 }
0x1176   : > { %v4837_v11 = vadd.f32 %v4836_v49, %v4835_v42 }
0x1177   : > { %v4056_v26 = vadd.f32 %v4834_v58, %v3991_v55  ;;  %v3994_v53 = vadd.f32 %v4797_v35, %v7197_v22  ;;  %4081 = sbr.rel (%p4632_p10) target bundleno = 5022 (0x139e), region = 120 }
0x1179   : > { %v4068_v46 = vadd.f32 %v4056_v26, %v6906_v1  ;;  %v4059_v7 = vadd.f32 %v4837_v11, %v3994_v53 }
0x117a   : > { %v4083_v32 = vld [vmem:[#allocation2 + $0x20] sm:$0x1] (!%p4632_p10) }
0x117b   : > { %4076 = vst [vmem:[#allocation2 + $0x30] sm:$0xff] %v4068_v46  ;;  %v4069_v30 = vadd.f32 %v4059_v7, %v6909_v17  ;;  %v4088_v36 = vrot.slane (!%p4632_p10), %v4083_v32, 7 }
0x117d   : > { %4077 = vst [vmem:[#allocation2 + $0x38] sm:$0xff] %v4069_v30  ;;  %v4090_v28 = vsel (!%p4632_p10), %vm4089_vm4, %v4088_v36, %v4082_v23 }
0x117e   : > { %v4093_v41 = vsel %vm4092_vm5, %v4090_v28, 0.0 }
0x117f   : > { %4094 = vadd.xlane.f32.xlu0 %v4093_v41 }
0x120c   : > { %v4095_v22 = vpop.xlane.xlu0 %4094 }
0x120d   : > { %v4096_v61 = vmul.f32 0.0078125, %v4095_v22 }
0x120f   : > { %v4098_v1 = vrot.slane %v4096_v61, 1  ;;  %v4101_v51 = vsub.f32 %v4082_v23, %v4096_v61 }
0x1211   : > { %v4102_v3 = vsub.f32 %v4083_v32, %v4098_v1  ;;  %v4103_v17 = vmul.f32 %v4101_v51, %v4101_v51 }
0x1213   : > { %v4104_v59 = vmul.f32 %v4102_v3, %v4102_v3 }
0x1215   : > { %v4107_v38 = vrot.slane %v4104_v59, 7 }
0x1217   : > { %v4108_v40 = vsel %vm4089_vm4, %v4107_v38, %v4103_v17 }
0x1218   : > { %v4110_v37 = vsel %vm4092_vm5, %v4108_v40, 0.0 }
0x1219   : > { %4111 = vadd.xlane.f32.xlu0 %v4110_v37 }
0x12a6   : > { %v4112_v0 = vpop.xlane.xlu0 %4111 }
0x12a7   : > { %v4113_v56 = vmul.f32 0.0078125, %v4112_v0 }
0x12a9   : > { %v4114_v2 = vadd.f32 1e-06, %v4113_v56 }
0x12ab   : > { %5532 = vrsqrt.f32 %v4114_v2 }
0x12b5   : > { %v5533_v63 = vpop.eup %5532 }
0x12b6   : > { %v4117_v43 = vrot.slane %v5533_v63, 1  ;;  %v4120_v19 = vmul.f32 %v5533_v63, %v4101_v51 }
0x12b8   : > { %v4121_v24 = vmul.f32 %v4117_v43, %v4102_v3  ;;  %v4128_v21 = vmul.f32 %v4633_v60, %v4120_v19 }
0x12ba   : > { %v4129_v15 = vmul.f32 %v4633_v60, %v4121_v24  ;;  %v4136_v54 = vadd.f32 %v4634_v44, %v4128_v21 }
0x12bc   : > { %v4137_v50 = vadd.f32 %v4634_v44, %v4129_v15  ;;  %v4138_v33 = vpack.c.bf16 %v4136_v54, %v4136_v54 }
0x12be   : > { %v4139_v12 = vpack.c.bf16 %v4137_v50, %v4137_v50  ;;  %v4165_v9 = vunpack.c.l.b16 %v4138_v33 }
0x12c0   : > { %v4166_v34 = vunpack.c.l.b16 %v4139_v12 }
0x12c2   : > { %v4167_v31 = vrot.slane %v4166_v34, 7 }
0x12c4   : > { %v4168_v18 = vsel %vm4089_vm4, %v4167_v31, %v4165_v9 }
0x12c5   : > { %v4169_v45 = vpack.c.b16 %v4168_v18, %v4168_v18 }
0x12c7   : > { %5040 = vmatmul.mubr.bf16.vlgmr.msra.gmra.mrb[0].mxu0 %v4169_v45 }
0x139a   : > { %v4253_v20 = vpop.f32.mrb[0].mxu0 }
0x139b   : > { %v4254_v52 = vadd.f32 %v4635_v29, %v4253_v20  ;;  %v5041_v8 = vpop.f32.mrb[1].mxu0 }
0x139c   : > { %v4256_v39 = vpop.f32.mrb[2].mxu0 }
0x139d   : > { %4259 = vst [vmem:[#allocation14] sm:$0x3] %v4254_v52  ;;  %v5042_v14 = vpop.f32.mrb[3].mxu0 }
0x139e PF: > { %p5101_p1 = scmp.eq.s32.totalorder %s5916_s28, 1  ;;  %s5806_s1 = smov [#allocation14]  }
0x139f   : > { %s4267_s19 = sshll.u32 %s5806_s1, 4  ;;  %s4268_s19 = int_to_ptr.vmem [resolvable:$true] %s4267_s19 }
0x13a0   : > { %s5714_s4 = scalar_lea.vmem %s4268_s19, 32  ;;  %p5721_p5 = scmp.lt.s32.totalorder %s4268_s19, %s4268_s19 }
0x13a1   : > { %p5715_p0 = scmp.ne.s32.totalorder %s4268_s19, %s5714_s4  ;;  %p5722_p3 = scmp.lt.s32.totalorder %s5714_s4, %s5714_s4 }
0x13a3   : > { %p5716_p2 = pnand %p5715_p0, %p5101_p1  ;;  %p5723_p6 = por %p5722_p3, %p5721_p5 }
0x13a5   : > { %p5717_p7 = pneg %p5716_p2 }
0x13a7   : > { %p5724_p4 = pnand %p5723_p6, %p5717_p7 }
0x13a9   : > { %5727 = shalt.err (!%p5724_p4)
}
0x13aa   : > { %s7365_s18 = sld [smem:[#allocation36_spill]] }
0x13b0   : > { %s5728_s5 = scalar_lea.hbm %s7365_s18, 32 }
0x13b1   : > { %p5729_p11 = scmp.ne.s32.totalorder %s7365_s18, %s5728_s5  ;;  %p5734_p9 = scmp.lt.u32.totalorder %s5728_s5, %s7365_s18 }
0x13b3   : > { %p5730_p8 = pnand %p5729_p11, %p5101_p1 }
0x13b5   : > { %p5731_p12 = pneg %p5730_p8 }
0x13b7   : > { %p5736_p13 = pnand %p5734_p9, %p5731_p12 }
0x13b9   : > { %5739 = shalt.err (!%p5736_p13)
}
0x13ba   : > { %5078 = dma.vmem_to_hbm [thread:$0]  (%p5101_p1), %s4268_s19, 32, %s7365_s18, [#allocation5]  }
0x13bb   : > { %5773 = dma.done.wait (%p5101_p1), [#allocation5], 32  }
0x13bc   : > { %5775 = vsyncadd (%p5101_p1), [#allocation5], 4294967264 }
0x13bd PF: > { %s7366_s27 = sld [smem:[#allocation21_spill]]  ;;  %s7367_s30 = sld [smem:[#allocation20_spill]] }
0x13be   : > { %s7368_s26 = sld [smem:[#allocation22_spill]]  ;;  %s7369_s24 = smov %s5782_s25 }
0x13c3   : > { %p37_p10 = scmp.ge.s32.totalorder %s7366_s27, 4   ;;  %s7370_s25 = smov %s7367_s30 }
0x13c5   :  { %39 = sbr.rel (!%p37_p10) target bundleno = 25 (0x19), region = 212 }
0x13cc   :  { %4280 = vsyncpa [#allocation4], 1 }
0x13cd   :  { %4282 = vsyncpa [#allocation4 + $0x1], 1 }
0x13ce   :  { %4283 = vsyncpa [#allocation7], 1 }
0x13cf   :  { %4285 = vsyncpa [#allocation7 + $0x1], 1 }
0x13d0   :  { %4286 = vsyncpa [#allocation10], 1 }
0x13d1   :  { %4288 = vsyncpa [#allocation10 + $0x1], 1 }
0x13d2   :  { %4289 = vsyncpa [#allocation13], 1 }
0x13d3   :  { %4291 = vsyncpa [#allocation13 + $0x1], 1 }
0x13d4   :  { %4292 = vsyncpa [#allocation5], 1 }
0x13d5   :  { %4294 = vsyncpa [#allocation5 + $0x1], 1 }

</bundles_post_ra>
